<compile_context>
chip_gen: v5e
topology: v5e:2x2
jax: 0.10.0
libtpu: 0.0.40
codegen_flags: <defaults>
</compile_context>

<pallas_src>
import jax
import jax.numpy as jnp
from jax.experimental import pallas as pl
from jax.experimental.pallas import tpu as pltpu


def _make_conv_bn_relu_kernel(tile_h, W, Cin, KH, KW):
    M = tile_h * W
    K = KH * KW * Cin

    def kernel(x_ref, w_ref, shift_ref, out_ref, patch_ref):
        # x_ref    : (H+2, W+2, Cin)  bf16  whole padded sample (resident across r, c)
        # w_ref    : (K, TC)          bf16  BN-scale-folded, im2col-ordered weights
        # shift_ref: (1, TC)          f32   folded BN shift
        # out_ref  : (M, TC)                lane-dense flat output tile
        # patch_ref: (M, K)           bf16  VMEM scratch: im2col patch of this row tile
        r = pl.program_id(1)
        c = pl.program_id(2)

        # Build the im2col patch ONCE per row tile and reuse it for every Cout tile.
        # The build is pure vld/vst + cross-lane repack work; hoisting it out of the
        # c loop removes (n_c - 1)/n_c of that copy traffic and frees the vst slot.
        @pl.when(c == 0)
        def _():
            row0 = pl.multiple_of(r * tile_h, tile_h)
            xwin = x_ref[pl.ds(row0, tile_h + 2), :, :]          # (tile_h+2, W+2, Cin)
            # KW W-shifted windows (static sublane-shift slices).
            # TODO(synk): pltpu.roll along the W axis would move these shifts onto the
            #             otherwise-idle XLU slot; kept as slices for robustness.
            xw = [xwin[:, dx:dx + W, :] for dx in range(KW)]     # (tile_h+2, W, Cin) each
            taps = []
            for dy in range(KH):
                for dx in range(KW):
                    taps.append(xw[dx][dy:dy + tile_h].reshape(M, Cin))
            patch_ref[...] = jnp.concatenate(taps, axis=-1)      # (M, K) bf16

        # One K = KH*KW*Cin contraction on the MXU, f32 accumulation.
        acc = jnp.dot(patch_ref[...], w_ref[...],
                      preferred_element_type=jnp.float32)        # (M, TC)
        y = jnp.maximum(acc + shift_ref[...], 0.0)               # folded BN shift + ReLU
        out_ref[...] = y.astype(out_ref.dtype)

    return kernel


def _pick_tile_h(H, W):
    """Per-layer tile_h: ~8 rows at high resolution, full H at low resolution.

    Target M = tile_h*W rows per tile large enough for good MXU streaming while
    shrinking n_row_tiles (fewer grid steps, fewer weight re-fetches) at the
    28x28 / 14x14 stages.
    """
    target = 2048 if W <= 16 else 1024 if W <= 32 else 512 if W <= 64 else 8 * W
    best = 1
    for d in range(1, H + 1):
        if H % d == 0 and d * W <= target:
            best = d
    return best


def _vmem_limit_bytes():
    """~0.75x of the chip's physical VMEM (v5e/v6e: 128 MiB, v7x: 64 MiB per TC)."""
    cap = 64 * 1024 * 1024
    try:
        info = pltpu.get_tpu_info()
        cap = int(getattr(info, "vmem_capacity_bytes", cap) or cap)
    except Exception:
        pass
    return min(int(cap * 3 // 4), 96 * 1024 * 1024)


def conv_norm_activation_drop(x_nchw, weight_oihw, gamma, beta,
                              running_mean, running_var, eps=1e-5,
                              tile_h=None, tile_c=256,
                              out_layout="nchw", out_dtype=jnp.bfloat16):
    """Forward of ConvNormActivationDrop with stochastic_depth_prob=0 (eval BN).

    x_nchw      : (N, Cin, H, W)   float32
    weight_oihw : (Cout, Cin, 3, 3)
    gamma/beta/running_mean/running_var : (Cout,)
    out_layout  : "nchw" (matches the PyTorch module, slices padded channels, casts to
                  x dtype) or "nhwc_padded" (bf16 (N,H,W,Cout_p) handoff for chaining
                  layers without per-layer transpose / slice / f32 writeback).
    """
    N, Cin, H, W = x_nchw.shape
    Cout, _, KH, KW = weight_oihw.shape
    pad = 1
    assert KH == 3 and KW == 3

    if tile_h is None:
        tile_h = _pick_tile_h(H, W)
    assert H % tile_h == 0
    n_row_tiles = H // tile_h

    # Lane-dense Cout: pad to a multiple of 128 and tile it (default 256 => full-width
    # MXU result tiles on v6e/v7x).
    c_pad = (-Cout) % 128
    Cout_p = Cout + c_pad
    tile_c = min(tile_c, Cout_p)
    assert Cout_p % tile_c == 0
    n_c_tiles = Cout_p // tile_c

    # ---- wrapper glue (XLA): layout, halo pad, BN folding, bf16 cast ----
    x_nhwc = jnp.transpose(x_nchw, (0, 2, 3, 1))                            # (N,H,W,Cin)
    x_pad = jnp.pad(x_nhwc, ((0, 0), (pad, pad), (pad, pad), (0, 0)))        # halo pad
    x_pad = x_pad.astype(jnp.bfloat16)                                       # MXU operand dtype

    scale = gamma / jnp.sqrt(running_var + eps)                              # (Cout,)
    shift = beta - running_mean * scale                                      # (Cout,)
    w_hwio = jnp.transpose(weight_oihw, (2, 3, 1, 0))                        # (KH,KW,Cin,Cout)
    w_folded = w_hwio * scale[None, None, None, :]                           # fold BN scale
    K = KH * KW * Cin
    w_mat = w_folded.reshape(K, Cout)                                        # im2col order (dy,dx,ci)
    w_mat = jnp.pad(w_mat, ((0, 0), (0, c_pad))).astype(jnp.bfloat16)        # (K, Cout_p)
    shift_p = jnp.pad(shift, (0, c_pad)).reshape(1, Cout_p).astype(jnp.float32)

    kernel = _make_conv_bn_relu_kernel(tile_h, W, Cin, KH, KW)

    def _build_and_run(single_buffer_x):
        if single_buffer_x:
            # Sample block only changes with n; single-buffering it halves its VMEM
            # footprint (key on v7x's 64 MiB) at the cost of one exposed DMA/sample.
            x_spec = pl.BlockSpec((None, H + 2 * pad, W + 2 * pad, Cin),
                                  lambda n, r, c: (n, 0, 0, 0),
                                  pipeline_mode=pl.Buffered(1))
        else:
            x_spec = pl.BlockSpec((None, H + 2 * pad, W + 2 * pad, Cin),
                                  lambda n, r, c: (n, 0, 0, 0))
        return pl.pallas_call(
            kernel,
            out_shape=jax.ShapeDtypeStruct((N, H * W, Cout_p), out_dtype),
            grid=(N, n_row_tiles, n_c_tiles),
            in_specs=[
                x_spec,                                                   # resident sample
                pl.BlockSpec((K, tile_c), lambda n, r, c: (0, c)),        # folded weights
                pl.BlockSpec((1, tile_c), lambda n, r, c: (0, c)),        # folded BN shift
            ],
            # Flat, lane-dense output tile (tile_h*W rows x tile_c lanes), bf16.
            out_specs=pl.BlockSpec((None, tile_h * W, tile_c), lambda n, r, c: (n, r, c)),
            scratch_shapes=[pltpu.VMEM((tile_h * W, K), jnp.bfloat16)],   # im2col patch cache
            compiler_params=pltpu.CompilerParams(
                # Batch axis shards across cores (v7x megacore keeps one sample fetch
                # per core); r/c carry the patch scratch state so they are "arbitrary".
                dimension_semantics=("parallel", "arbitrary", "arbitrary"),
                vmem_limit_bytes=_vmem_limit_bytes()),
        )(x_pad, w_mat, shift_p)

    # Prefer single-buffered x; fall back transparently if this Pallas build rejects
    # pipeline_mode / Buffered(1).  (block_until_ready forces compile errors to surface
    # here; this wrapper is meant to be called eagerly, not inside jit.)
    try:
        out_flat = jax.block_until_ready(_build_and_run(True))
    except Exception:
        out_flat = _build_and_run(False)

    out_nhwc_p = out_flat.reshape(N, H, W, Cout_p)
    if out_layout == "nhwc_padded":
        return out_nhwc_p                                                   # bf16, padded channels are 0
    out_nhwc = out_nhwc_p[..., :Cout]
    return jnp.transpose(out_nhwc, (0, 3, 1, 2)).astype(x_nchw.dtype)        # back to NCHW


def _reference(x_nchw, weight_oihw, gamma, beta, running_mean, running_var, eps=1e-5):
    y = jax.lax.conv_general_dilated(
        x_nchw, weight_oihw, window_strides=(1, 1), padding=((1, 1), (1, 1)),
        dimension_numbers=("NCHW", "OIHW", "NCHW"))
    scale = (gamma / jnp.sqrt(running_var + eps)).reshape(1, -1, 1, 1)
    shift = (beta - running_mean * gamma / jnp.sqrt(running_var + eps)).reshape(1, -1, 1, 1)
    return jnp.maximum(y * scale + shift, 0.0)


if __name__ == "__main__":
    key = jax.random.PRNGKey(0)
    k1, k2, k3, k4, k5, k6 = jax.random.split(key, 6)

    N, Cin, Cout, H, W = 2, 4, 8, 16, 16

    x = jax.random.normal(k1, (N, Cin, H, W), dtype=jnp.float32)
    weight = jax.random.normal(k2, (Cout, Cin, 3, 3), dtype=jnp.float32) * 0.1
    gamma = 1.0 + 0.1 * jax.random.normal(k3, (Cout,), dtype=jnp.float32)
    beta = 0.1 * jax.random.normal(k4, (Cout,), dtype=jnp.float32)
    running_mean = 0.1 * jax.random.normal(k5, (Cout,), dtype=jnp.float32)
    running_var = jnp.abs(jax.random.normal(k6, (Cout,), dtype=jnp.float32)) + 0.5

    out = conv_norm_activation_drop(x, weight, gamma, beta, running_mean, running_var)
    out = jax.block_until_ready(out)

    ref = _reference(x, weight, gamma, beta, running_mean, running_var)
    assert out.shape == (N, Cout, H, W)
    err = float(jnp.max(jnp.abs(out - ref)))
    # bf16 MXU operands + bf16 output with f32 accumulation => small, bounded error
    # vs the f32 reference.
    assert err < 6e-2, f"max abs err {err}"

    print("KERNEL_OK")
</pallas_src>

<mosaic_0001>
module attributes {stable_mosaic.version = 11 : i64} {
  func.func @kernel(%arg0: i32, %arg1: i32, %arg2: i32, %arg3: memref<1x18x18x4xbf16, #tpu.memory_space<vmem>>, %arg4: memref<36x128xbf16, #tpu.memory_space<vmem>>, %arg5: memref<1x128xf32, #tpu.memory_space<vmem>>, %arg6: memref<1x256x128xbf16, #tpu.memory_space<vmem>>, %arg7: memref<256x36xbf16, #tpu.memory_space<vmem>>) attributes {dimension_semantics = [#tpu.dimension_semantics<parallel>, #tpu.dimension_semantics<arbitrary>, #tpu.dimension_semantics<arbitrary>], iteration_bounds = array<i64: 2, 1, 1>, scalar_prefetch = 0 : i64, scratch_operands = 1 : i64, tpu.core_type = #tpu.core_type<tc>, window_params = [{pipeline_mode = #tpu.pipeline_mode<synchronous>, transform_indices = @transform_0, window_bounds = array<i64: 1, 18, 18, 4>}, {transform_indices = @transform_1, window_bounds = array<i64: 36, 128>}, {transform_indices = @transform_2, window_bounds = array<i64: 1, 128>}, {transform_indices = @transform_3, window_bounds = array<i64: 1, 256, 128>}]} {
    %c0_i32 = arith.constant 0 : i32
    %0 = arith.cmpi eq, %arg2, %c0_i32 : i32
    %1 = arith.extui %0 : i1 to i32
    %c0_i32_0 = arith.constant 0 : i32
    %2 = arith.cmpi ne, %1, %c0_i32_0 : i32
    scf.if %2 {
      %c16_i32 = arith.constant 16 : i32
      %15 = arith.muli %arg1, %c16_i32 : i32
      %16 = tpu.assume_multiple %15, 16 : i32
      %c0_10 = arith.constant 0 : index
      %17 = arith.index_cast %16 : i32 to index
      %c0_11 = arith.constant 0 : index
      %c0_12 = arith.constant 0 : index
      %18 = vector.load %arg3[%c0_10, %17, %c0_11, %c0_12] : memref<1x18x18x4xbf16, #tpu.memory_space<vmem>>, vector<1x18x18x4xbf16>
      %19 = vector.shape_cast %18 : vector<1x18x18x4xbf16> to vector<18x18x4xbf16>
      %20 = vector.extract_strided_slice %19 {offsets = [0, 0, 0], sizes = [18, 16, 4], strides = [1, 1, 1]} : vector<18x18x4xbf16> to vector<18x16x4xbf16>
      %21 = vector.extract_strided_slice %19 {offsets = [0, 1, 0], sizes = [18, 16, 4], strides = [1, 1, 1]} : vector<18x18x4xbf16> to vector<18x16x4xbf16>
      %22 = vector.extract_strided_slice %19 {offsets = [0, 2, 0], sizes = [18, 16, 4], strides = [1, 1, 1]} : vector<18x18x4xbf16> to vector<18x16x4xbf16>
      %23 = vector.extract_strided_slice %20 {offsets = [0, 0, 0], sizes = [16, 16, 4], strides = [1, 1, 1]} : vector<18x16x4xbf16> to vector<16x16x4xbf16>
      %24 = vector.shape_cast %23 : vector<16x16x4xbf16> to vector<256x4xbf16>
      %25 = vector.extract_strided_slice %21 {offsets = [0, 0, 0], sizes = [16, 16, 4], strides = [1, 1, 1]} : vector<18x16x4xbf16> to vector<16x16x4xbf16>
      %26 = vector.shape_cast %25 : vector<16x16x4xbf16> to vector<256x4xbf16>
      %27 = vector.extract_strided_slice %22 {offsets = [0, 0, 0], sizes = [16, 16, 4], strides = [1, 1, 1]} : vector<18x16x4xbf16> to vector<16x16x4xbf16>
      %28 = vector.shape_cast %27 : vector<16x16x4xbf16> to vector<256x4xbf16>
      %29 = vector.extract_strided_slice %20 {offsets = [1, 0, 0], sizes = [16, 16, 4], strides = [1, 1, 1]} : vector<18x16x4xbf16> to vector<16x16x4xbf16>
      %30 = vector.shape_cast %29 : vector<16x16x4xbf16> to vector<256x4xbf16>
      %31 = vector.extract_strided_slice %21 {offsets = [1, 0, 0], sizes = [16, 16, 4], strides = [1, 1, 1]} : vector<18x16x4xbf16> to vector<16x16x4xbf16>
      %32 = vector.shape_cast %31 : vector<16x16x4xbf16> to vector<256x4xbf16>
      %33 = vector.extract_strided_slice %22 {offsets = [1, 0, 0], sizes = [16, 16, 4], strides = [1, 1, 1]} : vector<18x16x4xbf16> to vector<16x16x4xbf16>
      %34 = vector.shape_cast %33 : vector<16x16x4xbf16> to vector<256x4xbf16>
      %35 = vector.extract_strided_slice %20 {offsets = [2, 0, 0], sizes = [16, 16, 4], strides = [1, 1, 1]} : vector<18x16x4xbf16> to vector<16x16x4xbf16>
      %36 = vector.shape_cast %35 : vector<16x16x4xbf16> to vector<256x4xbf16>
      %37 = vector.extract_strided_slice %21 {offsets = [2, 0, 0], sizes = [16, 16, 4], strides = [1, 1, 1]} : vector<18x16x4xbf16> to vector<16x16x4xbf16>
      %38 = vector.shape_cast %37 : vector<16x16x4xbf16> to vector<256x4xbf16>
      %39 = vector.extract_strided_slice %22 {offsets = [2, 0, 0], sizes = [16, 16, 4], strides = [1, 1, 1]} : vector<18x16x4xbf16> to vector<16x16x4xbf16>
      %40 = vector.shape_cast %39 : vector<16x16x4xbf16> to vector<256x4xbf16>
      %41 = tpu.concatenate %24, %26, %28, %30, %32, %34, %36, %38, %40 in 1 : vector<256x4xbf16>, vector<256x4xbf16>, vector<256x4xbf16>, vector<256x4xbf16>, vector<256x4xbf16>, vector<256x4xbf16>, vector<256x4xbf16>, vector<256x4xbf16>, vector<256x4xbf16> -> vector<256x36xbf16>
      %c0_13 = arith.constant 0 : index
      %c0_14 = arith.constant 0 : index
      %42 = vector.load %arg7[%c0_13, %c0_14] : memref<256x36xbf16, #tpu.memory_space<vmem>>, vector<256x36xbf16>
      tpu.vector_store %arg7[%c0_13, %c0_14], %41 {strides = array<i32>} : memref<256x36xbf16, #tpu.memory_space<vmem>>, vector<256x36xbf16>,
    } else {
    }
    %c0 = arith.constant 0 : index
    %c0_1 = arith.constant 0 : index
    %3 = vector.load %arg7[%c0, %c0_1] : memref<256x36xbf16, #tpu.memory_space<vmem>>, vector<256x36xbf16>
    %c0_2 = arith.constant 0 : index
    %c0_3 = arith.constant 0 : index
    %4 = vector.load %arg4[%c0_2, %c0_3] : memref<36x128xbf16, #tpu.memory_space<vmem>>, vector<36x128xbf16>
    %cst = arith.constant dense<0.000000e+00> : vector<256x128xf32>
    %5 = tpu.matmul %3, %4, %cst {dimension_numbers = #tpu.dot_dimension_numbers<[1], [0], [0], [1], [0, 0, 1, 1], [], []>} : vector<256x36xbf16>, vector<36x128xbf16>, vector<256x128xf32> -> vector<256x128xf32>
    %c0_4 = arith.constant 0 : index
    %c0_5 = arith.constant 0 : index
    %6 = vector.load %arg5[%c0_4, %c0_5] : memref<1x128xf32, #tpu.memory_space<vmem>>, vector<1x128xf32>
    %7 = vector.broadcast %6 : vector<1x128xf32> to vector<256x128xf32>
    %8 = arith.addf %5, %7 : vector<256x128xf32>
    %cst_6 = arith.constant 0.000000e+00 : f32
    %9 = vector.broadcast %cst_6 : f32 to vector<256x128xf32>
    %10 = arith.maximumf %8, %9 : vector<256x128xf32>
    %11 = arith.truncf %10 : vector<256x128xf32> to vector<256x128xbf16>
    %c0_7 = arith.constant 0 : index
    %c0_8 = arith.constant 0 : index
    %c0_9 = arith.constant 0 : index
    %12 = vector.load %arg6[%c0_7, %c0_8, %c0_9] : memref<1x256x128xbf16, #tpu.memory_space<vmem>>, vector<1x256x128xbf16>
    %13 = vector.shape_cast %12 : vector<1x256x128xbf16> to vector<256x128xbf16>
    %14 = vector.shape_cast %11 : vector<256x128xbf16> to vector<1x256x128xbf16>
    tpu.vector_store %arg6[%c0_7, %c0_8, %c0_9], %14 {strides = array<i32>} : memref<1x256x128xbf16, #tpu.memory_space<vmem>>, vector<1x256x128xbf16>,
    return
  }
  func.func @transform_0(%arg0: i32, %arg1: i32, %arg2: i32) -> (i32, i32, i32, i32) {
    %c0_i32 = arith.constant 0 : i32
    %c0_i32_0 = arith.constant 0 : i32
    %c0_i32_1 = arith.constant 0 : i32
    %c0_i32_2 = arith.constant 0 : i32
    return %arg0, %c0_i32, %c0_i32_0, %c0_i32_1 : i32, i32, i32, i32
  }
  func.func @transform_1(%arg0: i32, %arg1: i32, %arg2: i32) -> (i32, i32) {
    %c0_i32 = arith.constant 0 : i32
    %c0_i32_0 = arith.constant 0 : i32
    return %c0_i32, %arg2 : i32, i32
  }
  func.func @transform_2(%arg0: i32, %arg1: i32, %arg2: i32) -> (i32, i32) {
    %c0_i32 = arith.constant 0 : i32
    %c0_i32_0 = arith.constant 0 : i32
    return %c0_i32, %arg2 : i32, i32
  }
  func.func @transform_3(%arg0: i32, %arg1: i32, %arg2: i32) -> (i32, i32, i32) {
    %c0_i32 = arith.constant 0 : i32
    return %arg0, %arg1, %arg2 : i32, i32, i32
  }
}

module attributes {stable_mosaic.version = 11 : i64} {
  func.func @kernel(%arg0: i32, %arg1: i32, %arg2: i32, %arg3: memref<1x18x18x4xbf16, #tpu.memory_space<vmem>>, %arg4: memref<36x128xbf16, #tpu.memory_space<vmem>>, %arg5: memref<1x128xf32, #tpu.memory_space<vmem>>, %arg6: memref<1x256x128xbf16, #tpu.memory_space<vmem>>, %arg7: memref<256x36xbf16, #tpu.memory_space<vmem>>) attributes {dimension_semantics = [#tpu.dimension_semantics<parallel>, #tpu.dimension_semantics<arbitrary>, #tpu.dimension_semantics<arbitrary>], iteration_bounds = array<i64: 2, 1, 1>, scalar_prefetch = 0 : i64, scratch_operands = 1 : i64, tpu.core_type = #tpu.core_type<tc>, window_params = [{transform_indices = @transform_0, window_bounds = array<i64: 1, 18, 18, 4>}, {transform_indices = @transform_1, window_bounds = array<i64: 36, 128>}, {transform_indices = @transform_2, window_bounds = array<i64: 1, 128>}, {transform_indices = @transform_3, window_bounds = array<i64: 1, 256, 128>}]} {
    %c0_i32 = arith.constant 0 : i32
    %0 = arith.cmpi eq, %arg2, %c0_i32 : i32
    %1 = arith.extui %0 : i1 to i32
    %c0_i32_0 = arith.constant 0 : i32
    %2 = arith.cmpi ne, %1, %c0_i32_0 : i32
    scf.if %2 {
      %c16_i32 = arith.constant 16 : i32
      %15 = arith.muli %arg1, %c16_i32 : i32
      %16 = tpu.assume_multiple %15, 16 : i32
      %c0_10 = arith.constant 0 : index
      %17 = arith.index_cast %16 : i32 to index
      %c0_11 = arith.constant 0 : index
      %c0_12 = arith.constant 0 : index
      %18 = vector.load %arg3[%c0_10, %17, %c0_11, %c0_12] : memref<1x18x18x4xbf16, #tpu.memory_space<vmem>>, vector<1x18x18x4xbf16>
      %19 = vector.shape_cast %18 : vector<1x18x18x4xbf16> to vector<18x18x4xbf16>
      %20 = vector.extract_strided_slice %19 {offsets = [0, 0, 0], sizes = [18, 16, 4], strides = [1, 1, 1]} : vector<18x18x4xbf16> to vector<18x16x4xbf16>
      %21 = vector.extract_strided_slice %19 {offsets = [0, 1, 0], sizes = [18, 16, 4], strides = [1, 1, 1]} : vector<18x18x4xbf16> to vector<18x16x4xbf16>
      %22 = vector.extract_strided_slice %19 {offsets = [0, 2, 0], sizes = [18, 16, 4], strides = [1, 1, 1]} : vector<18x18x4xbf16> to vector<18x16x4xbf16>
      %23 = vector.extract_strided_slice %20 {offsets = [0, 0, 0], sizes = [16, 16, 4], strides = [1, 1, 1]} : vector<18x16x4xbf16> to vector<16x16x4xbf16>
      %24 = vector.shape_cast %23 : vector<16x16x4xbf16> to vector<256x4xbf16>
      %25 = vector.extract_strided_slice %21 {offsets = [0, 0, 0], sizes = [16, 16, 4], strides = [1, 1, 1]} : vector<18x16x4xbf16> to vector<16x16x4xbf16>
      %26 = vector.shape_cast %25 : vector<16x16x4xbf16> to vector<256x4xbf16>
      %27 = vector.extract_strided_slice %22 {offsets = [0, 0, 0], sizes = [16, 16, 4], strides = [1, 1, 1]} : vector<18x16x4xbf16> to vector<16x16x4xbf16>
      %28 = vector.shape_cast %27 : vector<16x16x4xbf16> to vector<256x4xbf16>
      %29 = vector.extract_strided_slice %20 {offsets = [1, 0, 0], sizes = [16, 16, 4], strides = [1, 1, 1]} : vector<18x16x4xbf16> to vector<16x16x4xbf16>
      %30 = vector.shape_cast %29 : vector<16x16x4xbf16> to vector<256x4xbf16>
      %31 = vector.extract_strided_slice %21 {offsets = [1, 0, 0], sizes = [16, 16, 4], strides = [1, 1, 1]} : vector<18x16x4xbf16> to vector<16x16x4xbf16>
      %32 = vector.shape_cast %31 : vector<16x16x4xbf16> to vector<256x4xbf16>
      %33 = vector.extract_strided_slice %22 {offsets = [1, 0, 0], sizes = [16, 16, 4], strides = [1, 1, 1]} : vector<18x16x4xbf16> to vector<16x16x4xbf16>
      %34 = vector.shape_cast %33 : vector<16x16x4xbf16> to vector<256x4xbf16>
      %35 = vector.extract_strided_slice %20 {offsets = [2, 0, 0], sizes = [16, 16, 4], strides = [1, 1, 1]} : vector<18x16x4xbf16> to vector<16x16x4xbf16>
      %36 = vector.shape_cast %35 : vector<16x16x4xbf16> to vector<256x4xbf16>
      %37 = vector.extract_strided_slice %21 {offsets = [2, 0, 0], sizes = [16, 16, 4], strides = [1, 1, 1]} : vector<18x16x4xbf16> to vector<16x16x4xbf16>
      %38 = vector.shape_cast %37 : vector<16x16x4xbf16> to vector<256x4xbf16>
      %39 = vector.extract_strided_slice %22 {offsets = [2, 0, 0], sizes = [16, 16, 4], strides = [1, 1, 1]} : vector<18x16x4xbf16> to vector<16x16x4xbf16>
      %40 = vector.shape_cast %39 : vector<16x16x4xbf16> to vector<256x4xbf16>
      %41 = tpu.concatenate %24, %26, %28, %30, %32, %34, %36, %38, %40 in 1 : vector<256x4xbf16>, vector<256x4xbf16>, vector<256x4xbf16>, vector<256x4xbf16>, vector<256x4xbf16>, vector<256x4xbf16>, vector<256x4xbf16>, vector<256x4xbf16>, vector<256x4xbf16> -> vector<256x36xbf16>
      %c0_13 = arith.constant 0 : index
      %c0_14 = arith.constant 0 : index
      %42 = vector.load %arg7[%c0_13, %c0_14] : memref<256x36xbf16, #tpu.memory_space<vmem>>, vector<256x36xbf16>
      tpu.vector_store %arg7[%c0_13, %c0_14], %41 {strides = array<i32>} : memref<256x36xbf16, #tpu.memory_space<vmem>>, vector<256x36xbf16>,
    } else {
    }
    %c0 = arith.constant 0 : index
    %c0_1 = arith.constant 0 : index
    %3 = vector.load %arg7[%c0, %c0_1] : memref<256x36xbf16, #tpu.memory_space<vmem>>, vector<256x36xbf16>
    %c0_2 = arith.constant 0 : index
    %c0_3 = arith.constant 0 : index
    %4 = vector.load %arg4[%c0_2, %c0_3] : memref<36x128xbf16, #tpu.memory_space<vmem>>, vector<36x128xbf16>
    %cst = arith.constant dense<0.000000e+00> : vector<256x128xf32>
    %5 = tpu.matmul %3, %4, %cst {dimension_numbers = #tpu.dot_dimension_numbers<[1], [0], [0], [1], [0, 0, 1, 1], [], []>} : vector<256x36xbf16>, vector<36x128xbf16>, vector<256x128xf32> -> vector<256x128xf32>
    %c0_4 = arith.constant 0 : index
    %c0_5 = arith.constant 0 : index
    %6 = vector.load %arg5[%c0_4, %c0_5] : memref<1x128xf32, #tpu.memory_space<vmem>>, vector<1x128xf32>
    %7 = vector.broadcast %6 : vector<1x128xf32> to vector<256x128xf32>
    %8 = arith.addf %5, %7 : vector<256x128xf32>
    %cst_6 = arith.constant 0.000000e+00 : f32
    %9 = vector.broadcast %cst_6 : f32 to vector<256x128xf32>
    %10 = arith.maximumf %8, %9 : vector<256x128xf32>
    %11 = arith.truncf %10 : vector<256x128xf32> to vector<256x128xbf16>
    %c0_7 = arith.constant 0 : index
    %c0_8 = arith.constant 0 : index
    %c0_9 = arith.constant 0 : index
    %12 = vector.load %arg6[%c0_7, %c0_8, %c0_9] : memref<1x256x128xbf16, #tpu.memory_space<vmem>>, vector<1x256x128xbf16>
    %13 = vector.shape_cast %12 : vector<1x256x128xbf16> to vector<256x128xbf16>
    %14 = vector.shape_cast %11 : vector<256x128xbf16> to vector<1x256x128xbf16>
    tpu.vector_store %arg6[%c0_7, %c0_8, %c0_9], %14 {strides = array<i32>} : memref<1x256x128xbf16, #tpu.memory_space<vmem>>, vector<1x256x128xbf16>,
    return
  }
  func.func @transform_0(%arg0: i32, %arg1: i32, %arg2: i32) -> (i32, i32, i32, i32) {
    %c0_i32 = arith.constant 0 : i32
    %c0_i32_0 = arith.constant 0 : i32
    %c0_i32_1 = arith.constant 0 : i32
    %c0_i32_2 = arith.constant 0 : i32
    return %arg0, %c0_i32, %c0_i32_0, %c0_i32_1 : i32, i32, i32, i32
  }
  func.func @transform_1(%arg0: i32, %arg1: i32, %arg2: i32) -> (i32, i32) {
    %c0_i32 = arith.constant 0 : i32
    %c0_i32_0 = arith.constant 0 : i32
    return %c0_i32, %arg2 : i32, i32
  }
  func.func @transform_2(%arg0: i32, %arg1: i32, %arg2: i32) -> (i32, i32) {
    %c0_i32 = arith.constant 0 : i32
    %c0_i32_0 = arith.constant 0 : i32
    return %c0_i32, %arg2 : i32, i32
  }
  func.func @transform_3(%arg0: i32, %arg1: i32, %arg2: i32) -> (i32, i32, i32) {
    %c0_i32 = arith.constant 0 : i32
    return %arg0, %arg1, %arg2 : i32, i32, i32
  }
}

</mosaic_0001>

<bundles_post_ra>
// kernel: tpu_custom_call.1
= control target key start
LH: loop header
LB: loop body
LE: loop exit
PB: predicated region body
PF: predicated region fallthrough
CT: control target
= control target key end

     0   :  { %8 = vsyncpa [#allocation4], 0  ;;  %s4043_s0 = inlined_call_operand.vmem [shape: bf16[2,18,18,4], index: 0, kind: input, shape index: {}]   ;;  %s4044_s1 = inlined_call_operand.vmem [shape: bf16[36,128], index: 1, kind: input, shape index: {}]   ;;  %s4045_s2 = inlined_call_operand.vmem [shape: f32[1,128], index: 2, kind: input, shape index: {}]   ;;  %s4046_s3 = inlined_call_operand.hbm [shape: bf16[2,256,128], index: 3, kind: output, shape index: {}]  }
   0x1   :  { %10 = vsyncpa [#allocation4 + $0x1], 0  ;;  %s2757_s12 = smov 0   ;;  %s2759_s13 = smov 0  }
   0x2   :  { %s2761_s14 = smov 0   ;;  %s2763_s15 = smov 0  }
   0x3   :  { %s2765_s16 = smov 0   ;;  %s2767_s17 = smov 0  }
   0x4 LB: > { %s2250_s18 = sadd.s32 4294967295, %s2726_s17   ;;  %s2251_s19 = sadd.s32 4294967294, %s2726_s17   ;;  %s2726_s17 = sphi %s2767_s17, %s16_s17   ;;  %s2722_s16 = sphi %s2765_s16, %s4118_s16   ;;  %s2718_s15 = sphi %s2763_s15, %s4117_s15   ;;  %s2714_s14 = sphi %s2761_s14, %s4116_s14   ;;  %s2710_s13 = sphi %s2759_s13, %s4115_s13   ;;  %s2706_s12 = sphi %s2757_s12, %s4114_s12  }
   0x5   : > { %s35_s20 = sadd.s32 1, %s2722_s16  ;;  %s124_s21 = sadd.s32 1, %s2714_s14 }
   0x6   : > { %p37_p0 = scmp.ge.s32.totalorder %s35_s20, 2  ;;  %p134_p1 = scmp.ne.s32.totalorder %s2714_s14, %s2710_s13 }
   0x7   : > { %p135_p2 = scmp.eq.s32.totalorder %s2250_s18, 1  ;;  %p140_p3 = scmp.ne.s32.totalorder %s2710_s13, %s2706_s12 }
   0x8   : > { %s4120_s20 = smov (%p37_p0, %s35_s20), 0  ;;  %p141_p5 = scmp.eq.s32.totalorder %s2251_s19, 1 }
   0x9   : > { %p2797_p4 = por %p135_p2, %p134_p1  ;;  %s117_s23 = ssub.s32 %s2722_s16, %s4120_s20 }
   0xa   : > { %p2255_p6 = scmp.ge.s32.totalorder %s2726_s17, 1  ;;  %p122_p7 = scmp.eq.s32.totalorder %s117_s23, 0 }
   0xb   : > { %p2804_p8 = por %p141_p5, %p140_p3  ;;  %p180_p9 = scmp.lt.s32.totalorder %s2726_s17, 3 }
   0xc   : > { %s2810_s25 = scalar_select %p122_p7, %s2714_s14, %s124_s21  }
   0xd   : > { %p181_p10 = pnand %p2255_p6, %p180_p9 }
   0xf   : > { %184 = sbr.rel (%p181_p10) target bundleno = 686 (0x2ae), region = 32 }
  0x14   : > { %p211_p11 = scmp.lt.s32.totalorder %s2718_s15, 1  ;;  %vm287_vm0 = vsmask.f32 3328  ;;  %vm288_vm1 = vsmask.f32 7440  ;;  %s2728_s4 = smov 4  }
  0x15   : > { %vm2855_vm2 = vmor %vm287_vm0, %vm288_vm1  ;;  %vm722_vm3 = vcmask 1042432   ;;  %vm723_vm4 = vcmask 1046532   ;;  %s2729_s5 = smov 8   ;;  %s2730_s6 = smov 12   ;;  %vm1323_vm6 = vcmask 31744   ;;  %vm1372_vm7 = vcmask 64512  }
  0x16   : > { %s212_s26 = scalar_select %p211_p11, %s2718_s15, 1  ;;  %vm3142_vm5 = vmor %vm722_vm3, %vm723_vm4  ;;  %vm1405_vm8 = vcmask 97280   ;;  %vm1933_vm9 = vcmask 1041408   ;;  %vm1438_vm10 = vcmask 130048   ;;  %vm1471_vm11 = vcmask 162816  }
  0x17   : > { %s2731_s7 = smov 20   ;;  %s2732_s8 = smov 16   ;;  %vm1504_vm12 = vcmask 195584   ;;  %vm1537_vm13 = vcmask 228352   ;;  %vm1570_vm14 = vcmask 261120   ;;  %vm1715_vm15 = vcmask 289792  }
  0x18   : > { %s2582_s27 = smul.u32 216, %s212_s26  ;;  %s2733_s9 = smov 24   ;;  %vm1884_vm0 = vcmask 293888  }
  0x19   : > { %s2734_s10 = smov 32   ;;  %s2735_s11 = smov 28  }
  0x1a   : > { %s2817_s30 = scalar_lea.vmem %s4043_s0, %s2582_s27  ;;  %s2668_s27 = scalar_lea.hbm %s4046_s3, 256 }
  0x1b   : > { %v2820_v0 = vld [vmem:[%s2817_s30 + $0x30] sm:$0xf]  ;;  %v2823_v1 = vld [vmem:[%s2817_s30 + $0x34] sm:$0xf]  ;;  %v2826_v2 = vld [vmem:[%s2817_s30 + $0x38] sm:$0x1] }
  0x1c   : > { %v387_v3 = vshrl.u32 %v2820_v0, 16  ;;  %v390_v4 = vshll.u32 %v2820_v0, 16  ;;  %v396_v5 = vshll.u32 %v2823_v1, 16  ;;  %v400_v6 = vshrl.u32 %v2823_v1, 16  ;;  %v2833_v7 = vld [vmem:[%s2817_s30 + $0x18] sm:$0xf] }
  0x1d   : > { %v406_v8 = vshll.u32 %v2826_v2, 16  ;;  %v2837_v9 = vld [vmem:[%s2817_s30 + $0x1c] sm:$0xf]  ;;  %v2840_v10 = vld [vmem:[%s2817_s30 + $0x20] sm:$0x1]  ;;  %v339_v11 = vshrl.u32 %v2833_v7, 16 }
  0x1e   : > { %v389_v12 = vrot.slane %v387_v3, 4  ;;  %v392_v13 = vrot.slane %v390_v4, 5  ;;  %v398_v14 = vrot.slane %v396_v5, 5  ;;  %v402_v15 = vrot.slane %v400_v6, 4  ;;  %v2844_v16 = vld [vmem:[%s2817_s30] sm:$0xf] }
  0x1f   : > { %v408_v17 = vrot.slane %v406_v8, 5  ;;  %v341_v18 = vrot.slane %v339_v11, 4  ;;  %v342_v19 = vshll.u32 %v2833_v7, 16  ;;  %v348_v20 = vshll.u32 %v2837_v9, 16  ;;  %v2851_v25 = vld [vmem:[%s2817_s30 + $0x4] sm:$0xf] }
  0x20   : > { %v393_v21 = vor.u32 %v392_v13, %v389_v12  ;;  %v403_v22 = vor.u32 %v402_v15, %v398_v14  ;;  %v352_v23 = vshrl.u32 %v2837_v9, 16  ;;  %v358_v24 = vshll.u32 %v2840_v10, 16  ;;  %v2862_v36 = vld [vmem:[%s2817_s30 + $0x8] sm:$0x1]  ;;  %v2871_v44 = vld [vmem:[%s2817_s30 + $0x3c] sm:$0xf] }
  0x21   : > { %v344_v27 = vrot.slane %v342_v19, 5  ;;  %v350_v28 = vrot.slane %v348_v20, 5  ;;  %v291_v29 = vshrl.u32 %v2844_v16, 16  ;;  %v294_v30 = vshll.u32 %v2844_v16, 16  ;;  %v2879_v56 = vld [vmem:[%s2817_s30 + $0x40] sm:$0xf] }
  0x22   : > { %v394_v31 = vrot.slane %v393_v21, 4  ;;  %v404_v32 = vrot.slane %v403_v22, 4  ;;  %v354_v33 = vrot.slane %v352_v23, 4  ;;  %v360_v34 = vrot.slane %v358_v24, 5  ;;  %v2885_v62 = vld [vmem:[%s2817_s30 + $0x44] sm:$0x1] }
  0x23   : > { %v345_v35 = vor.u32 %v344_v27, %v341_v18  ;;  %v293_v37 = vrot.slane %v291_v29, 4  ;;  %v296_v38 = vrot.slane %v294_v30, 5  ;;  %v300_v39 = vshll.u32 %v2851_v25, 16  ;;  %v2888_v63 = vld [vmem:[%s2817_s30 + $0x24] sm:$0xf] }
  0x24   : > { %v399_v40 = vsel %vm2855_vm2, %v394_v31, %v398_v14  ;;  %v409_v41 = vsel %vm2855_vm2, %v404_v32, %v408_v17  ;;  %v355_v42 = vor.u32 %v354_v33, %v350_v28  ;;  %v304_v43 = vshrl.u32 %v2851_v25, 16  ;;  %v2898_v14 = vld [vmem:[%s2817_s30 + $0x28] sm:$0xf]  ;;  %v2904_v19 = vld [vmem:[%s2817_s30 + $0x2c] sm:$0x1] }
  0x25   : > { %v961_v45 = vunpack.c.l.b16 %v399_v40  ;;  %v962_v46 = vunpack.c.l.b16 %v409_v41  ;;  %v346_v47 = vrot.slane %v345_v35, 4  ;;  %v297_v48 = vor.u32 %v296_v38, %v293_v37  ;;  %v2911_v27 = vld [vmem:[%s2817_s30 + $0xc] sm:$0xf]  ;;  %v2919_v40 = vld [vmem:[%s2817_s30 + $0x10] sm:$0xf] }
  0x26   : > { %v356_v49 = vrot.slane %v355_v42, 4  ;;  %v302_v50 = vrot.slane %v300_v39, 5  ;;  %v306_v51 = vrot.slane %v304_v43, 4  ;;  %v310_v52 = vshll.u32 %v2862_v36, 16 }
  0x27   : > { %v2874_v53 = vpack.c.b16 %v962_v46, %v961_v45  ;;  %v351_v54 = vsel %vm2855_vm2, %v346_v47, %v350_v28  ;;  %v298_v55 = vrot.slane %v297_v48, 4  ;;  %v411_v57 = vshrl.u32 %v2871_v44, 16  ;;  %v2923_v47 = vld [vmem:[%s2817_s30 + $0x14] sm:$0x1] }
  0x28   : > { %v361_v58 = vsel %vm2855_vm2, %v356_v49, %v360_v34  ;;  %v957_v59 = vunpack.c.l.b16 %v351_v54  ;;  %v307_v60 = vor.u32 %v306_v51, %v302_v50  ;;  %v312_v61 = vrot.slane %v310_v52, 5  ;;  %v2930_v52 = vld [vmem:[%s2817_s30 + $0x60] sm:$0xf] }
  0x29   : > { %4076 = vst [vmem:[#allocation6_spill] sm:$0xff] %v2874_v53  ;;  %1009 = vrot.lane.b32.xlu2 %v2874_v53, %s2728_s4  ;;  %v958_v3 = vunpack.c.l.b16 %v361_v58  ;;  %v303_v4 = vsel %vm2855_vm2, %v298_v55, %v302_v50  ;;  %v413_v5 = vrot.slane %v411_v57, 4  ;;  %v414_v6 = vshll.u32 %v2871_v44, 16 }
  0x2a   : > { %v308_v8 = vrot.slane %v307_v60, 4  ;;  %v953_v11 = vunpack.c.l.b16 %v303_v4  ;;  %v420_v12 = vshll.u32 %v2879_v56, 16  ;;  %v424_v13 = vshrl.u32 %v2879_v56, 16 }
  0x2b   : > { %v2900_v15 = vpack.c.b16 %v958_v3, %v957_v59  ;;  %v416_v17 = vrot.slane %v414_v6, 5  ;;  %v430_v18 = vshll.u32 %v2885_v62, 16  ;;  %v363_v20 = vshrl.u32 %v2888_v63, 16 }
  0x2c   : > { %v313_v21 = vsel %vm2855_vm2, %v308_v8, %v312_v61  ;;  %v422_v22 = vrot.slane %v420_v12, 5  ;;  %v426_v23 = vrot.slane %v424_v13, 4  ;;  %v366_v24 = vshll.u32 %v2888_v63, 16  ;;  %v2940_v8 = vld [vmem:[%s2817_s30 + $0x64] sm:$0xf] }
  0x2d   : > { %4077 = vst [vmem:[#allocation7_spill] sm:$0xff] %v2900_v15  ;;  %1005 = vrot.lane.b32.xlu1 %v2900_v15, %s2728_s4  ;;  %v954_v28 = vunpack.c.l.b16 %v313_v21  ;;  %v417_v29 = vor.u32 %v416_v17, %v413_v5  ;;  %v432_v30 = vrot.slane %v430_v18, 5  ;;  %v365_v31 = vrot.slane %v363_v20, 4  ;;  %v2946_v20 = vld [vmem:[%s2817_s30 + $0x68] sm:$0x1] }
  0x2e   : > { %v427_v32 = vor.u32 %v426_v23, %v422_v22  ;;  %v368_v33 = vrot.slane %v366_v24, 5  ;;  %v372_v34 = vshll.u32 %v2898_v14, 16  ;;  %v376_v35 = vshrl.u32 %v2898_v14, 16  ;;  %v2949_v21 = vld [vmem:[%s2817_s30 + $0x54] sm:$0xf] }
  0x2f   : > { %v985_v37 = vpack.c.b16 %v954_v28, %v953_v11  ;;  %v418_v38 = vrot.slane %v417_v29, 4  ;;  %v382_v39 = vshll.u32 %v2904_v19, 16  ;;  %v315_v41 = vshrl.u32 %v2911_v27, 16  ;;  %v3083_v15 = vld [vmem:[%s2817_s30 + $0x9c] sm:$0xf] }
  0x30   : > { %v428_v42 = vrot.slane %v427_v32, 4  ;;  %v369_v43 = vor.u32 %v368_v33, %v365_v31  ;;  %v374_v45 = vrot.slane %v372_v34, 5  ;;  %v378_v46 = vrot.slane %v376_v35, 4 }
  0x31   : > { %1001 = vrot.lane.b32.xlu0 %v985_v37, %s2728_s4  ;;  %v423_v48 = vsel %vm2855_vm2, %v418_v38, %v422_v22  ;;  %v384_v49 = vrot.slane %v382_v39, 5  ;;  %v317_v50 = vrot.slane %v315_v41, 4  ;;  %v318_v51 = vshll.u32 %v2911_v27, 16  ;;  %v2960_v37 = vld [vmem:[%s2817_s30 + $0x58] sm:$0xf] }
  0x32   : > { %v433_v54 = vsel %vm2855_vm2, %v428_v42, %v432_v30  ;;  %v963_v55 = vunpack.c.l.b16 %v423_v48  ;;  %v370_v57 = vrot.slane %v369_v43, 4  ;;  %v379_v58 = vor.u32 %v378_v46, %v374_v45 }
  0x33   : > { %v964_v59 = vunpack.c.l.b16 %v433_v54  ;;  %v320_v60 = vrot.slane %v318_v51, 5  ;;  %v324_v61 = vshll.u32 %v2919_v40, 16  ;;  %v328_v3 = vshrl.u32 %v2919_v40, 16 }
  0x34   : > { %v375_v4 = vsel %vm2855_vm2, %v370_v57, %v374_v45  ;;  %v380_v5 = vrot.slane %v379_v58, 4  ;;  %v334_v6 = vshll.u32 %v2923_v47, 16  ;;  %v483_v11 = vshrl.u32 %v2930_v52, 16  ;;  %v2968_v45 = vld [vmem:[%s2817_s30 + $0x5c] sm:$0x1] }
  0x35   : > { %v2943_v12 = vpack.c.b16 %v964_v59, %v963_v55  ;;  %v959_v13 = vunpack.c.l.b16 %v375_v4  ;;  %v321_v17 = vor.u32 %v320_v60, %v317_v50  ;;  %v326_v18 = vrot.slane %v324_v61, 5  ;;  %v2975_v58 = vld [vmem:[%s2817_s30 + $0x48] sm:$0xf] }
  0x36   : > { %v385_v22 = vsel %vm2855_vm2, %v380_v5, %v384_v49  ;;  %v330_v23 = vrot.slane %v328_v3, 4  ;;  %v336_v24 = vrot.slane %v334_v6, 5  ;;  %v485_v28 = vrot.slane %v483_v11, 4 }
  0x37   : > { %4078 = vst [vmem:[#allocation8_spill] sm:$0xff] %v2943_v12  ;;  %1011 = vrot.lane.b32.xlu2 %v2943_v12, %s2728_s4  ;;  %v960_v29 = vunpack.c.l.b16 %v385_v22  ;;  %v322_v30 = vrot.slane %v321_v17, 4  ;;  %v486_v31 = vshll.u32 %v2930_v52, 16  ;;  %v492_v32 = vshll.u32 %v2940_v8, 16  ;;  %v2982_v22 = vld [vmem:[%s2817_s30 + $0x4c] sm:$0xf] }
  0x38   : > { %v331_v33 = vor.u32 %v330_v23, %v326_v18  ;;  %v496_v34 = vshrl.u32 %v2940_v8, 16  ;;  %v502_v35 = vshll.u32 %v2946_v20, 16  ;;  %v459_v38 = vshrl.u32 %v2949_v21, 16  ;;  %v3102_v12 = vld [vmem:[%s2817_s30 + $0xa4] sm:$0x1] }
  0x39   : > { %v2963_v39 = vpack.c.b16 %v960_v29, %v959_v13  ;;  %v327_v41 = vsel %vm2855_vm2, %v322_v30, %v326_v18  ;;  %v488_v42 = vrot.slane %v486_v31, 5  ;;  %v494_v43 = vrot.slane %v492_v32, 5  ;;  %v2990_v30 = vld [vmem:[%s2817_s30 + $0x50] sm:$0x1]  ;;  %v2994_v32 = vld [vmem:[%s2817_s30 + $0x84] sm:$0xf] }
  0x3a   : > { %v332_v46 = vrot.slane %v331_v33, 4  ;;  %v955_v48 = vunpack.c.l.b16 %v327_v41  ;;  %v498_v49 = vrot.slane %v496_v34, 4  ;;  %v504_v50 = vrot.slane %v502_v35, 5 }
  0x3b   : > { %4079 = vst [vmem:[#allocation9_spill] sm:$0xff] %v2963_v39  ;;  %1007 = vrot.lane.b32.xlu1 %v2963_v39, %s2728_s4  ;;  %v489_v51 = vor.u32 %v488_v42, %v485_v28  ;;  %v461_v54 = vrot.slane %v459_v38, 4  ;;  %v462_v55 = vshll.u32 %v2949_v21, 16  ;;  %v468_v57 = vshll.u32 %v2960_v37, 16 }
  0x3c   : > { %v337_v59 = vsel %vm2855_vm2, %v332_v46, %v336_v24  ;;  %v499_v60 = vor.u32 %v498_v49, %v494_v43  ;;  %v472_v61 = vshrl.u32 %v2960_v37, 16  ;;  %v478_v3 = vshll.u32 %v2968_v45, 16 }
  0x3d   : > { %v956_v4 = vunpack.c.l.b16 %v337_v59  ;;  %v490_v5 = vrot.slane %v489_v51, 4  ;;  %v464_v6 = vrot.slane %v462_v55, 5  ;;  %v470_v11 = vrot.slane %v468_v57, 5 }
  0x3e   : > { %v500_v13 = vrot.slane %v499_v60, 4  ;;  %v474_v17 = vrot.slane %v472_v61, 4  ;;  %v480_v18 = vrot.slane %v478_v3, 5  ;;  %v435_v23 = vshrl.u32 %v2975_v58, 16  ;;  %v3009_v60 = vld [vmem:[%s2817_s30 + $0x88] sm:$0xf] }
  0x3f   : > { %v2985_v28 = vpack.c.b16 %v956_v4, %v955_v48  ;;  %v495_v24 = vsel %vm2855_vm2, %v490_v5, %v494_v43  ;;  %v465_v29 = vor.u32 %v464_v6, %v461_v54  ;;  %v438_v31 = vshll.u32 %v2975_v58, 16  ;;  %v3012_v61 = vld [vmem:[%s2817_s30 + $0x8c] sm:$0x1] }
  0x40   : > { %v505_v33 = vsel %vm2855_vm2, %v500_v13, %v504_v50  ;;  %v969_v34 = vunpack.c.l.b16 %v495_v24  ;;  %v475_v35 = vor.u32 %v474_v17, %v470_v11  ;;  %v437_v38 = vrot.slane %v435_v23, 4  ;;  %4082 = vst [vmem:[#allocation12_spill] sm:$0xff] %v3012_v61  ;;  %v3017_v13 = vld [vmem:[%s2817_s30 + $0x78] sm:$0xf] }
  0x41   : > { %4080 = vst [vmem:[#allocation10_spill] sm:$0xff] %v2985_v28  ;;  %1003 = vrot.lane.b32.xlu0 %v2985_v28, %s2728_s4  ;;  %v970_v41 = vunpack.c.l.b16 %v505_v33  ;;  %v466_v42 = vrot.slane %v465_v29, 4  ;;  %v440_v43 = vrot.slane %v438_v31, 5  ;;  %v444_v46 = vshll.u32 %v2982_v22, 16 }
  0x42   : > { %v476_v48 = vrot.slane %v475_v35, 4  ;;  %v448_v49 = vshrl.u32 %v2982_v22, 16  ;;  %v454_v51 = vshll.u32 %v2990_v30, 16  ;;  %v555_v50 = vshrl.u32 %v2994_v32, 16 }
  0x43   : > { %v3004_v54 = vpack.c.b16 %v970_v41, %v969_v34  ;;  %v471_v55 = vsel %vm2855_vm2, %v466_v42, %v470_v11  ;;  %v441_v57 = vor.u32 %v440_v43, %v437_v38  ;;  %v446_v59 = vrot.slane %v444_v46, 5  ;;  %v3030_v41 = vld [vmem:[%s2817_s30 + $0x7c] sm:$0xf] }
  0x44   : > { %v481_v3 = vsel %vm2855_vm2, %v476_v48, %v480_v18  ;;  %v967_v4 = vunpack.c.l.b16 %v471_v55  ;;  %v450_v5 = vrot.slane %v448_v49, 4  ;;  %v456_v6 = vrot.slane %v454_v51, 5  ;;  %v3034_v51 = vld [vmem:[%s2817_s30 + $0x80] sm:$0x1] }
  0x45   : > { %4081 = vst [vmem:[#allocation11_spill] sm:$0xff] %v3004_v54  ;;  %1017 = vrot.lane.b32.xlu2 %v3004_v54, %s2728_s4  ;;  %v968_v17 = vunpack.c.l.b16 %v481_v3  ;;  %v442_v11 = vrot.slane %v441_v57, 4  ;;  %v557_v23 = vrot.slane %v555_v50, 4  ;;  %v558_v24 = vshll.u32 %v2994_v32, 16  ;;  %v3040_v3 = vld [vmem:[%s2817_s30 + $0x6c] sm:$0xf] }
  0x46   : > { %v451_v29 = vor.u32 %v450_v5, %v446_v59  ;;  %v564_v31 = vshll.u32 %v3009_v60, 16  ;;  %v568_v18 = vshrl.u32 %v3009_v60, 16  ;;  %v574_v33 = vshll.u32 %v3012_v61, 16  ;;  %v3056_v54 = vld [vmem:[%s2817_s30 + $0x74] sm:$0x1] }
  0x47   : > { %v3025_v34 = vpack.c.b16 %v968_v17, %v967_v4  ;;  %v447_v35 = vsel %vm2855_vm2, %v442_v11, %v446_v59  ;;  %v560_v38 = vrot.slane %v558_v24, 5  ;;  %v531_v42 = vshrl.u32 %v3017_v13, 16 }
  0x48   : > { %v452_v43 = vrot.slane %v451_v29, 4  ;;  %v965_v46 = vunpack.c.l.b16 %v447_v35  ;;  %v566_v48 = vrot.slane %v564_v31, 5  ;;  %v570_v49 = vrot.slane %v568_v18, 4 }
  0x49   : > { %4083 = vst [vmem:[#allocation13_spill] sm:$0xff] %v3025_v34  ;;  %1015 = vrot.lane.b32.xlu1 %v3025_v34, %s2728_s4  ;;  %v561_v50 = vor.u32 %v560_v38, %v557_v23  ;;  %v576_v55 = vrot.slane %v574_v33, 5  ;;  %v533_v57 = vrot.slane %v531_v42, 4  ;;  %v534_v59 = vshll.u32 %v3017_v13, 16  ;;  %v3048_v38 = vld [vmem:[%s2817_s30 + $0x70] sm:$0xf] }
  0x4a   : > { %v457_v4 = vsel %vm2855_vm2, %v452_v43, %v456_v6  ;;  %v571_v5 = vor.u32 %v570_v49, %v566_v48  ;;  %v540_v17 = vshll.u32 %v3030_v41, 16  ;;  %v544_v11 = vshrl.u32 %v3030_v41, 16 }
  0x4b   : > { %v966_v24 = vunpack.c.l.b16 %v457_v4  ;;  %v562_v29 = vrot.slane %v561_v50, 4  ;;  %v536_v23 = vrot.slane %v534_v59, 5  ;;  %v550_v31 = vshll.u32 %v3034_v51, 16  ;;  %v3059_v50 = vld [vmem:[%s2817_s30 + $0xa8] sm:$0xf] }
  0x4c   : > { %v572_v18 = vrot.slane %v571_v5, 4  ;;  %v542_v33 = vrot.slane %v540_v17, 5  ;;  %v546_v35 = vrot.slane %v544_v11, 4  ;;  %v507_v42 = vshrl.u32 %v3040_v3, 16  ;;  %4085 = vst [vmem:[#allocation15_spill] sm:$0xff] %v3059_v50 }
  0x4d   : > { %v3051_v6 = vpack.c.b16 %v966_v24, %v965_v46  ;;  %v567_v43 = vsel %vm2855_vm2, %v562_v29, %v566_v48  ;;  %v537_v49 = vor.u32 %v536_v23, %v533_v57  ;;  %v552_v53 = vrot.slane %v550_v31, 5 }
  0x4e   : > { %v577_v59 = vsel %vm2855_vm2, %v572_v18, %v576_v55  ;;  %v975_v4 = vunpack.c.l.b16 %v567_v43  ;;  %v547_v5 = vor.u32 %v546_v35, %v542_v33  ;;  %v509_v17 = vrot.slane %v507_v42, 4  ;;  %v3075_v43 = vld [vmem:[%s2817_s30 + $0xac] sm:$0xf] }
  0x4f   : > { %4084 = vst [vmem:[#allocation14_spill] sm:$0xff] %v3051_v6  ;;  %1013 = vrot.lane.b32.xlu0 %v3051_v6, %s2728_s4  ;;  %v976_v46 = vunpack.c.l.b16 %v577_v59  ;;  %v538_v11 = vrot.slane %v537_v49, 4  ;;  %v510_v48 = vshll.u32 %v3040_v3, 16  ;;  %v516_v57 = vshll.u32 %v3048_v38, 16  ;;  %v3078_v49 = vld [vmem:[%s2817_s30 + $0xb0] sm:$0x1] }
  0x50   : > { %v548_v24 = vrot.slane %v547_v5, 4  ;;  %v520_v29 = vshrl.u32 %v3048_v38, 16  ;;  %v526_v55 = vshll.u32 %v3056_v54, 16  ;;  %v627_v23 = vshrl.u32 %v3059_v50, 16  ;;  %4087 = vst [vmem:[#allocation17_spill] sm:$0xff] %v3075_v43 }
  0x51   : > { %v3070_v31 = vpack.c.b16 %v976_v46, %v975_v4  ;;  %v543_v18 = vsel %vm2855_vm2, %v538_v11, %v542_v33  ;;  %v512_v35 = vrot.slane %v510_v48, 5  ;;  %v518_v42 = vrot.slane %v516_v57, 5  ;;  %4088 = vst [vmem:[#allocation18_spill] sm:$0xff] %v3078_v49  ;;  %v3094_v6 = vld [vmem:[%s2817_s30 + $0xa0] sm:$0xf] }
  0x52   : > { %v553_v59 = vsel %vm2855_vm2, %v548_v24, %v552_v53  ;;  %v973_v5 = vunpack.c.l.b16 %v543_v18  ;;  %v522_v39 = vrot.slane %v520_v29, 4  ;;  %v528_v34 = vrot.slane %v526_v55, 5 }
  0x53   : > { %4086 = vst [vmem:[#allocation16_spill] sm:$0xff] %v3070_v31  ;;  %1023 = vrot.lane.b32.xlu2 %v3070_v31, %s2728_s4  ;;  %v974_v4 = vunpack.c.l.b16 %v553_v59  ;;  %v513_v33 = vor.u32 %v512_v35, %v509_v17  ;;  %v629_v46 = vrot.slane %v627_v23, 4  ;;  %v630_v11 = vshll.u32 %v3059_v50, 16 }
  0x54   : > { %v523_v48 = vor.u32 %v522_v39, %v518_v42  ;;  %v636_v57 = vshll.u32 %v3075_v43, 16  ;;  %v640_v53 = vshrl.u32 %v3075_v43, 16  ;;  %v646_v24 = vshll.u32 %v3078_v49, 16 }
  0x55   : > { %v3091_v29 = vpack.c.b16 %v974_v4, %v973_v5  ;;  %v514_v55 = vrot.slane %v513_v33, 4  ;;  %v632_v18 = vrot.slane %v630_v11, 5  ;;  %v603_v17 = vshrl.u32 %v3083_v15, 16  ;;  %v3106_v33 = vld [vmem:[%s2817_s30 + $0x90] sm:$0xf] }
  0x56   : > { %v524_v23 = vrot.slane %v523_v48, 4  ;;  %v638_v35 = vrot.slane %v636_v57, 5  ;;  %v642_v59 = vrot.slane %v640_v53, 4  ;;  %v648_v39 = vrot.slane %v646_v24, 5 }
  0x57   : > { %4089 = vst [vmem:[#allocation19_spill] sm:$0xff] %v3091_v29  ;;  %1021 = vrot.lane.b32.xlu1 %v3091_v29, %s2728_s4  ;;  %v519_v31 = vsel %vm2855_vm2, %v514_v55, %v518_v42  ;;  %v633_v28 = vor.u32 %v632_v18, %v629_v46  ;;  %v605_v5 = vrot.slane %v603_v17, 4  ;;  %v606_v4 = vshll.u32 %v3083_v15, 16 }
  0x58   : > { %v529_v11 = vsel %vm2855_vm2, %v524_v23, %v528_v34  ;;  %v971_v48 = vunpack.c.l.b16 %v519_v31  ;;  %v643_v57 = vor.u32 %v642_v59, %v638_v35  ;;  %v612_v53 = vshll.u32 %v3094_v6, 16  ;;  %v3119_v59 = vld [vmem:[%s2817_s30 + $0x94] sm:$0xf] }
  0x59   : > { %v972_v24 = vunpack.c.l.b16 %v529_v11  ;;  %v634_v29 = vrot.slane %v633_v28, 4  ;;  %v608_v42 = vrot.slane %v606_v4, 5  ;;  %v616_v46 = vshrl.u32 %v3094_v6, 16  ;;  %v3122_v11 = vld [vmem:[%s2817_s30 + $0x98] sm:$0x1] }
  0x5a   : > { %v644_v55 = vrot.slane %v643_v57, 4  ;;  %v614_v18 = vrot.slane %v612_v53, 5  ;;  %v622_v17 = vshll.u32 %v3102_v12, 16  ;;  %v579_v49 = vshrl.u32 %v3106_v33, 16 }
  0x5b   : > { %v3114_v43 = vpack.c.b16 %v972_v24, %v971_v48  ;;  %v639_v34 = vsel %vm2855_vm2, %v634_v29, %v638_v35  ;;  %v609_v31 = vor.u32 %v608_v42, %v605_v5  ;;  %v618_v23 = vrot.slane %v616_v46, 4 }
  0x5c   : > { %v649_v28 = vsel %vm2855_vm2, %v644_v55, %v648_v39  ;;  %v981_v4 = vunpack.c.l.b16 %v639_v34  ;;  %v624_v57 = vrot.slane %v622_v17, 5  ;;  %v581_v53 = vrot.slane %v579_v49, 4 }
  0x5d   : > { %4090 = vst [vmem:[#allocation20_spill] sm:$0xff] %v3114_v43  ;;  %1019 = vrot.lane.b32.xlu0 %v3114_v43, %s2728_s4  ;;  %v982_v48 = vunpack.c.l.b16 %v649_v28  ;;  %v610_v24 = vrot.slane %v609_v31, 4  ;;  %v619_v50 = vor.u32 %v618_v23, %v614_v18  ;;  %v582_v29 = vshll.u32 %v3106_v33, 16 }
  0x5e   : > { %v588_v35 = vshll.u32 %v3119_v59, 16  ;;  %v592_v5 = vshrl.u32 %v3119_v59, 16  ;;  %v598_v42 = vshll.u32 %v3122_v11, 16 }
  0x5f   : > { %v3132_v46 = vpack.c.b16 %v982_v48, %v981_v4  ;;  %v615_v49 = vsel %vm2855_vm2, %v610_v24, %v614_v18  ;;  %v620_v39 = vrot.slane %v619_v50, 4  ;;  %v584_v55 = vrot.slane %v582_v29, 5 }
  0x60   : > { %v979_v17 = vunpack.c.l.b16 %v615_v49  ;;  %v590_v34 = vrot.slane %v588_v35, 5  ;;  %v594_v31 = vrot.slane %v592_v5, 4  ;;  %v600_v23 = vrot.slane %v598_v42, 5 }
  0x61   : > { %1029 = vrot.lane.b32.xlu2 %v3132_v46, %s2728_s4  ;;  %v625_v28 = vsel %vm2855_vm2, %v620_v39, %v624_v57  ;;  %v585_v43 = vor.u32 %v584_v55, %v581_v53  ;;  %v2259_v4 = vrot.slane %v2911_v27, 9  ;;  %v734_v18 = vrot.slane %v2919_v40, 5  ;;  %v3156_v39 = vld [vmem:[%s2817_s30 + $0xb4] sm:$0xf] }
  0x62   : > { %v980_v48 = vunpack.c.l.b16 %v625_v28  ;;  %v595_v61 = vor.u32 %v594_v31, %v590_v34  ;;  %v737_v24 = vrot.slane %v2923_v47, 5  ;;  %v2258_v57 = vrot.slane %v2844_v16, 9  ;;  %v3172_v31 = vld [vmem:[%s2817_s30 + $0xbc] sm:$0x1] }
  0x63   : > { %v586_v29 = vrot.slane %v585_v43, 4  ;;  %v727_v53 = vrot.slane %v2851_v25, 5  ;;  %v730_v35 = vrot.slane %v2862_v36, 5  ;;  %v735_v42 = vsel %vm3142_vm5, %v2259_v4, %v734_v18  ;;  %v3163_v43 = vld [vmem:[%s2817_s30 + $0xb8] sm:$0xf] }
  0x64   : > { %v3151_v27 = vpack.c.b16 %v980_v48, %v979_v17  ;;  %v596_v5 = vrot.slane %v595_v61, 4  ;;  %v736_v49 = vrot.slane %v734_v18, 4  ;;  %v1035_v47 = vunpack.c.l.b16 %v735_v42 }
  0x65   : > { %v591_v40 = vsel %vm2855_vm2, %v586_v29, %v590_v34  ;;  %v728_v16 = vsel %vm3142_vm5, %v2258_v57, %v727_v53  ;;  %v729_v25 = vrot.slane %v727_v53, 4  ;;  %v651_v48 = vshrl.u32 %v3156_v39, 16 }
  0x66   : > { %1027 = vrot.lane.b32.xlu1 %v3151_v27, %s2728_s4  ;;  %v601_v36 = vsel %vm2855_vm2, %v596_v5, %v600_v23  ;;  %v977_v61 = vunpack.c.l.b16 %v591_v40  ;;  %v738_v55 = vsel %vm3142_vm5, %v736_v49, %v737_v24  ;;  %v1033_v17 = vunpack.c.l.b16 %v728_v16 }
  0x67   : > { %v978_v34 = vunpack.c.l.b16 %v601_v36  ;;  %v1036_v28 = vunpack.c.l.b16 %v738_v55  ;;  %v731_v4 = vsel %vm3142_vm5, %v729_v25, %v730_v35  ;;  %v654_v29 = vshll.u32 %v3156_v39, 16 }
  0x68   : > { %v1034_v18 = vunpack.c.l.b16 %v731_v4  ;;  %v660_v57 = vshll.u32 %v3163_v43, 16  ;;  %v664_v23 = vshrl.u32 %v3163_v43, 16  ;;  %v653_v5 = vrot.slane %v651_v48, 4 }
  0x69   : > { %v3180_v53 = vpack.c.b16 %v978_v34, %v977_v61  ;;  %v3182_v24 = vpack.c.b16 %v1036_v28, %v1035_v47  ;;  %v670_v42 = vshll.u32 %v3172_v31, 16  ;;  %v656_v40 = vrot.slane %v654_v29, 5 }
  0x6a   : > { %v1065_v49 = vpack.c.b16 %v1034_v18, %v1033_v17  ;;  %v662_v16 = vrot.slane %v660_v57, 5  ;;  %v666_v35 = vrot.slane %v664_v23, 4  ;;  %v2262_v36 = vrot.slane %v2820_v0, 9 }
  0x6b   : > { %1025 = vrot.lane.b32.xlu0 %v3180_v53, %s2728_s4  ;;  %1083 = vrot.lane.b32.xlu2 %v3182_v24, %s2729_s5  ;;  %v672_v25 = vrot.slane %v670_v42, 5  ;;  %v755_v47 = vrot.slane %v2823_v1, 5  ;;  %v758_v61 = vrot.slane %v2826_v2, 5  ;;  %v657_v55 = vor.u32 %v656_v40, %v653_v5 }
  0x6c   : > { %v667_v34 = vor.u32 %v666_v35, %v662_v16  ;;  %v2261_v17 = vrot.slane %v2888_v63, 9  ;;  %v748_v28 = vrot.slane %v2898_v14, 5  ;;  %v751_v18 = vrot.slane %v2904_v19, 5 }
  0x6d   : > { %v756_v4 = vsel %vm3142_vm5, %v2262_v36, %v755_v47  ;;  %v757_v48 = vrot.slane %v755_v47, 4  ;;  %v2260_v29 = vrot.slane %v2833_v7, 9  ;;  %v658_v0 = vrot.slane %v657_v55, 4 }
  0x6e   : > { %1081 = vrot.lane.b32.xlu1 %v1065_v49, %s2729_s5  ;;  %v668_v1 = vrot.slane %v667_v34, 4  ;;  %v1041_v57 = vunpack.c.l.b16 %v756_v4  ;;  %v749_v2 = vsel %vm3142_vm5, %v2261_v17, %v748_v28  ;;  %v750_v14 = vrot.slane %v748_v28, 4 }
  0x6f   : > { %v759_v63 = vsel %vm3142_vm5, %v757_v48, %v758_v61  ;;  %v1039_v23 = vunpack.c.l.b16 %v749_v2  ;;  %v741_v5 = vrot.slane %v2837_v9, 5  ;;  %v663_v19 = vsel %vm2855_vm2, %v658_v0, %v662_v16 }
  0x70   : > { %v673_v7 = vsel %vm2855_vm2, %v668_v1, %v672_v25  ;;  %v1042_v42 = vunpack.c.l.b16 %v759_v63  ;;  %v744_v49 = vrot.slane %v2840_v10, 5  ;;  %v983_v40 = vunpack.c.l.b16 %v663_v19 }
  0x71   : > { %v984_v35 = vunpack.c.l.b16 %v673_v7  ;;  %v752_v36 = vsel %vm3142_vm5, %v750_v14, %v751_v18  ;;  %v742_v47 = vsel %vm3142_vm5, %v2260_v29, %v741_v5  ;;  %v743_v55 = vrot.slane %v741_v5, 4 }
  0x72   : > { %v3213_v61 = vpack.c.b16 %v1042_v42, %v1041_v57  ;;  %v1040_v9 = vunpack.c.l.b16 %v752_v36  ;;  %v1037_v34 = vunpack.c.l.b16 %v742_v47  ;;  %v2265_v25 = vrot.slane %v2949_v21, 9 }
  0x73   : > { %v3215_v16 = vpack.c.b16 %v984_v35, %v983_v40  ;;  %v776_v17 = vrot.slane %v2960_v37, 5  ;;  %v779_v10 = vrot.slane %v2968_v45, 5  ;;  %v745_v4 = vsel %vm3142_vm5, %v743_v55, %v744_v49 }
  0x74   : > { %1089 = vrot.lane.b32.xlu2 %v3213_v61, %s2729_s5  ;;  %v3222_v28 = vpack.c.b16 %v1040_v9, %v1039_v23  ;;  %v2264_v48 = vrot.slane %v2975_v58, 9  ;;  %v769_v18 = vrot.slane %v2982_v22, 5  ;;  %v1038_v21 = vunpack.c.l.b16 %v745_v4 }
  0x75   : > { %1031 = vrot.lane.b32.xlu0 %v3215_v16, %s2728_s4  ;;  %v777_v37 = vsel %vm3142_vm5, %v2265_v25, %v776_v17  ;;  %v778_v45 = vrot.slane %v776_v17, 4  ;;  %v772_v29 = vrot.slane %v2990_v30, 5  ;;  %v2263_v22 = vrot.slane %v2871_v44, 9 }
  0x76   : > { %1087 = vrot.lane.b32.xlu1 %v3222_v28, %s2729_s5  ;;  %v1047_v0 = vunpack.c.l.b16 %v777_v37  ;;  %v770_v1 = vsel %vm3142_vm5, %v2264_v48, %v769_v18  ;;  %v771_v58 = vrot.slane %v769_v18, 4  ;;  %v3238_v57 = vpack.c.b16 %v1038_v21, %v1037_v34 }
  0x77   : > { %v780_v2 = vsel %vm3142_vm5, %v778_v45, %v779_v10  ;;  %v1045_v63 = vunpack.c.l.b16 %v770_v1  ;;  %v762_v14 = vrot.slane %v2879_v56, 5  ;;  %v765_v5 = vrot.slane %v2885_v62, 5 }
  0x78   : > { %v1048_v23 = vunpack.c.l.b16 %v780_v2  ;;  %v773_v30 = vsel %vm3142_vm5, %v771_v58, %v772_v29  ;;  %v2268_v19 = vrot.slane %v3017_v13, 9  ;;  %v797_v49 = vrot.slane %v3030_v41, 5 }
  0x79   : > { %v1046_v7 = vunpack.c.l.b16 %v773_v30  ;;  %v763_v44 = vsel %vm3142_vm5, %v2263_v22, %v762_v14  ;;  %v764_v42 = vrot.slane %v762_v14, 4  ;;  %v800_v35 = vrot.slane %v3034_v51, 5 }
  0x7a   : > { %v3250_v40 = vpack.c.b16 %v1048_v23, %v1047_v0  ;;  %v2267_v56 = vrot.slane %v3040_v3, 9  ;;  %v798_v13 = vsel %vm3142_vm5, %v2268_v19, %v797_v49  ;;  %v799_v47 = vrot.slane %v797_v49, 4 }
  0x7b   : > { %v3254_v36 = vpack.c.b16 %v1046_v7, %v1045_v63  ;;  %v766_v62 = vsel %vm3142_vm5, %v764_v42, %v765_v5  ;;  %v1043_v9 = vunpack.c.l.b16 %v763_v44  ;;  %v1053_v41 = vunpack.c.l.b16 %v798_v13  ;;  %v4093_v7 = vld [vmem:[#allocation12_spill] sm:$0xff] }
  0x7c   : > { %1095 = vrot.lane.b32.xlu2 %v3250_v40, %s2729_s5  ;;  %v790_v55 = vrot.slane %v3048_v38, 5  ;;  %v793_v51 = vrot.slane %v3056_v54, 5  ;;  %v1044_v3 = vunpack.c.l.b16 %v766_v62  ;;  %v801_v34 = vsel %vm3142_vm5, %v799_v47, %v800_v35 }
  0x7d   : > { %1085 = vrot.lane.b32.xlu0 %v3238_v57, %s2729_s5  ;;  %v2266_v25 = vrot.slane %v2930_v52, 9  ;;  %v783_v17 = vrot.slane %v2940_v8, 5  ;;  %v1054_v10 = vunpack.c.l.b16 %v801_v34  ;;  %v786_v54 = vrot.slane %v2946_v20, 5  ;;  %v4095_v34 = vld [vmem:[#allocation17_spill] sm:$0xff] }
  0x7e   : > { %1093 = vrot.lane.b32.xlu1 %v3254_v36, %s2729_s5  ;;  %v791_v38 = vsel %vm3142_vm5, %v2267_v56, %v790_v55  ;;  %v792_v4 = vrot.slane %v790_v55, 4  ;;  %v2271_v21 = vrot.slane %v3083_v15, 9  ;;  %v818_v45 = vrot.slane %v3094_v6, 5  ;;  %v4094_v55 = vld [vmem:[#allocation15_spill] sm:$0xff] }
  0x7f   : > { %v1051_v48 = vunpack.c.l.b16 %v791_v38  ;;  %v785_v18 = vrot.slane %v783_v17, 4  ;;  %v3276_v37 = vpack.c.b16 %v1054_v10, %v1053_v41  ;;  %v784_v8 = vsel %vm3142_vm5, %v2266_v25, %v783_v17  ;;  %v4096_v10 = vld [vmem:[#allocation18_spill] sm:$0xff] }
  0x80   : > { %v794_v52 = vsel %vm3142_vm5, %v792_v4, %v793_v51  ;;  %v3283_v29 = vpack.c.b16 %v1044_v3, %v1043_v9  ;;  %v821_v1 = vrot.slane %v3102_v12, 5  ;;  %v2270_v20 = vrot.slane %v3106_v33, 9 }
  0x81   : > { %v1052_v0 = vunpack.c.l.b16 %v794_v52  ;;  %v787_v15 = vsel %vm3142_vm5, %v785_v18, %v786_v54  ;;  %v819_v58 = vsel %vm3142_vm5, %v2271_v21, %v818_v45  ;;  %v820_v22 = vrot.slane %v818_v45, 4 }
  0x82   : > { %v811_v2 = vrot.slane %v3119_v59, 5  ;;  %v1049_v14 = vunpack.c.l.b16 %v784_v8  ;;  %v814_v6 = vrot.slane %v3122_v11, 5  ;;  %v2269_v23 = vrot.slane %v2994_v32, 9 }
  0x83   : > { %v3292_v63 = vpack.c.b16 %v1052_v0, %v1051_v48  ;;  %v822_v12 = vsel %vm3142_vm5, %v820_v22, %v821_v1  ;;  %v1059_v33 = vunpack.c.l.b16 %v819_v58  ;;  %v1050_v59 = vunpack.c.l.b16 %v787_v15  ;;  %v2442_v1 = vld [vmem:[%s2817_s30 + $0xc] sm:$0xff]  ;;  %v1010_v58 = vpop.permute.xlu2 %1009 }
  0x84   : > { %1101 = vrot.lane.b32.xlu2 %v3276_v37, %s2729_s5  ;;  %v812_v30 = vsel %vm3142_vm5, %v2270_v20, %v811_v2  ;;  %v813_v5 = vrot.slane %v811_v2, 4  ;;  %v1060_v19 = vunpack.c.l.b16 %v822_v12  ;;  %v804_v11 = vrot.slane %v3009_v60, 5  ;;  %v3353_v22 = vld [vmem:[%s2817_s30 + $0x30] sm:$0xff]  ;;  %v3356_v2 = vld [vmem:[%s2817_s30 + $0x24] sm:$0xff] }
  0x85   : > { %1091 = vrot.lane.b32.xlu0 %v3283_v29, %s2729_s5  ;;  %v807_v32 = vrot.slane %v4093_v7, 5  ;;  %v1057_v42 = vunpack.c.l.b16 %v812_v30  ;;  %v2273_v49 = vrot.slane %v3156_v39, 9  ;;  %v832_v35 = vrot.slane %v3163_v43, 5  ;;  %v3368_v12 = vld [vmem:[%s2817_s30 + $0x54] sm:$0xff]  ;;  %v3374_v30 = vld [vmem:[%s2817_s30 + $0x48] sm:$0xff] }
  0x86   : > { %1099 = vrot.lane.b32.xlu1 %v3292_v63, %s2729_s5  ;;  %v815_v44 = vsel %vm3142_vm5, %v813_v5, %v814_v6  ;;  %v805_v62 = vsel %vm3142_vm5, %v2269_v23, %v804_v11  ;;  %v806_v13 = vrot.slane %v804_v11, 4  ;;  %v835_v60 = vrot.slane %v3172_v31, 5  ;;  %v2443_v6 = vld [vmem:[%s2817_s30 + $0x18] sm:$0xff]  ;;  %v3388_v7 = vld [vmem:[%s2817_s30 + $0x6c] sm:$0xff] }
  0x87   : > { %v1058_v56 = vunpack.c.l.b16 %v815_v44  ;;  %v3315_v47 = vpack.c.b16 %v1060_v19, %v1059_v33  ;;  %v1055_v9 = vunpack.c.l.b16 %v805_v62  ;;  %v834_v41 = vrot.slane %v832_v35, 4  ;;  %v3385_v19 = vld [vmem:[%s2817_s30 + $0x3c] sm:$0xff] }
  0x88   : > { %v2272_v51 = vrot.slane %v4094_v55, 9  ;;  %v3318_v3 = vpack.c.b16 %v1050_v59, %v1049_v14  ;;  %v808_v39 = vsel %vm3142_vm5, %v806_v13, %v807_v32  ;;  %v825_v43 = vrot.slane %v4095_v34, 5  ;;  %v2451_v59 = vld [vmem:[%s2817_s30 + $0x78] sm:$0xff]  ;;  %v3399_v44 = vld [vmem:[%s2817_s30 + $0x60] sm:$0xff] }
  0x89   : > { %v3323_v25 = vpack.c.b16 %v1058_v56, %v1057_v42  ;;  %v1056_v17 = vunpack.c.l.b16 %v808_v39  ;;  %v828_v38 = vrot.slane %v4096_v10, 5  ;;  %v833_v31 = vsel %vm3142_vm5, %v2273_v49, %v832_v35  ;;  %v3396_v32 = vld [vmem:[%s2817_s30 + $0x9c] sm:$0xff]  ;;  %v3404_v49 = vld [vmem:[%s2817_s30 + $0x90] sm:$0xff]  ;;  %v3414_v13 = vld [vmem:[%s2817_s30 + $0x84] sm:$0xff] }
  0x8a   : > { %v836_v4 = vsel %vm3142_vm5, %v834_v41, %v835_v60  ;;  %v826_v54 = vsel %vm3142_vm5, %v2272_v51, %v825_v43  ;;  %v827_v48 = vrot.slane %v825_v43, 4  ;;  %v1063_v8 = vunpack.c.l.b16 %v833_v31  ;;  %v2455_v60 = vld [vmem:[%s2817_s30 + $0xa8] sm:$0xff]  ;;  %v4097_v51 = vld [vmem:[#allocation20_spill] sm:$0xff] }
  0x8b   : > { %v3334_v18 = vpack.c.b16 %v1056_v17, %v1055_v9  ;;  %v1061_v21 = vunpack.c.l.b16 %v826_v54  ;;  %v1064_v45 = vunpack.c.l.b16 %v836_v4 }
  0x8c   : > { %1107 = vrot.lane.b32.xlu2 %v3315_v47, %s2729_s5  ;;  %v829_v52 = vsel %vm3142_vm5, %v827_v48, %v828_v38  ;;  %v1338_v38 = vsel %vm1323_vm6, %v3353_v22, %v1010_v58  ;;  %v4098_v48 = vld [vmem:[#allocation8_spill] sm:$0xff]  ;;  %v2441_v58 = vld [vmem:[%s2817_s30] sm:$0xff] }
  0x8d   : > { %1097 = vrot.lane.b32.xlu0 %v3318_v3, %s2729_s5  ;;  %v1062_v0 = vunpack.c.l.b16 %v829_v52  ;;  %v3345_v15 = vpack.c.b16 %v1064_v45, %v1063_v8  ;;  %v4100_v8 = vld [vmem:[#allocation10_spill] sm:$0xff] }
  0x8e   : > { %1105 = vrot.lane.b32.xlu1 %v3323_v25, %s2729_s5 }
  0x8f   : > { %v3343_v20 = vpack.c.b16 %v1062_v0, %v1061_v21  ;;  %v4099_v21 = vld [vmem:[#allocation19_spill] sm:$0xff] }
  0x91   : > { %v3362_v14 = vpop.permute.xlu2 %1011 }
  0x94   : > { %1116 = vrot.lane.b32.xlu2 %v2442_v1, %s2730_s6 }
  0x95   : > { %1103 = vrot.lane.b32.xlu0 %v3334_v18, %s2729_s5 }
  0x96   : > { %1111 = vrot.lane.b32.xlu1 %v3345_v15, %s2729_s5 }
  0x9c   : > { %1122 = vrot.lane.b32.xlu2 %v3353_v22, %s2730_s6 }
  0x9d   : > { %1109 = vrot.lane.b32.xlu0 %v3343_v20, %s2729_s5 }
  0x9e   : > { %1120 = vrot.lane.b32.xlu1 %v3356_v2, %s2730_s6 }
  0x9f   : > { %v1006_v23 = vpop.permute.xlu1 %1005  ;;  %v3381_v5 = vpop.permute.xlu2 %1017 }
  0xa0   : > { %v3371_v33 = vsel %vm1323_vm6, %v2443_v6, %v1006_v23 }
  0xa3   : > { %v1002_v11 = vpop.permute.xlu0 %1001 }
  0xa4   : > { %1128 = vrot.lane.b32.xlu2 %v3368_v12, %s2730_s6 }
  0xa5   : > { %1118 = vrot.lane.b32.xlu0 %v2443_v6, %s2730_s6 }
  0xa6   : > { %1126 = vrot.lane.b32.xlu1 %v3374_v30, %s2730_s6 }
  0xac   : > { %1134 = vrot.lane.b32.xlu2 %v2451_v59, %s2730_s6 }
  0xad   : > { %1124 = vrot.lane.b32.xlu0 %v3385_v19, %s2730_s6  ;;  %v3401_v42 = vpop.permute.xlu2 %1023  ;;  %v1008_v62 = vpop.permute.xlu1 %1007 }
  0xae   : > { %1132 = vrot.lane.b32.xlu1 %v3388_v7, %s2730_s6 }
  0xb3   : > { %v1004_v35 = vpop.permute.xlu0 %1003 }
  0xb4   : > { %1140 = vrot.lane.b32.xlu2 %v3396_v32, %s2730_s6  ;;  %v1329_v56 = vsel %vm1323_vm6, %v2442_v1, %v1004_v35 }
  0xb5   : > { %1130 = vrot.lane.b32.xlu0 %v3399_v44, %s2730_s6 }
  0xb6   : > { %1138 = vrot.lane.b32.xlu1 %v3404_v49, %s2730_s6 }
  0xbb   : > { %v1030_v9 = vpop.permute.xlu2 %1029  ;;  %v1016_v55 = vpop.permute.xlu1 %1015 }
  0xbc   : > { %1202 = vrot.lane.b32.xlu2 %v3292_v63, %s2731_s7  ;;  %v3420_v41 = vsel %vm1323_vm6, %v2455_v60, %v1030_v9  ;;  %v1347_v52 = vsel %vm1323_vm6, %v3368_v12, %v1016_v55 }
  0xbd   : > { %1136 = vrot.lane.b32.xlu0 %v3414_v13, %s2730_s6 }
  0xbe   : > { %1175 = vrot.lane.b32.xlu1 %v3151_v27, %s2732_s8 }
  0xc1   : > { %v1014_v43 = vpop.permute.xlu0 %1013 }
  0xc4   : > { %1245 = vrot.lane.b32.xlu2 %v2455_v60, %s2733_s9 }
  0xc5   : > { %1167 = vrot.lane.b32.xlu0 %v4097_v51, %s2732_s8  ;;  %v1084_v39 = vpop.permute.xlu2 %1083 }
  0xc6   : > { %1237 = vrot.lane.b32.xlu1 %v2451_v59, %s2733_s9  ;;  %v3431_v34 = vsel %vm1372_vm7, %v1329_v56, %v1084_v39  ;;  %v1326_v56 = vsel %vm1323_vm6, %v2441_v58, %v1002_v11  ;;  %v3468_v39 = vld [vmem:[%s2817_s30 + $0xb4] sm:$0xff] }
  0xc9   : > { %v1022_v17 = vpop.permute.xlu1 %1021 }
  0xca   : > { %v1356_v10 = vsel %vm1323_vm6, %v2451_v59, %v1022_v17 }
  0xcc   : > { %1307 = vrot.lane.b32.xlu2 %v3276_v37, %s2734_s10 }
  0xcd   : > { %1210 = vrot.lane.b32.xlu0 %v3315_v47, %s2731_s7 }
  0xce   : > { %1280 = vrot.lane.b32.xlu1 %v3132_v46, %s2735_s11  ;;  %v1090_v31 = vpop.permute.xlu2 %1089 }
  0xcf   : > { %v3443_v4 = vsel %vm1372_vm7, %v1338_v38, %v1090_v31  ;;  %v1020_v54 = vpop.permute.xlu0 %1019  ;;  %v4102_v38 = vld [vmem:[#allocation7_spill] sm:$0xff] }
  0xd4   : > { %1159 = vrot.lane.b32.xlu2 %v4098_v48, %s2732_s8 }
  0xd5   : > { %1272 = vrot.lane.b32.xlu0 %v4099_v21, %s2735_s11 }
  0xd6   : > { %1151 = vrot.lane.b32.xlu1 %v4100_v8, %s2732_s8  ;;  %v1096_v45 = vpop.permute.xlu2 %1095 }
  0xd7   : > { %v3454_v0 = vsel %vm1372_vm7, %v1347_v52, %v1096_v45  ;;  %v1335_v52 = vsel %vm1323_vm6, %v3356_v2, %v1008_v62  ;;  %v1344_v62 = vsel %vm1323_vm6, %v3374_v30, %v1014_v43 }
  0xd8   : > { %v1028_v1 = vpop.permute.xlu1 %1027 }
  0xd9   : > { %v1365_v17 = vsel %vm1323_vm6, %v3396_v32, %v1028_v1 }
  0xdc   : > { %1221 = vrot.lane.b32.xlu2 %v2443_v6, %s2733_s9  ;;  %v4101_v6 = vld [vmem:[#allocation14_spill] sm:$0xff] }
  0xdd   : > { %1315 = vrot.lane.b32.xlu0 %v3343_v20, %s2734_s10  ;;  %v1026_v23 = vpop.permute.xlu0 %1025 }
  0xde   : > { %1194 = vrot.lane.b32.xlu1 %v3283_v29, %s2731_s7  ;;  %v1102_v59 = vpop.permute.xlu2 %1101 }
  0xdf   : > { %v3463_v35 = vsel %vm1372_vm7, %v1356_v10, %v1102_v59 }
  0xe0   : > { %v1082_v9 = vpop.permute.xlu1 %1081 }
  0xe1   : > { %v1374_v55 = vsel %vm1372_vm7, %v1326_v56, %v1082_v9 }
  0xe4   : > { %1264 = vrot.lane.b32.xlu2 %v4101_v6, %s2735_s11 }
  0xe5   : > { %1186 = vrot.lane.b32.xlu0 %v3182_v24, %s2731_s7 }
  0xe6   : > { %1256 = vrot.lane.b32.xlu1 %v4102_v38, %s2735_s11  ;;  %v1108_v10 = vpop.permute.xlu2 %1107 }
  0xe7   : > { %v1032_v31 = vpop.permute.xlu0 %1031  ;;  %v3479_v11 = vsel %vm1372_vm7, %v1365_v17, %v1108_v10  ;;  %v1353_v17 = vsel %vm1323_vm6, %v3388_v7, %v1020_v54 }
  0xe8   : > { %v1371_v8 = vsel %vm1323_vm6, %v3468_v39, %v1032_v31  ;;  %v1088_v45 = vpop.permute.xlu1 %1087 }
  0xe9   : > { %v1380_v24 = vsel %vm1372_vm7, %v1335_v52, %v1088_v45  ;;  %v1362_v45 = vsel %vm1323_vm6, %v3404_v49, %v1026_v23  ;;  %v1359_v23 = vsel %vm1323_vm6, %v3414_v13, %v3401_v42 }
  0xec   : > { %1142 = vrot.lane.b32.xlu2 %v2455_v60, %s2730_s6 }
  0xed   : > { %1229 = vrot.lane.b32.xlu0 %v3374_v30, %s2733_s9  ;;  %v1341_v30 = vsel %vm1323_vm6, %v3385_v19, %v3362_v14  ;;  %v1350_v14 = vsel %vm1323_vm6, %v3399_v44, %v3381_v5 }
  0xee   : > { %1299 = vrot.lane.b32.xlu1 %v3254_v36, %s2734_s10  ;;  %v1117_v1 = vpop.permute.xlu2 %1116 }
  0xef   : > { %v1086_v58 = vpop.permute.xlu0 %1085  ;;  %v3492_v59 = vsel %vm1405_vm8, %v1374_v55, %v1117_v1 }
  0xf0   : > { %v1378_v56 = vsel %vm1372_vm7, %v3371_v33, %v1086_v58  ;;  %v1094_v9 = vpop.permute.xlu1 %1093 }
  0xf1   : > { %v1386_v60 = vsel %vm1372_vm7, %v1344_v62, %v1094_v9 }
  0xf4   : > { %1204 = vrot.lane.b32.xlu2 %v3276_v37, %s2731_s7 }
  0xf5   : > { %1291 = vrot.lane.b32.xlu0 %v3238_v57, %s2734_s10 }
  0xf6   : > { %1177 = vrot.lane.b32.xlu1 %v3132_v46, %s2732_s8  ;;  %v1123_v55 = vpop.permute.xlu2 %1122 }
  0xf7   : > { %v1092_v43 = vpop.permute.xlu0 %1091  ;;  %v3509_v33 = vsel %vm1405_vm8, %v1380_v24, %v1123_v55 }
  0xf8   : > { %4103 = vst [vmem:[#allocation12_spill] sm:$0xff] %v3509_v33  ;;  %v1384_v37 = vsel %vm1372_vm7, %v1341_v30, %v1092_v43  ;;  %v1100_v10 = vpop.permute.xlu1 %1099 }
  0xf9   : > { %v1392_v31 = vsel %vm1372_vm7, %v1353_v17, %v1100_v10  ;;  %v4107_v10 = vld [vmem:[#allocation13_spill] sm:$0xff] }
  0xfc   : > { %1247 = vrot.lane.b32.xlu2 %v3468_v39, %s2733_s9 }
  0xfd   : > { %1169 = vrot.lane.b32.xlu0 %v4099_v21, %s2732_s8 }
  0xfe   : > { %1239 = vrot.lane.b32.xlu1 %v3414_v13, %s2733_s9  ;;  %v1129_v46 = vpop.permute.xlu2 %1128 }
  0xff   : > { %v1098_v54 = vpop.permute.xlu0 %1097  ;;  %v3525_v52 = vsel %vm1405_vm8, %v1386_v60, %v1129_v46 }
 0x100   : > { %v3530_v24 = vsel %vm1372_vm7, %v1350_v14, %v1098_v54  ;;  %v1106_v1 = vpop.permute.xlu1 %1105  ;;  %v3597_v14 = vld [vmem:[%s2817_s30 + $0xc4] sm:$0xf] }
 0x101   : > { %v3533_v21 = vsel %vm1372_vm7, %v1362_v45, %v1106_v1  ;;  %v851_v45 = vshrl.u32 %v3597_v14, 16 }
 0x104   : > { %1309 = vrot.lane.b32.xlu2 %v3334_v18, %s2734_s10 }
 0x105   : > { %1212 = vrot.lane.b32.xlu0 %v3343_v20, %s2731_s7  ;;  %v4105_v20 = vld [vmem:[#allocation16_spill] sm:$0xff] }
 0x106   : > { %1282 = vrot.lane.b32.xlu1 %v3215_v16, %s2735_s11  ;;  %v1135_v5 = vpop.permute.xlu2 %1134 }
 0x107   : > { %v1104_v58 = vpop.permute.xlu0 %1103  ;;  %v3545_v62 = vsel %vm1405_vm8, %v1392_v31, %v1135_v5 }
 0x108   : > { %v1396_v9 = vsel %vm1372_vm7, %v1359_v23, %v1104_v58  ;;  %v1112_v60 = vpop.permute.xlu1 %1111 }
 0x109   : > { %v3549_v55 = vsel %vm1372_vm7, %v1371_v8, %v1112_v60 }
 0x10a   : > { %4104 = vst [vmem:[#allocation15_spill] sm:$0xff] %v3549_v55 }
 0x10c   : > { %1161 = vrot.lane.b32.xlu2 %v4101_v6, %s2732_s8 }
 0x10d   : > { %1274 = vrot.lane.b32.xlu0 %v4105_v20, %s2735_s11 }
 0x10e   : > { %1153 = vrot.lane.b32.xlu1 %v4102_v38, %s2732_s8  ;;  %v3557_v42 = vpop.permute.xlu2 %1140 }
 0x10f   : > { %v1110_v13 = vpop.permute.xlu0 %1109 }
 0x110   : > { %v3561_v30 = vsel %vm1372_vm7, %v3420_v41, %v1110_v13  ;;  %v1121_v43 = vpop.permute.xlu1 %1120  ;;  %v853_v13 = vrot.slane %v851_v45, 4 }
 0x111   : > { %v3564_v8 = vsel %vm1405_vm8, %v1378_v56, %v1121_v43  ;;  %v1784_v43 = vld [vmem:[%s4044_s1 + $0x10] sm:$0x3] }
 0x112   : > { %4106 = vst [vmem:[#allocation17_spill] sm:$0xff] %v3564_v8 }
 0x114   : > { %1223 = vrot.lane.b32.xlu2 %v3356_v2, %s2733_s9  ;;  %v4108_v2 = vld [vmem:[#allocation9_spill] sm:$0xff] }
 0x115   : > { %1317 = vrot.lane.b32.xlu0 %v3345_v15, %s2734_s10 }
 0x116   : > { %1196 = vrot.lane.b32.xlu1 %v3254_v36, %s2731_s7  ;;  %v3572_v6 = vpop.permute.xlu2 %1202 }
 0x117   : > { %v1119_v38 = vpop.permute.xlu0 %1118 }
 0x118   : > { %v3576_v41 = vsel %vm1405_vm8, %v3431_v34, %v1119_v38  ;;  %v1127_v17 = vpop.permute.xlu1 %1126  ;;  %v3594_v34 = vld [vmem:[%s2817_s30 + $0xc0] sm:$0xf] }
 0x119   : > { %v3579_v56 = vsel %vm1405_vm8, %v1384_v37, %v1127_v17  ;;  %v838_v37 = vshrl.u32 %v3594_v34, 16  ;;  %v841_v54 = vshll.u32 %v3594_v34, 16  ;;  %v1878_v17 = vunpack.c.l.b16 %v1784_v43  ;;  %v2475_v43 = vld [vmem:[%s4044_s1] sm:$0xff] }
 0x11b   : > { %v840_v23 = vrot.slane %v838_v37, 4  ;;  %v843_v58 = vrot.slane %v841_v54, 5  ;;  %v1881_v55 = vpack.c.b16 %v1878_v17, %v1878_v17 }
 0x11c   : > { %1266 = vrot.lane.b32.xlu2 %v4107_v10, %s2735_s11 }
 0x11d   : > { %1188 = vrot.lane.b32.xlu0 %v3238_v57, %s2731_s7  ;;  %v847_v57 = vshll.u32 %v3597_v14, 16  ;;  %v844_v8 = vor.u32 %v843_v58, %v840_v23 }
 0x11e   : > { %1258 = vrot.lane.b32.xlu1 %v4108_v2, %s2735_s11  ;;  %v3587_v36 = vpop.permute.xlu2 %1245 }
 0x11f   : > { %v3589_v31 = vpop.permute.xlu0 %1124  ;;  %v849_v60 = vrot.slane %v847_v57, 5  ;;  %v1935_v57 = vsel %vm1933_vm9, %v1881_v55, 0  ;;  %v845_v45 = vrot.slane %v844_v8, 4 }
 0x120   : > { %v3591_v46 = vpop.permute.xlu1 %1132  ;;  %2574 = vmatpush.bf16.msra.mxu2 %v1935_v57  ;;  %2575 = vmatpush.bf16.msra.mxu3 %v1935_v57 }
 0x121   : > { %v854_v37 = vor.u32 %v853_v13, %v849_v60  ;;  %1942 = vmatpush.bf16.msra.mxu0 %v1935_v57  ;;  %2573 = vmatpush.bf16.msra.mxu1 %v1935_v57  ;;  %v3638_v13 = vld [vmem:[%s2817_s30 + $0xc0] sm:$0xff]  ;;  %v866_v57 = vrot.slane %v3597_v14, 5  ;;  %v1423_v14 = vsel %vm1405_vm8, %v3530_v24, %v3591_v46 }
 0x124   : > { %1144 = vrot.lane.b32.xlu2 %v3468_v39, %s2730_s6 }
 0x125   : > { %1231 = vrot.lane.b32.xlu0 %v3368_v12, %s2733_s9  ;;  %v283_v12 = vld [vmem:[%s2817_s30 + $0xc8] sm:$0x1] }
 0x126   : > { %1301 = vrot.lane.b32.xlu1 %v3250_v40, %s2734_s10  ;;  %v3609_v1 = vpop.permute.xlu2 %1307  ;;  %v857_v54 = vshll.u32 %v283_v12, 16 }
 0x127   : > { %v1131_v5 = vpop.permute.xlu0 %1130 }
 0x128   : > { %v3616_v39 = vsel %vm1405_vm8, %v3454_v0, %v1131_v5  ;;  %v1139_v38 = vpop.permute.xlu1 %1138  ;;  %v855_v5 = vrot.slane %v854_v37, 4  ;;  %v859_v23 = vrot.slane %v857_v54, 5 }
 0x129   : > { %v3620_v33 = vsel %vm1405_vm8, %v1396_v9, %v1139_v38 }
 0x12a   : > { %v860_v8 = vsel %vm2855_vm2, %v855_v5, %v859_v23 }
 0x12b   : > { %v1149_v38 = vunpack.c.l.b16 %v860_v8 }
 0x12c   : > { %1206 = vrot.lane.b32.xlu2 %v3334_v18, %s2731_s7  ;;  %v2476_v18 = vld [vmem:[%s4044_s1 + $0x8] sm:$0xff] }
 0x12d   : > { %1293 = vrot.lane.b32.xlu0 %v3222_v28, %s2734_s10  ;;  %2577 = vmatpush.bf16.msra.mxu2 %v2476_v18 }
 0x12e   : > { %1179 = vrot.lane.b32.xlu1 %v3215_v16, %s2732_s8  ;;  %v3628_v0 = vpop.permute.xlu2 %1159  ;;  %2578 = vmatpush.bf16.msra.mxu3 %v2476_v18  ;;  %v850_v16 = vsel %vm2855_vm2, %v845_v45, %v849_v60  ;;  %v869_v45 = vrot.slane %v283_v12, 5 }
 0x12f   : > { %v1137_v9 = vpop.permute.xlu0 %1136  ;;  %1943 = vmatpush.bf16.msra.mxu0 %v2476_v18  ;;  %2576 = vmatpush.bf16.msra.mxu1 %v2476_v18  ;;  %v1148_v60 = vunpack.c.l.b16 %v850_v16 }
 0x130   : > { %v3635_v55 = vsel %vm1405_vm8, %v3463_v35, %v1137_v9  ;;  %v1176_v58 = vpop.permute.xlu1 %1175  ;;  %v868_v9 = vrot.slane %v866_v57, 4 }
 0x131   : > { %2580 = vmatpush.bf16.msra.mxu2 %v2475_v43  ;;  %v3655_v54 = vpack.c.b16 %v1149_v38, %v1148_v60  ;;  %v1431_v38 = vsel %vm1405_vm8, %v3533_v21, %v3557_v42 }
 0x132   : > { %2581 = vmatpush.bf16.msra.mxu3 %v2475_v43 }
 0x133   : > { %1944 = vmatpush.bf16.msra.mxu0 %v2475_v43  ;;  %2579 = vmatpush.bf16.msra.mxu1 %v2475_v43 }
 0x134   : > { %1249 = vrot.lane.b32.xlu2 %v3638_v13, %s2733_s9 }
 0x135   : > { %1171 = vrot.lane.b32.xlu0 %v4105_v20, %s2732_s8  ;;  %v2274_v20 = vrot.slane %v3594_v34, 9 }
 0x136   : > { %1241 = vrot.lane.b32.xlu1 %v3404_v49, %s2733_s9  ;;  %v3653_v35 = vpop.permute.xlu2 %1221 }
 0x137   : > { %v1168_v17 = vpop.permute.xlu0 %1167  ;;  %v867_v18 = vsel %vm3142_vm5, %v2274_v20, %v866_v57  ;;  %v1464_v57 = vsel %vm1438_vm10, %v1431_v38, %v1176_v58 }
 0x138   : > { %v1238_v37 = vpop.permute.xlu1 %1237  ;;  %v1456_v16 = vsel %vm1438_vm10, %v1423_v14, %v1168_v17  ;;  %v1183_v34 = vunpack.c.l.b16 %v867_v18 }
 0x139   : > { %v1489_v24 = vsel %vm1471_vm11, %v1456_v16, %v3572_v6  ;;  %v4109_v16 = vld [vmem:[#allocation11_spill] sm:$0xff] }
 0x13a   : > { %v1522_v8 = vsel %vm1504_vm12, %v1489_v24, %v1238_v37  ;;  %v3721_v24 = vld [vmem:[%s2817_s30 + $0xcc] sm:$0xf] }
 0x13c   : > { %1311 = vrot.lane.b32.xlu2 %v3323_v25, %s2734_s10 }
 0x13d   : > { %1214 = vrot.lane.b32.xlu0 %v3345_v15, %s2731_s7  ;;  %v870_v15 = vsel %vm3142_vm5, %v868_v9, %v869_v45 }
 0x13e   : > { %1284 = vrot.lane.b32.xlu1 %v3655_v54, %s2735_s11  ;;  %v3664_v49 = vpop.permute.xlu2 %1264  ;;  %v1184_v12 = vunpack.c.l.b16 %v870_v15 }
 0x13f   : > { %v1211_v5 = vpop.permute.xlu0 %1210 }
 0x140   : > { %v1281_v23 = vpop.permute.xlu1 %1280  ;;  %v3692_v6 = vpack.c.b16 %v1184_v12, %v1183_v34  ;;  %v1497_v9 = vsel %vm1471_vm11, %v1464_v57, %v1211_v5  ;;  %v1415_v57 = vsel %vm1405_vm8, %v3443_v4, %v3589_v31  ;;  %v3747_v4 = vld [vmem:[%s2817_s30 + $0xd4] sm:$0x1] }
 0x141   : > { %v1530_v21 = vsel %vm1504_vm12, %v1497_v9, %v3587_v36 }
 0x144   : > { %1163 = vrot.lane.b32.xlu2 %v4107_v10, %s2732_s8 }
 0x145   : > { %1276 = vrot.lane.b32.xlu0 %v3180_v53, %s2735_s11 }
 0x146   : > { %1155 = vrot.lane.b32.xlu1 %v4108_v2, %s2732_s8  ;;  %v3683_v46 = vpop.permute.xlu2 %1142 }
 0x147   : > { %v1273_v43 = vpop.permute.xlu0 %1272 }
 0x148   : > { %v1555_v10 = vsel %vm1537_vm13, %v1522_v8, %v1273_v43  ;;  %v1152_v60 = vpop.permute.xlu1 %1151  ;;  %v3725_v43 = vld [vmem:[%s2817_s30 + $0xd0] sm:$0xf] }
 0x149   : > { %v1588_v17 = vsel %vm1570_vm14, %v1555_v10, %v3609_v1  ;;  %v1563_v1 = vsel %vm1537_vm13, %v1530_v21, %v1281_v23  ;;  %v4110_v23 = vld [vmem:[#allocation6_spill] sm:$0xff]  ;;  %v872_v10 = vshrl.u32 %v3721_v24, 16  ;;  %v881_v38 = vshll.u32 %v3725_v43, 16 }
 0x14a   : > { %v1635_v2 = vunpack.c.l.b16 %v1588_v17  ;;  %v1636_v20 = vunpack.c.h.b16 %v1588_v17  ;;  %v885_v17 = vshrl.u32 %v3725_v43, 16 }
 0x14b   : > { %v883_v31 = vrot.slane %v881_v38, 5 }
 0x14c   : > { %v1667_v37 = vpack.c.b16 %v1635_v2, %v1635_v2  ;;  %v1668_v45 = vpack.c.b16 %v1636_v20, %v1636_v20  ;;  %1225 = vrot.lane.b32.xlu2 %v3353_v22, %s2733_s9  ;;  %v1448_v20 = vsel %vm1438_vm10, %v1415_v57, %v3628_v0 }
 0x14d   : > { %1319 = vrot.lane.b32.xlu0 %v3692_v6, %s2734_s10 }
 0x14e   : > { %1732 = vst.msk [vmem:[#allocation2 + $0x40] sm:$0xf] %vm1715_vm15, %v1667_v37  ;;  %1198 = vrot.lane.b32.xlu1 %v3250_v40, %s2731_s7  ;;  %v3705_v42 = vpop.permute.xlu2 %1204  ;;  %v874_v37 = vrot.slane %v872_v10, 4 }
 0x14f   : > { %1733 = vst.msk [vmem:[#allocation2 + $0x44] sm:$0xf] %vm1715_vm15, %v1668_v45  ;;  %v1316_v58 = vpop.permute.xlu0 %1315 }
 0x150   : > { %v1596_v22 = vsel %vm1570_vm14, %v1563_v1, %v1316_v58  ;;  %v1195_v5 = vpop.permute.xlu1 %1194 }
 0x151   : > { %v1643_v14 = vunpack.c.l.b16 %v1596_v22  ;;  %v1644_v18 = vunpack.c.h.b16 %v1596_v22  ;;  %v1440_v22 = vsel %vm1438_vm10, %v3492_v59, %v1152_v60 }
 0x153   : > { %v1675_v36 = vpack.c.b16 %v1643_v14, %v1643_v14  ;;  %v1676_v15 = vpack.c.b16 %v1644_v18, %v1644_v18 }
 0x154   : > { %1268 = vrot.lane.b32.xlu2 %v4109_v16, %s2735_s11 }
 0x155   : > { %1740 = vst.msk [vmem:[#allocation2 + $0x60] sm:$0xf] %vm1715_vm15, %v1675_v36  ;;  %1190 = vrot.lane.b32.xlu0 %v3222_v28, %s2731_s7  ;;  %v875_v28 = vshll.u32 %v3721_v24, 16 }
 0x156   : > { %1741 = vst.msk [vmem:[#allocation2 + $0x64] sm:$0xf] %vm1715_vm15, %v1676_v15  ;;  %v2467_v40 = vld [vmem:[#allocation2 + $0x40] sm:$0xff]  ;;  %1260 = vrot.lane.b32.xlu1 %v4110_v23, %s2735_s11  ;;  %v3718_v34 = vpop.permute.xlu2 %1247 }
 0x157   : > { %v1187_v12 = vpop.permute.xlu0 %1186  ;;  %2428 = vmatmul.msk.bf16.vlgmr.msra.gmra.mxu2 %vm1884_vm0, %v2467_v40  ;;  %v877_v45 = vrot.slane %v875_v28, 5 }
 0x158   : > { %v1257_v8 = vpop.permute.xlu1 %1256  ;;  %v1473_v36 = vsel %vm1471_vm11, %v1440_v22, %v1187_v12 }
 0x159   : > { %v878_v18 = vor.u32 %v877_v45, %v874_v37  ;;  %v1506_v59 = vsel %vm1504_vm12, %v1473_v36, %v3653_v35  ;;  %v2458_v37 = vld [vmem:[%s2817_s30 + $0xcc] sm:$0xff]  ;;  %s208_s30 = sand.u32 1, %s2710_s13  }
 0x15a   : > { %v1539_v60 = vsel %vm1537_vm13, %v1506_v59, %v1257_v8  ;;  %s2256_s5 = sshll.u32 %s208_s30, 7 }
 0x15b   : > { %v879_v38 = vrot.slane %v878_v18, 4 }
 0x15c   : > { %1146 = vrot.lane.b32.xlu2 %v3638_v13, %s2730_s6  ;;  %v1481_v13 = vsel %vm1471_vm11, %v1448_v20, %v1195_v5  ;;  %v891_v5 = vshll.u32 %v3747_v4, 16  ;;  %s3918_s6 = scalar_lea.vmem [#allocation3], %s2256_s5 }
 0x15d   : > { %1233 = vrot.lane.b32.xlu0 %v3399_v44, %s2733_s9  ;;  %v2471_v2 = vld [vmem:[#allocation2 + $0x60] sm:$0xff]  ;;  %v887_v44 = vrot.slane %v885_v17, 4  ;;  %v884_v8 = vsel %vm2855_vm2, %v879_v38, %v883_v31 }
 0x15e   : > { %1303 = vrot.lane.b32.xlu1 %v3318_v3, %s2734_s10  ;;  %v3742_v9 = vpop.permute.xlu2 %1309  ;;  %2432 = vmatmul.msk.bf16.vlgmr.msra.gmra.mxu3 %vm1884_vm0, %v2471_v2 }
 0x15f   : > { %v1230_v21 = vpop.permute.xlu0 %1229  ;;  %v888_v10 = vor.u32 %v887_v44, %v883_v31  ;;  %v1253_v44 = vunpack.c.l.b16 %v884_v8 }
 0x160   : > { %v1514_v1 = vsel %vm1504_vm12, %v1481_v13, %v1230_v21  ;;  %v1300_v58 = vpop.permute.xlu1 %1299 }
 0x161   : > { %v1547_v0 = vsel %vm1537_vm13, %v1514_v1, %v3664_v49  ;;  %v889_v17 = vrot.slane %v888_v10, 4 }
 0x162   : > { %v1580_v14 = vsel %vm1570_vm14, %v1547_v0, %v1300_v58 }
 0x163   : > { %v1627_v15 = vunpack.c.l.b16 %v1580_v14  ;;  %v1628_v40 = vunpack.c.h.b16 %v1580_v14  ;;  %v900_v14 = vrot.slane %v3725_v43, 5 }
 0x164   : > { %1208 = vrot.lane.b32.xlu2 %v3323_v25, %s2731_s7  ;;  %v893_v25 = vrot.slane %v891_v5, 5  ;;  %v903_v5 = vrot.slane %v3747_v4, 5 }
 0x165   : > { %1295 = vrot.lane.b32.xlu0 %v3213_v61, %s2734_s10  ;;  %v1659_v49 = vpack.c.b16 %v1627_v15, %v1627_v15  ;;  %v1660_v28 = vpack.c.b16 %v1628_v40, %v1628_v40  ;;  %v902_v18 = vrot.slane %v900_v14, 4 }
 0x166   : > { %1181 = vrot.lane.b32.xlu1 %v3655_v54, %s2732_s8  ;;  %v3769_v2 = vpop.permute.xlu2 %1161  ;;  %v894_v21 = vsel %vm2855_vm2, %v889_v17, %v893_v25 }
 0x167   : > { %1724 = vst.msk [vmem:[#allocation2 + $0x20] sm:$0xf] %vm1715_vm15, %v1659_v49  ;;  %v1292_v12 = vpop.permute.xlu0 %1291  ;;  %v1254_v1 = vunpack.c.l.b16 %v894_v21  ;;  %v1450_v8 = vsel %vm1438_vm10, %v3579_v56, %v3769_v2 }
 0x168   : > { %1725 = vst.msk [vmem:[#allocation2 + $0x24] sm:$0xf] %vm1715_vm15, %v1660_v28  ;;  %v1572_v57 = vsel %vm1570_vm14, %v1539_v60, %v1292_v12  ;;  %v1178_v20 = vpop.permute.xlu1 %1177 }
 0x169   : > { %v1619_v35 = vunpack.c.l.b16 %v1572_v57  ;;  %v1620_v45 = vunpack.c.h.b16 %v1572_v57  ;;  %v1255_v22 = vpack.c.b16 %v1254_v1, %v1253_v44 }
 0x16b   : > { %v1651_v13 = vpack.c.b16 %v1619_v35, %v1619_v35  ;;  %v1652_v54 = vpack.c.b16 %v1620_v45, %v1620_v45 }
 0x16c   : > { %1251 = vrot.lane.b32.xlu2 %v2458_v37, %s2733_s9 }
 0x16d   : > { %1716 = vst.msk [vmem:[#allocation2] sm:$0xf] %vm1715_vm15, %v1651_v13  ;;  %1173 = vrot.lane.b32.xlu0 %v3180_v53, %s2732_s8 }
 0x16e   : > { %1717 = vst.msk [vmem:[#allocation2 + $0x4] sm:$0xf] %vm1715_vm15, %v1652_v54  ;;  %1243 = vrot.lane.b32.xlu1 %v3396_v32, %s2733_s9  ;;  %v3784_v26 = vpop.permute.xlu2 %1223  ;;  %v2275_v32 = vrot.slane %v3721_v24, 9 }
 0x16f   : > { %v1170_v58 = vpop.permute.xlu0 %1169  ;;  %v2463_v0 = vld [vmem:[#allocation2 + $0x20] sm:$0xff] }
 0x170   : > { %v1240_v31 = vpop.permute.xlu1 %1239  ;;  %2424 = vmatmul.msk.bf16.vlgmr.msra.gmra.mxu1 %vm1884_vm0, %v2463_v0  ;;  %v901_v43 = vsel %vm3142_vm5, %v2275_v32, %v900_v14 }
 0x171   : > { %v1288_v24 = vunpack.c.l.b16 %v901_v43 }
 0x174   : > { %1313 = vrot.lane.b32.xlu2 %v3315_v47, %s2734_s10  ;;  %v904_v47 = vsel %vm3142_vm5, %v902_v18, %v903_v5 }
 0x175   : > { %1216 = vrot.lane.b32.xlu0 %v3692_v6, %s2731_s7  ;;  %v2459_v53 = vld [vmem:[#allocation2] sm:$0xff]  ;;  %v1458_v6 = vsel %vm1438_vm10, %v3545_v62, %v1170_v58  ;;  %v1289_v4 = vunpack.c.l.b16 %v904_v47 }
 0x176   : > { %1286 = vrot.lane.b32.xlu1 %v1255_v22, %s2735_s11  ;;  %2420 = vmatmul.msk.bf16.vlgmr.msra.gmra.mxu0 %vm1884_vm0, %v2459_v53  ;;  %v1267_v40 = vpop.permute.xlu2 %1266  ;;  %v1491_v10 = vsel %vm1471_vm11, %v1458_v6, %v3705_v42 }
 0x177   : > { %v1213_v36 = vpop.permute.xlu0 %1212  ;;  %v1524_v50 = vsel %vm1504_vm12, %v1491_v10, %v1240_v31  ;;  %v1290_v59 = vpack.c.b16 %v1289_v4, %v1288_v24 }
 0x178   : > { %v1283_v15 = vpop.permute.xlu1 %1282 }
 0x17c   : > { %1165 = vrot.lane.b32.xlu2 %v4109_v16, %s2732_s8  ;;  %v1433_v16 = vsel %vm1405_vm8, %v3479_v11, %v3683_v46 }
 0x17d   : > { %1278 = vrot.lane.b32.xlu0 %v3151_v27, %s2735_s11  ;;  %v1466_v60 = vsel %vm1438_vm10, %v1433_v16, %v1178_v20 }
 0x17e   : > { %1157 = vrot.lane.b32.xlu1 %v4110_v23, %s2732_s8  ;;  %v1499_v23 = vsel %vm1471_vm11, %v1466_v60, %v1213_v36  ;;  %v3824_v46 = vpop.permute.xlu2 %1144 }
 0x17f   : > { %v1275_v49 = vpop.permute.xlu0 %1274  ;;  %v1532_v11 = vsel %vm1504_vm12, %v1499_v23, %v3718_v34  ;;  %v1435_v60 = vsel %vm1405_vm8, %v3561_v30, %v3824_v46 }
 0x180   : > { %v1557_v62 = vsel %vm1537_vm13, %v1524_v50, %v1275_v49  ;;  %v1154_v28 = vpop.permute.xlu1 %1153 }
 0x181   : > { %v1590_v27 = vsel %vm1570_vm14, %v1557_v62, %v3742_v9  ;;  %v1565_v9 = vsel %vm1537_vm13, %v1532_v11, %v1283_v15 }
 0x182   : > { %v1637_v42 = vunpack.c.l.b16 %v1590_v27  ;;  %v1638_v12 = vunpack.c.h.b16 %v1590_v27 }
 0x184   : > { %v1669_v38 = vpack.c.b16 %v1637_v42, %v1637_v42  ;;  %v1670_v17 = vpack.c.b16 %v1638_v12, %v1638_v12  ;;  %1227 = vrot.lane.b32.xlu2 %v3385_v19, %s2733_s9 }
 0x185   : > { %1321 = vrot.lane.b32.xlu0 %v1290_v59, %s2734_s10 }
 0x186   : > { %1734 = vst.msk [vmem:[#allocation2 + $0x48] sm:$0xf] %vm1715_vm15, %v1669_v38  ;;  %1200 = vrot.lane.b32.xlu1 %v3318_v3, %s2731_s7  ;;  %v1207_v13 = vpop.permute.xlu2 %1206 }
 0x187   : > { %1735 = vst.msk [vmem:[#allocation2 + $0x4c] sm:$0xf] %vm1715_vm15, %v1670_v17  ;;  %v1318_v25 = vpop.permute.xlu0 %1317 }
 0x188   : > { %v1598_v57 = vsel %vm1570_vm14, %v1565_v9, %v1318_v25  ;;  %v1197_v19 = vpop.permute.xlu1 %1196 }
 0x189   : > { %v1645_v20 = vunpack.c.l.b16 %v1598_v57  ;;  %v1646_v37 = vunpack.c.h.b16 %v1598_v57 }
 0x18b   : > { %v1677_v35 = vpack.c.b16 %v1645_v20, %v1645_v20  ;;  %v1678_v45 = vpack.c.b16 %v1646_v37, %v1646_v37 }
 0x18c   : > { %1270 = vrot.lane.b32.xlu2 %v4097_v51, %s2735_s11 }
 0x18d   : > { %1742 = vst.msk [vmem:[#allocation2 + $0x68] sm:$0xf] %vm1715_vm15, %v1677_v35  ;;  %1192 = vrot.lane.b32.xlu0 %v3213_v61, %s2731_s7  ;;  %v1483_v61 = vsel %vm1471_vm11, %v1450_v8, %v1197_v19  ;;  %s2477_s7 = sshll.u32 %s2718_s15, 7  ;;  %s2123_s15 = scalar_lea.sflag [#allocation4], %s208_s30 }
 0x18e   : > { %1743 = vst.msk [vmem:[#allocation2 + $0x6c] sm:$0xf] %vm1715_vm15, %v1678_v45  ;;  %v2468_v3 = vld [vmem:[#allocation2 + $0x48] sm:$0xff]  ;;  %1262 = vrot.lane.b32.xlu1 %v4098_v48, %s2735_s11  ;;  %v1250_v58 = vpop.permute.xlu2 %1249  ;;  %s2138_s11 = sshll.u32 %s3918_s6, 4  ;;  %s2139_s11 = int_to_ptr.vmem [resolvable:$true] %s2138_s11 }
 0x18f   : > { %v1189_v34 = vpop.permute.xlu0 %1188  ;;  %2429 = vmatmul.msk.bf16.gmra.mxu2 %vm1884_vm0, %v2468_v3 }
 0x190   : > { %v1259_v54 = vpop.permute.xlu1 %1258 }
 0x195   : > { %1235 = vrot.lane.b32.xlu0 %v3388_v7, %s2733_s9  ;;  %v2472_v51 = vld [vmem:[#allocation2 + $0x68] sm:$0xff]  ;;  %v1442_v7 = vsel %vm1438_vm10, %v3576_v41, %v1154_v28 }
 0x196   : > { %1305 = vrot.lane.b32.xlu1 %v3292_v63, %s2734_s10  ;;  %2433 = vmatmul.msk.bf16.gmra.mxu3 %vm1884_vm0, %v2472_v51  ;;  %v1475_v56 = vsel %vm1471_vm11, %v1442_v7, %v1189_v34  ;;  %v4111_v7 = vld [vmem:[#allocation17_spill] sm:$0xff] }
 0x197   : > { %v1232_v48 = vpop.permute.xlu0 %1231  ;;  %v1508_v14 = vsel %vm1504_vm12, %v1475_v56, %v3784_v26 }
 0x198   : > { %v1516_v21 = vsel %vm1504_vm12, %v1483_v61, %v1232_v48  ;;  %v1302_v44 = vpop.permute.xlu1 %1301  ;;  %v1541_v53 = vsel %vm1537_vm13, %v1508_v14, %v1259_v54 }
 0x199   : > { %v1549_v1 = vsel %vm1537_vm13, %v1516_v21, %v1267_v40 }
 0x19a   : > { %v1582_v0 = vsel %vm1570_vm14, %v1549_v1, %v1302_v44 }
 0x19b   : > { %v1629_v2 = vunpack.c.l.b16 %v1582_v0  ;;  %v1630_v63 = vunpack.c.h.b16 %v1582_v0 }
 0x19d   : > { %1297 = vrot.lane.b32.xlu0 %v3283_v29, %s2734_s10  ;;  %v1661_v31 = vpack.c.b16 %v1629_v2, %v1629_v2  ;;  %v1662_v22 = vpack.c.b16 %v1630_v63, %v1630_v63  ;;  %v1312_v29 = vpop.permute.xlu2 %1311  ;;  %s2137_s10 = scalar_lea.hbm %s4046_s3, %s2477_s7 }
 0x19e   : > { %s2140_s18 = sshll.u32 %s2137_s10, 4  ;;  %s2141_s18 = int_to_ptr.hbm [resolvable:$true] %s2140_s18 }
 0x19f   : > { %1726 = vst.msk [vmem:[#allocation2 + $0x28] sm:$0xf] %vm1715_vm15, %v1661_v31  ;;  %v1294_v41 = vpop.permute.xlu0 %1293  ;;  %s2662_s19 = sshra.s32 %s2141_s18, 4  ;;  %s2663_s19 = int_to_ptr.hbm [resolvable:$true] %s2662_s19 }
 0x1a0   : > { %1727 = vst.msk [vmem:[#allocation2 + $0x2c] sm:$0xf] %vm1715_vm15, %v1662_v22  ;;  %v1574_v32 = vsel %vm1570_vm14, %v1541_v53, %v1294_v41  ;;  %v1180_v18 = vpop.permute.xlu1 %1179  ;;  %s2664_s21 = scalar_lea.hbm %s2663_s19, 128  ;;  %p2669_p1 = scmp.lt.s32.totalorder %s2663_s19, %s4046_s3 }
 0x1a1   : > { %v1621_v5 = vunpack.c.l.b16 %v1574_v32  ;;  %v1622_v36 = vunpack.c.h.b16 %v1574_v32  ;;  %v1468_v12 = vsel %vm1438_vm10, %v1435_v60, %v1180_v18  ;;  %p2665_p12 = scmp.ne.s32.totalorder %s2663_s19, %s2664_s21  ;;  %p2670_p2 = scmp.lt.s32.totalorder %s2668_s27, %s2664_s21 }
 0x1a3   : > { %v1653_v15 = vpack.c.b16 %v1621_v5, %v1621_v5  ;;  %v1654_v43 = vpack.c.b16 %v1622_v36, %v1622_v36  ;;  %p2666_p13 = pnand %p2665_p12, %p2797_p4  ;;  %p2671_p3 = por %p2670_p2, %p2669_p1 }
 0x1a5   : > { %1718 = vst.msk [vmem:[#allocation2 + $0x8] sm:$0xf] %vm1715_vm15, %v1653_v15  ;;  %v1164_v24 = vpop.permute.xlu2 %1163  ;;  %p2667_p0 = pneg %p2666_p13 }
 0x1a6   : > { %1719 = vst.msk [vmem:[#allocation2 + $0xc] sm:$0xf] %vm1715_vm15, %v1654_v43  ;;  %v1452_v8 = vsel %vm1438_vm10, %v3525_v52, %v1164_v24 }
 0x1a7   : > { %v1172_v26 = vpop.permute.xlu0 %1171  ;;  %v2464_v47 = vld [vmem:[#allocation2 + $0x28] sm:$0xff]  ;;  %p2672_p5 = pnand %p2671_p3, %p2667_p0 }
 0x1a8   : > { %v1242_v6 = vpop.permute.xlu1 %1241  ;;  %2425 = vmatmul.msk.bf16.gmra.mxu1 %vm1884_vm0, %v2464_v47  ;;  %v1460_v50 = vsel %vm1438_vm10, %v3635_v55, %v1172_v26  ;;  %v3908_v26 = vld [vmem:[%s4045_s2] ss:$0 sm:$0xff] }
 0x1a9   : > { %v1493_v49 = vsel %vm1471_vm11, %v1460_v50, %v1207_v13 }
 0x1aa   : > { %v1526_v62 = vsel %vm1504_vm12, %v1493_v49, %v1242_v6 }
 0x1ad   : > { %v2460_v40 = vld [vmem:[#allocation2 + $0x8] sm:$0xff]  ;;  %v1226_v16 = vpop.permute.xlu2 %1225 }
 0x1ae   : > { %2421 = vmatmul.msk.bf16.gmra.mxu0 %vm1884_vm0, %v2460_v40 }
 0x1af   : > { %v1215_v4 = vpop.permute.xlu0 %1214 }
 0x1b0   : > { %v1285_v10 = vpop.permute.xlu1 %1284  ;;  %v1501_v55 = vsel %vm1471_vm11, %v1468_v12, %v1215_v4 }
 0x1b1   : > { %v1534_v9 = vsel %vm1504_vm12, %v1501_v55, %v1250_v58 }
 0x1b2   : > { %v1567_v25 = vsel %vm1537_vm13, %v1534_v9, %v1285_v10 }
 0x1b5   : > { %v1269_v37 = vpop.permute.xlu2 %1268 }
 0x1b7   : > { %v1277_v28 = vpop.permute.xlu0 %1276 }
 0x1b8   : > { %v1559_v27 = vsel %vm1537_vm13, %v1526_v62, %v1277_v28  ;;  %v1156_v59 = vpop.permute.xlu1 %1155 }
 0x1b9   : > { %v1592_v42 = vsel %vm1570_vm14, %v1559_v27, %v1312_v29  ;;  %v1444_v58 = vsel %vm1438_vm10, %v4111_v7, %v1156_v59 }
 0x1ba   : > { %v1639_v23 = vunpack.c.l.b16 %v1592_v42  ;;  %v1640_v38 = vunpack.c.h.b16 %v1592_v42 }
 0x1bc   : > { %v1671_v17 = vpack.c.b16 %v1639_v23, %v1639_v23  ;;  %v1672_v11 = vpack.c.b16 %v1640_v38, %v1640_v38 }
 0x1bd   : > { %v3886_v54 = vpop.permute.xlu2 %1146 }
 0x1be   : > { %1736 = vst.msk [vmem:[#allocation2 + $0x50] sm:$0xf] %vm1715_vm15, %v1671_v17 }
 0x1bf   : > { %1737 = vst.msk [vmem:[#allocation2 + $0x54] sm:$0xf] %vm1715_vm15, %v1672_v11  ;;  %v1320_v57 = vpop.permute.xlu0 %1319 }
 0x1c0   : > { %v1600_v30 = vsel %vm1570_vm14, %v1567_v25, %v1320_v57  ;;  %v1199_v46 = vpop.permute.xlu1 %1198 }
 0x1c1   : > { %v1647_v19 = vunpack.c.l.b16 %v1600_v30  ;;  %v1648_v20 = vunpack.c.h.b16 %v1600_v30  ;;  %v1485_v61 = vsel %vm1471_vm11, %v1452_v8, %v1199_v46 }
 0x1c3   : > { %v1679_v35 = vpack.c.b16 %v1647_v19, %v1647_v19  ;;  %v1680_v45 = vpack.c.b16 %v1648_v20, %v1648_v20 }
 0x1c5   : > { %1744 = vst.msk [vmem:[#allocation2 + $0x70] sm:$0xf] %vm1715_vm15, %v1679_v35  ;;  %v1209_v22 = vpop.permute.xlu2 %1208 }
 0x1c6   : > { %1745 = vst.msk [vmem:[#allocation2 + $0x74] sm:$0xf] %vm1715_vm15, %v1680_v45  ;;  %v2469_v3 = vld [vmem:[#allocation2 + $0x50] sm:$0xff] }
 0x1c7   : > { %v1191_v34 = vpop.permute.xlu0 %1190  ;;  %2430 = vmatmul.msk.bf16.gmra.mxu2 %vm1884_vm0, %v2469_v3 }
 0x1c8   : > { %v1261_v13 = vpop.permute.xlu1 %1260  ;;  %v1477_v56 = vsel %vm1471_vm11, %v1444_v58, %v1191_v34 }
 0x1c9   : > { %v1510_v14 = vsel %vm1504_vm12, %v1477_v56, %v1226_v16 }
 0x1ca   : > { %v1543_v53 = vsel %vm1537_vm13, %v1510_v14, %v1261_v13 }
 0x1cd   : > { %v2473_v51 = vld [vmem:[#allocation2 + $0x70] sm:$0xff]  ;;  %v1252_v40 = vpop.permute.xlu2 %1251 }
 0x1ce   : > { %2434 = vmatmul.msk.bf16.gmra.mxu3 %vm1884_vm0, %v2473_v51 }
 0x1cf   : > { %v1234_v48 = vpop.permute.xlu0 %1233 }
 0x1d0   : > { %v1518_v21 = vsel %vm1504_vm12, %v1485_v61, %v1234_v48  ;;  %v1304_v44 = vpop.permute.xlu1 %1303 }
 0x1d1   : > { %v1551_v1 = vsel %vm1537_vm13, %v1518_v21, %v1269_v37  ;;  %v4112_v37 = vld [vmem:[#allocation15_spill] sm:$0xff] }
 0x1d2   : > { %v1584_v0 = vsel %vm1570_vm14, %v1551_v1, %v1304_v44  ;;  %v1437_v35 = vsel %vm1405_vm8, %v4112_v37, %v3886_v54 }
 0x1d3   : > { %v1631_v2 = vunpack.c.l.b16 %v1584_v0  ;;  %v1632_v63 = vunpack.c.h.b16 %v1584_v0 }
 0x1d5   : > { %v1663_v52 = vpack.c.b16 %v1631_v2, %v1631_v2  ;;  %v1664_v31 = vpack.c.b16 %v1632_v63, %v1632_v63  ;;  %v1314_v12 = vpop.permute.xlu2 %1313 }
 0x1d7   : > { %1728 = vst.msk [vmem:[#allocation2 + $0x30] sm:$0xf] %vm1715_vm15, %v1663_v52  ;;  %v1296_v41 = vpop.permute.xlu0 %1295 }
 0x1d8   : > { %1729 = vst.msk [vmem:[#allocation2 + $0x34] sm:$0xf] %vm1715_vm15, %v1664_v31  ;;  %v1576_v32 = vsel %vm1570_vm14, %v1543_v53, %v1296_v41  ;;  %v1182_v18 = vpop.permute.xlu1 %1181 }
 0x1d9   : > { %v1623_v5 = vunpack.c.l.b16 %v1576_v32  ;;  %v1624_v36 = vunpack.c.h.b16 %v1576_v32  ;;  %v1470_v45 = vsel %vm1438_vm10, %v1437_v35, %v1182_v18 }
 0x1da   : > { %v1986_v29 = vpop.f32.mrf.mxu2 }
 0x1db   : > { %v1655_v15 = vpack.c.b16 %v1623_v5, %v1623_v5  ;;  %v1656_v43 = vpack.c.b16 %v1624_v36, %v1624_v36  ;;  %v1987_v4 = vadd.f32 %v3908_v26, %v1986_v29 }
 0x1dd   : > { %1720 = vst.msk [vmem:[#allocation2 + $0x10] sm:$0xf] %vm1715_vm15, %v1655_v15  ;;  %v2042_v28 = vmax.f32 %v1987_v4, 0.0  ;;  %v1166_v51 = vpop.permute.xlu2 %1165 }
 0x1de   : > { %1721 = vst.msk [vmem:[#allocation2 + $0x14] sm:$0xf] %vm1715_vm15, %v1656_v43 }
 0x1df   : > { %v1174_v47 = vpop.permute.xlu0 %1173  ;;  %v2465_v6 = vld [vmem:[#allocation2 + $0x30] sm:$0xff] }
 0x1e0   : > { %v1244_v24 = vpop.permute.xlu1 %1243  ;;  %2426 = vmatmul.msk.bf16.gmra.mxu1 %vm1884_vm0, %v2465_v6  ;;  %v1462_v38 = vsel %vm1438_vm10, %v3620_v33, %v1174_v47 }
 0x1e1   : > { %v2006_v10 = vpop.f32.mrf.mxu3  ;;  %v1495_v9 = vsel %vm1471_vm11, %v1462_v38, %v1209_v22 }
 0x1e2   : > { %v1988_v50 = vpop.f32.mrf.mxu2  ;;  %v2007_v42 = vadd.f32 %v3908_v26, %v2006_v10  ;;  %v1528_v57 = vsel %vm1504_vm12, %v1495_v9, %v1244_v24  ;;  %v1454_v24 = vsel %vm1438_vm10, %v3616_v39, %v1166_v51 }
 0x1e3   : > { %v1989_v49 = vadd.f32 %v3908_v26, %v1988_v50 }
 0x1e4   : > { %v2050_v17 = vmax.f32 %v2007_v42, 0.0 }
 0x1e5   : > { %v2461_v62 = vld [vmem:[#allocation2 + $0x10] sm:$0xff]  ;;  %v2043_v16 = vmax.f32 %v1989_v49, 0.0  ;;  %v1228_v18 = vpop.permute.xlu2 %1227 }
 0x1e6   : > { %2422 = vmatmul.msk.bf16.gmra.mxu0 %vm1884_vm0, %v2461_v62 }
 0x1e7   : > { %v1217_v27 = vpop.permute.xlu0 %1216  ;;  %v2521_v59 = vpack.c.bf16 %v2043_v16, %v2042_v28  ;;  %v4113_v16 = vld [vmem:[#allocation12_spill] sm:$0xff] }
 0x1e8   : > { %v1287_v60 = vpop.permute.xlu1 %1286  ;;  %v1503_v13 = vsel %vm1471_vm11, %v1470_v45, %v1217_v27 }
 0x1e9   : > { %2565 = vst [vmem:[%s3918_s6 + $0x40] sm:$0xff] %v2521_v59   ;;  %v2008_v23 = vpop.f32.mrf.mxu3  ;;  %v1536_v44 = vsel %vm1504_vm12, %v1503_v13, %v1252_v40 }
 0x1ea   : > { %v2009_v55 = vadd.f32 %v3908_v26, %v2008_v23  ;;  %v1569_v1 = vsel %vm1537_vm13, %v1536_v44, %v1287_v60 }
 0x1ec   : > { %v2051_v11 = vmax.f32 %v2009_v55, 0.0 }
 0x1ed   : > { %v1966_v25 = vpop.f32.mrf.mxu1  ;;  %v1271_v4 = vpop.permute.xlu2 %1270 }
 0x1ee   : > { %v2541_v30 = vpack.c.bf16 %v2051_v11, %v2050_v17  ;;  %v1967_v21 = vadd.f32 %v3908_v26, %v1966_v25 }
 0x1ef   : > { %v1279_v46 = vpop.permute.xlu0 %1278 }
 0x1f0   : > { %v1561_v19 = vsel %vm1537_vm13, %v1528_v57, %v1279_v46  ;;  %v1158_v20 = vpop.permute.xlu1 %1157  ;;  %2569 = vst [vmem:[%s3918_s6 + $0x60] sm:$0xff] %v2541_v30   ;;  %v2034_v2 = vmax.f32 %v1967_v21, 0.0 }
 0x1f1   : > { %v1594_v33 = vsel %vm1570_vm14, %v1561_v19, %v1314_v12  ;;  %v1446_v27 = vsel %vm1438_vm10, %v4113_v16, %v1158_v20 }
 0x1f2   : > { %v1641_v3 = vunpack.c.l.b16 %v1594_v33  ;;  %v1642_v34 = vunpack.c.h.b16 %v1594_v33 }
 0x1f3   : > { %v1946_v48 = vpop.f32.mrf.mxu0 }
 0x1f4   : > { %v1673_v8 = vpack.c.b16 %v1641_v3, %v1641_v3  ;;  %v1674_v61 = vpack.c.b16 %v1642_v34, %v1642_v34  ;;  %v1947_v22 = vadd.f32 %v3908_v26, %v1946_v48 }
 0x1f5   : > { %v1968_v54 = vpop.f32.mrf.mxu1 }
 0x1f6   : > { %1738 = vst.msk [vmem:[#allocation2 + $0x58] sm:$0xf] %vm1715_vm15, %v1673_v8  ;;  %v1969_v58 = vadd.f32 %v3908_v26, %v1968_v54  ;;  %v2026_v15 = vmax.f32 %v1947_v22, 0.0 }
 0x1f7   : > { %1739 = vst.msk [vmem:[#allocation2 + $0x5c] sm:$0xf] %vm1715_vm15, %v1674_v61  ;;  %v1322_v7 = vpop.permute.xlu0 %1321 }
 0x1f8   : > { %v1602_v0 = vsel %vm1570_vm14, %v1569_v1, %v1322_v7  ;;  %v1201_v56 = vpop.permute.xlu1 %1200  ;;  %v2035_v31 = vmax.f32 %v1969_v58, 0.0 }
 0x1f9   : > { %v1649_v63 = vunpack.c.l.b16 %v1602_v0  ;;  %v1650_v52 = vunpack.c.h.b16 %v1602_v0  ;;  %v1487_v10 = vsel %vm1471_vm11, %v1454_v24, %v1201_v56 }
 0x1fa   : > { %v2501_v41 = vpack.c.bf16 %v2035_v31, %v2034_v2 }
 0x1fb   : > { %v1681_v14 = vpack.c.b16 %v1649_v63, %v1649_v63  ;;  %v1682_v53 = vpack.c.b16 %v1650_v52, %v1650_v52  ;;  %v1948_v32 = vpop.f32.mrf.mxu0 }
 0x1fc   : > { %v1949_v5 = vadd.f32 %v3908_v26, %v1948_v32  ;;  %2561 = vst [vmem:[%s3918_s6 + $0x20] sm:$0xff] %v2501_v41  }
 0x1fd   : > { %1746 = vst.msk [vmem:[#allocation2 + $0x78] sm:$0xf] %vm1715_vm15, %v1681_v14 }
 0x1fe   : > { %1747 = vst.msk [vmem:[#allocation2 + $0x7c] sm:$0xf] %vm1715_vm15, %v1682_v53  ;;  %v2470_v36 = vld [vmem:[#allocation2 + $0x58] sm:$0xff]  ;;  %v2027_v43 = vmax.f32 %v1949_v5, 0.0 }
 0x1ff   : > { %v1193_v29 = vpop.permute.xlu0 %1192  ;;  %2431 = vmatmul.msk.bf16.gmra.mxu2 %vm1884_vm0, %v2470_v36 }
 0x200   : > { %v1263_v47 = vpop.permute.xlu1 %1262  ;;  %v2481_v6 = vpack.c.bf16 %v2027_v43, %v2026_v15  ;;  %v1479_v60 = vsel %vm1471_vm11, %v1446_v27, %v1193_v29 }
 0x201   : > { %v1512_v38 = vsel %vm1504_vm12, %v1479_v60, %v1228_v18 }
 0x202   : > { %2482 = vst [vmem:[%s3918_s6] sm:$0xff] %v2481_v6   ;;  %v1545_v55 = vsel %vm1537_vm13, %v1512_v38, %v1263_v47 }
 0x205   : > { %v2474_v40 = vld [vmem:[#allocation2 + $0x78] sm:$0xff] }
 0x206   : > { %2435 = vmatmul.msk.bf16.gmra.mxu3 %vm1884_vm0, %v2474_v40 }
 0x207   : > { %v1236_v50 = vpop.permute.xlu0 %1235 }
 0x208   : > { %v1520_v49 = vsel %vm1504_vm12, %v1487_v10, %v1236_v50  ;;  %v1306_v62 = vpop.permute.xlu1 %1305 }
 0x209   : > { %v1553_v28 = vsel %vm1537_vm13, %v1520_v49, %v1271_v4 }
 0x20a   : > { %v1586_v59 = vsel %vm1570_vm14, %v1553_v28, %v1306_v62 }
 0x20b   : > { %v1633_v42 = vunpack.c.l.b16 %v1586_v59  ;;  %v1634_v39 = vunpack.c.h.b16 %v1586_v59 }
 0x20d   : > { %v1665_v12 = vpack.c.b16 %v1633_v42, %v1633_v42  ;;  %v1666_v23 = vpack.c.b16 %v1634_v39, %v1634_v39 }
 0x20f   : > { %1730 = vst.msk [vmem:[#allocation2 + $0x38] sm:$0xf] %vm1715_vm15, %v1665_v12  ;;  %v1298_v17 = vpop.permute.xlu0 %1297 }
 0x210   : > { %1731 = vst.msk [vmem:[#allocation2 + $0x3c] sm:$0xf] %vm1715_vm15, %v1666_v23  ;;  %v1578_v11 = vsel %vm1570_vm14, %v1545_v55, %v1298_v17 }
 0x211   : > { %v1625_v9 = vunpack.c.l.b16 %v1578_v11  ;;  %v1626_v25 = vunpack.c.h.b16 %v1578_v11 }
 0x212   : > { %v1991_v46 = vpop.f32.mrf.mxu2 }
 0x213   : > { %v1657_v57 = vpack.c.b16 %v1625_v9, %v1625_v9  ;;  %v1658_v30 = vpack.c.b16 %v1626_v25, %v1626_v25  ;;  %v1992_v20 = vadd.f32 %v3908_v26, %v1991_v46 }
 0x215   : > { %1722 = vst.msk [vmem:[#allocation2 + $0x18] sm:$0xf] %vm1715_vm15, %v1657_v57  ;;  %v2044_v3 = vmax.f32 %v1992_v20, 0.0 }
 0x216   : > { %1723 = vst.msk [vmem:[#allocation2 + $0x1c] sm:$0xf] %vm1715_vm15, %v1658_v30 }
 0x217   : > { %v2466_v19 = vld [vmem:[#allocation2 + $0x38] sm:$0xff] }
 0x218   : > { %2427 = vmatmul.msk.bf16.gmra.mxu1 %vm1884_vm0, %v2466_v19 }
 0x219   : > { %v2011_v37 = vpop.f32.mrf.mxu3 }
 0x21a   : > { %v1993_v35 = vpop.f32.mrf.mxu2  ;;  %v2012_v51 = vadd.f32 %v3908_v26, %v2011_v37 }
 0x21b   : > { %v1994_v33 = vadd.f32 %v3908_v26, %v1993_v35 }
 0x21c   : > { %v2052_v48 = vmax.f32 %v2012_v51, 0.0 }
 0x21d   : > { %v2462_v45 = vld [vmem:[#allocation2 + $0x18] sm:$0xff]  ;;  %v2045_v34 = vmax.f32 %v1994_v33, 0.0 }
 0x21e   : > { %2423 = vmatmul.msk.bf16.gmra.mxu0 %vm1884_vm0, %v2462_v45 }
 0x21f   : > { %v2526_v13 = vpack.c.bf16 %v2045_v34, %v2044_v3 }
 0x221   : > { %2566 = vst [vmem:[%s3918_s6 + $0x48] sm:$0xff] %v2526_v13   ;;  %v2013_v8 = vpop.f32.mrf.mxu3 }
 0x222   : > { %v2014_v61 = vadd.f32 %v3908_v26, %v2013_v8 }
 0x224   : > { %v2053_v21 = vmax.f32 %v2014_v61, 0.0 }
 0x225   : > { %v1971_v44 = vpop.f32.mrf.mxu1 }
 0x226   : > { %v2546_v54 = vpack.c.bf16 %v2053_v21, %v2052_v48  ;;  %v1972_v7 = vadd.f32 %v3908_v26, %v1971_v44 }
 0x228   : > { %2570 = vst [vmem:[%s3918_s6 + $0x68] sm:$0xff] %v2546_v54   ;;  %v2036_v56 = vmax.f32 %v1972_v7, 0.0 }
 0x22b   : > { %v1951_v1 = vpop.f32.mrf.mxu0 }
 0x22c   : > { %v1952_v63 = vadd.f32 %v3908_v26, %v1951_v1 }
 0x22d   : > { %v1973_v58 = vpop.f32.mrf.mxu1 }
 0x22e   : > { %v1974_v0 = vadd.f32 %v3908_v26, %v1973_v58  ;;  %v2028_v14 = vmax.f32 %v1952_v63, 0.0 }
 0x230   : > { %v2037_v2 = vmax.f32 %v1974_v0, 0.0 }
 0x232   : > { %v2506_v52 = vpack.c.bf16 %v2037_v2, %v2036_v56 }
 0x233   : > { %v1953_v31 = vpop.f32.mrf.mxu0 }
 0x234   : > { %v1954_v22 = vadd.f32 %v3908_v26, %v1953_v31  ;;  %2562 = vst [vmem:[%s3918_s6 + $0x28] sm:$0xff] %v2506_v52  }
 0x236   : > { %v2029_v53 = vmax.f32 %v1954_v22, 0.0 }
 0x238   : > { %v2486_v41 = vpack.c.bf16 %v2029_v53, %v2028_v14 }
 0x23a   : > { %2558 = vst [vmem:[%s3918_s6 + $0x8] sm:$0xff] %v2486_v41  }
 0x24a   : > { %v1996_v32 = vpop.f32.mrf.mxu2 }
 0x24b   : > { %v1997_v18 = vadd.f32 %v3908_v26, %v1996_v32 }
 0x24d   : > { %v2046_v43 = vmax.f32 %v1997_v18, 0.0 }
 0x251   : > { %v2016_v5 = vpop.f32.mrf.mxu3 }
 0x252   : > { %v1998_v36 = vpop.f32.mrf.mxu2  ;;  %v2017_v6 = vadd.f32 %v3908_v26, %v2016_v5 }
 0x253   : > { %v1999_v15 = vadd.f32 %v3908_v26, %v1998_v36 }
 0x254   : > { %v2054_v4 = vmax.f32 %v2017_v6, 0.0 }
 0x255   : > { %v2047_v29 = vmax.f32 %v1999_v15, 0.0 }
 0x257   : > { %v2531_v47 = vpack.c.bf16 %v2047_v29, %v2046_v43 }
 0x259   : > { %2567 = vst [vmem:[%s3918_s6 + $0x50] sm:$0xff] %v2531_v47   ;;  %v2018_v40 = vpop.f32.mrf.mxu3 }
 0x25a   : > { %v2019_v24 = vadd.f32 %v3908_v26, %v2018_v40 }
 0x25c   : > { %v2055_v10 = vmax.f32 %v2019_v24, 0.0 }
 0x25d   : > { %v1976_v50 = vpop.f32.mrf.mxu1 }
 0x25e   : > { %v2551_v49 = vpack.c.bf16 %v2055_v10, %v2054_v4  ;;  %v1977_v28 = vadd.f32 %v3908_v26, %v1976_v50 }
 0x260   : > { %2571 = vst [vmem:[%s3918_s6 + $0x70] sm:$0xff] %v2551_v49   ;;  %v2038_v59 = vmax.f32 %v1977_v28, 0.0 }
 0x263   : > { %v1956_v62 = vpop.f32.mrf.mxu0 }
 0x264   : > { %v1957_v42 = vadd.f32 %v3908_v26, %v1956_v62 }
 0x265   : > { %v1978_v16 = vpop.f32.mrf.mxu1 }
 0x266   : > { %v1979_v27 = vadd.f32 %v3908_v26, %v1978_v16  ;;  %v2030_v38 = vmax.f32 %v1957_v42, 0.0 }
 0x268   : > { %v2039_v60 = vmax.f32 %v1979_v27, 0.0 }
 0x26a   : > { %v2511_v39 = vpack.c.bf16 %v2039_v60, %v2038_v59 }
 0x26b   : > { %v1958_v12 = vpop.f32.mrf.mxu0 }
 0x26c   : > { %v1959_v23 = vadd.f32 %v3908_v26, %v1958_v12  ;;  %2563 = vst [vmem:[%s3918_s6 + $0x30] sm:$0xff] %v2511_v39  }
 0x26e   : > { %v2031_v55 = vmax.f32 %v1959_v23, 0.0 }
 0x270   : > { %v2491_v17 = vpack.c.bf16 %v2031_v55, %v2030_v38 }
 0x272   : > { %2559 = vst [vmem:[%s3918_s6 + $0x10] sm:$0xff] %v2491_v17  }
 0x282   : > { %v2001_v11 = vpop.f32.mrf.mxu2 }
 0x283   : > { %v2002_v9 = vadd.f32 %v3908_v26, %v2001_v11 }
 0x285   : > { %v2048_v46 = vmax.f32 %v2002_v9, 0.0 }
 0x289   : > { %v2021_v25 = vpop.f32.mrf.mxu3 }
 0x28a   : > { %v2003_v57 = vpop.f32.mrf.mxu2  ;;  %v2022_v37 = vadd.f32 %v3908_v26, %v2021_v25 }
 0x28b   : > { %v2004_v30 = vadd.f32 %v3908_v26, %v2003_v57 }
 0x28c   : > { %v2056_v45 = vmax.f32 %v2022_v37, 0.0 }
 0x28d   : > { %v2049_v19 = vmax.f32 %v2004_v30, 0.0 }
 0x28f   : > { %v2536_v20 = vpack.c.bf16 %v2049_v19, %v2048_v46 }
 0x291   : > { %2568 = vst [vmem:[%s3918_s6 + $0x58] sm:$0xff] %v2536_v20   ;;  %v2023_v35 = vpop.f32.mrf.mxu3 }
 0x292   : > { %v2024_v33 = vadd.f32 %v3908_v26, %v2023_v35 }
 0x294   : > { %v2057_v3 = vmax.f32 %v2024_v33, 0.0 }
 0x295   : > { %v1981_v34 = vpop.f32.mrf.mxu1 }
 0x296   : > { %v2556_v13 = vpack.c.bf16 %v2057_v3, %v2056_v45  ;;  %v1982_v8 = vadd.f32 %v3908_v26, %v1981_v34 }
 0x298   : > { %2572 = vst [vmem:[%s3918_s6 + $0x78] sm:$0xff] %v2556_v13   ;;  %v2040_v21 = vmax.f32 %v1982_v8, 0.0 }
 0x29b   : > { %v1961_v51 = vpop.f32.mrf.mxu0 }
 0x29c   : > { %v1962_v54 = vadd.f32 %v3908_v26, %v1961_v51 }
 0x29d   : > { %v1983_v61 = vpop.f32.mrf.mxu1 }
 0x29e   : > { %v1984_v48 = vadd.f32 %v3908_v26, %v1983_v61  ;;  %v2032_v0 = vmax.f32 %v1962_v54, 0.0 }
 0x2a0   : > { %v2041_v44 = vmax.f32 %v1984_v48, 0.0 }
 0x2a2   : > { %v2516_v1 = vpack.c.bf16 %v2041_v44, %v2040_v21 }
 0x2a3   : > { %v1963_v7 = vpop.f32.mrf.mxu0 }
 0x2a4   : > { %v1964_v58 = vadd.f32 %v3908_v26, %v1963_v7  ;;  %2564 = vst [vmem:[%s3918_s6 + $0x38] sm:$0xff] %v2516_v1  }
 0x2a6   : > { %v2033_v56 = vmax.f32 %v1964_v58, 0.0 }
 0x2a8   : > { %v2496_v2 = vpack.c.bf16 %v2033_v56, %v2032_v0 }
 0x2aa   : > { %2560 = vst [vmem:[%s3918_s6 + $0x18] sm:$0xff] %v2496_v2  }
 0x2ab   : > { %2675 = shalt.err (!%p2672_p5)
}
 0x2ac   : > { %s2736_s30 = smov 64  }
 0x2ad   : > { %2583 = dma.vmem_to_hbm [thread:$0]  (%p2797_p4), %s2139_s11, 2048, %s2141_s18, %s2123_s15, %s2736_s30, %s2736_s30, %s2728_s4  }
 0x2ae PF: > { %p2589_p6 = scmp.ge.s32.totalorder %s2726_s17, 2  ;;  %s2155_s5 = sand.u32 1, %s2706_s12  }
 0x2af   : > { %s2156_s6 = scalar_lea.sflag [#allocation4], %s2155_s5 }
 0x2b0   : > { %p2586_p7 = pnand %p2589_p6, %p2804_p8 }
 0x2b2   : > { %p2587_p9 = pneg %p2586_p7 }
 0x2b4   : > { %2701 = dma.done.wait (%p2587_p9), %s2156_s6, 2048  }
 0x2b5   : > { %2703 = vsyncadd (%p2587_p9), %s2156_s6, 4294965248  ;;  %s16_s17 = sadd.s32 1, %s2726_s17   ;;  %s4114_s12 = smov %s2710_s13 }
 0x2b6   : > { %p13_p10 = scmp.ge.s32.totalorder %s16_s17, 4   ;;  %s4115_s13 = smov %s2714_s14 }
 0x2b7   : > { %s4116_s14 = smov %s2810_s25  ;;  %s4117_s15 = smov %s2722_s16 }
 0x2b8   : > { %s4118_s16 = smov %s4120_s20  ;;  %15 = sbr.rel (!%p13_p10) target bundleno = 4 (0x4), region = 78 }
 0x2bd   :  { %2162 = vsyncpa [#allocation4], 1 }
 0x2be   :  { %2164 = vsyncpa [#allocation4 + $0x1], 1 }

// kernel: tpu_custom_call.1
= control target key start
LH: loop header
LB: loop body
LE: loop exit
PB: predicated region body
PF: predicated region fallthrough
CT: control target
= control target key end

     0   :  { %8 = vsyncpa [#allocation4], 0  ;;  %s4041_s0 = inlined_call_operand.vmem [shape: bf16[2,18,18,4], index: 0, kind: input, shape index: {}]   ;;  %s4042_s1 = inlined_call_operand.vmem [shape: bf16[36,128], index: 1, kind: input, shape index: {}]   ;;  %s4043_s2 = inlined_call_operand.vmem [shape: f32[1,128], index: 2, kind: input, shape index: {}]   ;;  %s4044_s3 = inlined_call_operand.hbm [shape: bf16[2,256,128], index: 3, kind: output, shape index: {}]  }
   0x1   :  { %10 = vsyncpa [#allocation4 + $0x1], 0  ;;  %s2755_s12 = smov 0   ;;  %s2757_s13 = smov 0  }
   0x2   :  { %s2759_s14 = smov 0   ;;  %s2761_s15 = smov 0  }
   0x3   :  { %s2763_s16 = smov 0   ;;  %s2765_s17 = smov 0  }
   0x4 LB: > { %s2247_s18 = sadd.s32 4294967295, %s2724_s17   ;;  %s2248_s19 = sadd.s32 4294967294, %s2724_s17   ;;  %s2724_s17 = sphi %s2765_s17, %s16_s17   ;;  %s2720_s16 = sphi %s2763_s16, %s4116_s16   ;;  %s2716_s15 = sphi %s2761_s15, %s4115_s15   ;;  %s2712_s14 = sphi %s2759_s14, %s4114_s14   ;;  %s2708_s13 = sphi %s2757_s13, %s4113_s13   ;;  %s2704_s12 = sphi %s2755_s12, %s4112_s12  }
   0x5   : > { %s35_s20 = sadd.s32 1, %s2720_s16  ;;  %s124_s21 = sadd.s32 1, %s2712_s14 }
   0x6   : > { %p37_p0 = scmp.ge.s32.totalorder %s35_s20, 2  ;;  %p134_p1 = scmp.ne.s32.totalorder %s2712_s14, %s2708_s13 }
   0x7   : > { %p135_p2 = scmp.eq.s32.totalorder %s2247_s18, 1  ;;  %p140_p3 = scmp.ne.s32.totalorder %s2708_s13, %s2704_s12 }
   0x8   : > { %s4118_s20 = smov (%p37_p0, %s35_s20), 0  ;;  %p141_p5 = scmp.eq.s32.totalorder %s2248_s19, 1 }
   0x9   : > { %p2795_p4 = por %p135_p2, %p134_p1  ;;  %s117_s23 = ssub.s32 %s2720_s16, %s4118_s20 }
   0xa   : > { %p2253_p6 = scmp.ge.s32.totalorder %s2724_s17, 1  ;;  %p122_p7 = scmp.eq.s32.totalorder %s117_s23, 0 }
   0xb   : > { %p2802_p8 = por %p141_p5, %p140_p3  ;;  %p180_p9 = scmp.lt.s32.totalorder %s2724_s17, 3 }
   0xc   : > { %s2808_s25 = scalar_select %p122_p7, %s2712_s14, %s124_s21  }
   0xd   : > { %p181_p10 = pnand %p2253_p6, %p180_p9 }
   0xf   : > { %184 = sbr.rel (%p181_p10) target bundleno = 686 (0x2ae), region = 32 }
  0x14   : > { %p211_p11 = scmp.lt.s32.totalorder %s2716_s15, 1  ;;  %vm287_vm0 = vsmask.f32 3328  ;;  %vm288_vm1 = vsmask.f32 7440  ;;  %s2726_s4 = smov 4  }
  0x15   : > { %vm2853_vm2 = vmor %vm287_vm0, %vm288_vm1  ;;  %vm722_vm3 = vcmask 1042432   ;;  %vm723_vm4 = vcmask 1046532   ;;  %s2727_s5 = smov 8   ;;  %s2728_s6 = smov 12   ;;  %vm1323_vm6 = vcmask 31744   ;;  %vm1372_vm7 = vcmask 64512  }
  0x16   : > { %s212_s26 = scalar_select %p211_p11, %s2716_s15, 1  ;;  %vm3140_vm5 = vmor %vm722_vm3, %vm723_vm4  ;;  %vm1405_vm8 = vcmask 97280   ;;  %vm1933_vm9 = vcmask 1041408   ;;  %vm1438_vm10 = vcmask 130048   ;;  %vm1471_vm11 = vcmask 162816  }
  0x17   : > { %s2729_s7 = smov 20   ;;  %s2730_s8 = smov 16   ;;  %vm1504_vm12 = vcmask 195584   ;;  %vm1537_vm13 = vcmask 228352   ;;  %vm1570_vm14 = vcmask 261120   ;;  %vm1715_vm15 = vcmask 289792  }
  0x18   : > { %s2580_s27 = smul.u32 216, %s212_s26  ;;  %s2731_s9 = smov 24   ;;  %vm1884_vm0 = vcmask 293888  }
  0x19   : > { %s2732_s10 = smov 32   ;;  %s2733_s11 = smov 28  }
  0x1a   : > { %s2815_s30 = scalar_lea.vmem %s4041_s0, %s2580_s27  ;;  %s2666_s27 = scalar_lea.hbm %s4044_s3, 256 }
  0x1b   : > { %v2818_v0 = vld [vmem:[%s2815_s30 + $0x30] sm:$0xf]  ;;  %v2821_v1 = vld [vmem:[%s2815_s30 + $0x34] sm:$0xf]  ;;  %v2824_v2 = vld [vmem:[%s2815_s30 + $0x38] sm:$0x1] }
  0x1c   : > { %v387_v3 = vshrl.u32 %v2818_v0, 16  ;;  %v390_v4 = vshll.u32 %v2818_v0, 16  ;;  %v396_v5 = vshll.u32 %v2821_v1, 16  ;;  %v400_v6 = vshrl.u32 %v2821_v1, 16  ;;  %v2831_v7 = vld [vmem:[%s2815_s30 + $0x18] sm:$0xf] }
  0x1d   : > { %v406_v8 = vshll.u32 %v2824_v2, 16  ;;  %v2835_v9 = vld [vmem:[%s2815_s30 + $0x1c] sm:$0xf]  ;;  %v2838_v10 = vld [vmem:[%s2815_s30 + $0x20] sm:$0x1]  ;;  %v339_v11 = vshrl.u32 %v2831_v7, 16 }
  0x1e   : > { %v389_v12 = vrot.slane %v387_v3, 4  ;;  %v392_v13 = vrot.slane %v390_v4, 5  ;;  %v398_v14 = vrot.slane %v396_v5, 5  ;;  %v402_v15 = vrot.slane %v400_v6, 4  ;;  %v2842_v16 = vld [vmem:[%s2815_s30] sm:$0xf] }
  0x1f   : > { %v408_v17 = vrot.slane %v406_v8, 5  ;;  %v341_v18 = vrot.slane %v339_v11, 4  ;;  %v342_v19 = vshll.u32 %v2831_v7, 16  ;;  %v348_v20 = vshll.u32 %v2835_v9, 16  ;;  %v2849_v25 = vld [vmem:[%s2815_s30 + $0x4] sm:$0xf] }
  0x20   : > { %v393_v21 = vor.u32 %v392_v13, %v389_v12  ;;  %v403_v22 = vor.u32 %v402_v15, %v398_v14  ;;  %v352_v23 = vshrl.u32 %v2835_v9, 16  ;;  %v358_v24 = vshll.u32 %v2838_v10, 16  ;;  %v2860_v36 = vld [vmem:[%s2815_s30 + $0x8] sm:$0x1]  ;;  %v2869_v44 = vld [vmem:[%s2815_s30 + $0x3c] sm:$0xf] }
  0x21   : > { %v344_v27 = vrot.slane %v342_v19, 5  ;;  %v350_v28 = vrot.slane %v348_v20, 5  ;;  %v291_v29 = vshrl.u32 %v2842_v16, 16  ;;  %v294_v30 = vshll.u32 %v2842_v16, 16  ;;  %v2877_v56 = vld [vmem:[%s2815_s30 + $0x40] sm:$0xf] }
  0x22   : > { %v394_v31 = vrot.slane %v393_v21, 4  ;;  %v404_v32 = vrot.slane %v403_v22, 4  ;;  %v354_v33 = vrot.slane %v352_v23, 4  ;;  %v360_v34 = vrot.slane %v358_v24, 5  ;;  %v2883_v62 = vld [vmem:[%s2815_s30 + $0x44] sm:$0x1] }
  0x23   : > { %v345_v35 = vor.u32 %v344_v27, %v341_v18  ;;  %v293_v37 = vrot.slane %v291_v29, 4  ;;  %v296_v38 = vrot.slane %v294_v30, 5  ;;  %v300_v39 = vshll.u32 %v2849_v25, 16  ;;  %v2886_v63 = vld [vmem:[%s2815_s30 + $0x24] sm:$0xf] }
  0x24   : > { %v399_v40 = vsel %vm2853_vm2, %v394_v31, %v398_v14  ;;  %v409_v41 = vsel %vm2853_vm2, %v404_v32, %v408_v17  ;;  %v355_v42 = vor.u32 %v354_v33, %v350_v28  ;;  %v304_v43 = vshrl.u32 %v2849_v25, 16  ;;  %v2896_v14 = vld [vmem:[%s2815_s30 + $0x28] sm:$0xf]  ;;  %v2902_v19 = vld [vmem:[%s2815_s30 + $0x2c] sm:$0x1] }
  0x25   : > { %v961_v45 = vunpack.c.l.b16 %v399_v40  ;;  %v962_v46 = vunpack.c.l.b16 %v409_v41  ;;  %v346_v47 = vrot.slane %v345_v35, 4  ;;  %v297_v48 = vor.u32 %v296_v38, %v293_v37  ;;  %v2909_v27 = vld [vmem:[%s2815_s30 + $0xc] sm:$0xf]  ;;  %v2917_v40 = vld [vmem:[%s2815_s30 + $0x10] sm:$0xf] }
  0x26   : > { %v356_v49 = vrot.slane %v355_v42, 4  ;;  %v302_v50 = vrot.slane %v300_v39, 5  ;;  %v306_v51 = vrot.slane %v304_v43, 4  ;;  %v310_v52 = vshll.u32 %v2860_v36, 16 }
  0x27   : > { %v2872_v53 = vpack.c.b16 %v962_v46, %v961_v45  ;;  %v351_v54 = vsel %vm2853_vm2, %v346_v47, %v350_v28  ;;  %v298_v55 = vrot.slane %v297_v48, 4  ;;  %v411_v57 = vshrl.u32 %v2869_v44, 16  ;;  %v2921_v47 = vld [vmem:[%s2815_s30 + $0x14] sm:$0x1] }
  0x28   : > { %v361_v58 = vsel %vm2853_vm2, %v356_v49, %v360_v34  ;;  %v957_v59 = vunpack.c.l.b16 %v351_v54  ;;  %v307_v60 = vor.u32 %v306_v51, %v302_v50  ;;  %v312_v61 = vrot.slane %v310_v52, 5  ;;  %v2928_v52 = vld [vmem:[%s2815_s30 + $0x60] sm:$0xf] }
  0x29   : > { %4074 = vst [vmem:[#allocation6_spill] sm:$0xff] %v2872_v53  ;;  %1009 = vrot.lane.b32.xlu2 %v2872_v53, %s2726_s4  ;;  %v958_v3 = vunpack.c.l.b16 %v361_v58  ;;  %v303_v4 = vsel %vm2853_vm2, %v298_v55, %v302_v50  ;;  %v413_v5 = vrot.slane %v411_v57, 4  ;;  %v414_v6 = vshll.u32 %v2869_v44, 16 }
  0x2a   : > { %v308_v8 = vrot.slane %v307_v60, 4  ;;  %v953_v11 = vunpack.c.l.b16 %v303_v4  ;;  %v420_v12 = vshll.u32 %v2877_v56, 16  ;;  %v424_v13 = vshrl.u32 %v2877_v56, 16 }
  0x2b   : > { %v2898_v15 = vpack.c.b16 %v958_v3, %v957_v59  ;;  %v416_v17 = vrot.slane %v414_v6, 5  ;;  %v430_v18 = vshll.u32 %v2883_v62, 16  ;;  %v363_v20 = vshrl.u32 %v2886_v63, 16 }
  0x2c   : > { %v313_v21 = vsel %vm2853_vm2, %v308_v8, %v312_v61  ;;  %v422_v22 = vrot.slane %v420_v12, 5  ;;  %v426_v23 = vrot.slane %v424_v13, 4  ;;  %v366_v24 = vshll.u32 %v2886_v63, 16  ;;  %v2938_v8 = vld [vmem:[%s2815_s30 + $0x64] sm:$0xf] }
  0x2d   : > { %4075 = vst [vmem:[#allocation7_spill] sm:$0xff] %v2898_v15  ;;  %1005 = vrot.lane.b32.xlu1 %v2898_v15, %s2726_s4  ;;  %v954_v28 = vunpack.c.l.b16 %v313_v21  ;;  %v417_v29 = vor.u32 %v416_v17, %v413_v5  ;;  %v432_v30 = vrot.slane %v430_v18, 5  ;;  %v365_v31 = vrot.slane %v363_v20, 4  ;;  %v2944_v20 = vld [vmem:[%s2815_s30 + $0x68] sm:$0x1] }
  0x2e   : > { %v427_v32 = vor.u32 %v426_v23, %v422_v22  ;;  %v368_v33 = vrot.slane %v366_v24, 5  ;;  %v372_v34 = vshll.u32 %v2896_v14, 16  ;;  %v376_v35 = vshrl.u32 %v2896_v14, 16  ;;  %v2947_v21 = vld [vmem:[%s2815_s30 + $0x54] sm:$0xf] }
  0x2f   : > { %v985_v37 = vpack.c.b16 %v954_v28, %v953_v11  ;;  %v418_v38 = vrot.slane %v417_v29, 4  ;;  %v382_v39 = vshll.u32 %v2902_v19, 16  ;;  %v315_v41 = vshrl.u32 %v2909_v27, 16  ;;  %v3081_v15 = vld [vmem:[%s2815_s30 + $0x9c] sm:$0xf] }
  0x30   : > { %v428_v42 = vrot.slane %v427_v32, 4  ;;  %v369_v43 = vor.u32 %v368_v33, %v365_v31  ;;  %v374_v45 = vrot.slane %v372_v34, 5  ;;  %v378_v46 = vrot.slane %v376_v35, 4 }
  0x31   : > { %1001 = vrot.lane.b32.xlu0 %v985_v37, %s2726_s4  ;;  %v423_v48 = vsel %vm2853_vm2, %v418_v38, %v422_v22  ;;  %v384_v49 = vrot.slane %v382_v39, 5  ;;  %v317_v50 = vrot.slane %v315_v41, 4  ;;  %v318_v51 = vshll.u32 %v2909_v27, 16  ;;  %v2958_v37 = vld [vmem:[%s2815_s30 + $0x58] sm:$0xf] }
  0x32   : > { %v433_v54 = vsel %vm2853_vm2, %v428_v42, %v432_v30  ;;  %v963_v55 = vunpack.c.l.b16 %v423_v48  ;;  %v370_v57 = vrot.slane %v369_v43, 4  ;;  %v379_v58 = vor.u32 %v378_v46, %v374_v45 }
  0x33   : > { %v964_v59 = vunpack.c.l.b16 %v433_v54  ;;  %v320_v60 = vrot.slane %v318_v51, 5  ;;  %v324_v61 = vshll.u32 %v2917_v40, 16  ;;  %v328_v3 = vshrl.u32 %v2917_v40, 16 }
  0x34   : > { %v375_v4 = vsel %vm2853_vm2, %v370_v57, %v374_v45  ;;  %v380_v5 = vrot.slane %v379_v58, 4  ;;  %v334_v6 = vshll.u32 %v2921_v47, 16  ;;  %v483_v11 = vshrl.u32 %v2928_v52, 16  ;;  %v2966_v45 = vld [vmem:[%s2815_s30 + $0x5c] sm:$0x1] }
  0x35   : > { %v2941_v12 = vpack.c.b16 %v964_v59, %v963_v55  ;;  %v959_v13 = vunpack.c.l.b16 %v375_v4  ;;  %v321_v17 = vor.u32 %v320_v60, %v317_v50  ;;  %v326_v18 = vrot.slane %v324_v61, 5  ;;  %v2973_v58 = vld [vmem:[%s2815_s30 + $0x48] sm:$0xf] }
  0x36   : > { %v385_v22 = vsel %vm2853_vm2, %v380_v5, %v384_v49  ;;  %v330_v23 = vrot.slane %v328_v3, 4  ;;  %v336_v24 = vrot.slane %v334_v6, 5  ;;  %v485_v28 = vrot.slane %v483_v11, 4 }
  0x37   : > { %4076 = vst [vmem:[#allocation8_spill] sm:$0xff] %v2941_v12  ;;  %1011 = vrot.lane.b32.xlu2 %v2941_v12, %s2726_s4  ;;  %v960_v29 = vunpack.c.l.b16 %v385_v22  ;;  %v322_v30 = vrot.slane %v321_v17, 4  ;;  %v486_v31 = vshll.u32 %v2928_v52, 16  ;;  %v492_v32 = vshll.u32 %v2938_v8, 16  ;;  %v2980_v22 = vld [vmem:[%s2815_s30 + $0x4c] sm:$0xf] }
  0x38   : > { %v331_v33 = vor.u32 %v330_v23, %v326_v18  ;;  %v496_v34 = vshrl.u32 %v2938_v8, 16  ;;  %v502_v35 = vshll.u32 %v2944_v20, 16  ;;  %v459_v38 = vshrl.u32 %v2947_v21, 16  ;;  %v3100_v12 = vld [vmem:[%s2815_s30 + $0xa4] sm:$0x1] }
  0x39   : > { %v2961_v39 = vpack.c.b16 %v960_v29, %v959_v13  ;;  %v327_v41 = vsel %vm2853_vm2, %v322_v30, %v326_v18  ;;  %v488_v42 = vrot.slane %v486_v31, 5  ;;  %v494_v43 = vrot.slane %v492_v32, 5  ;;  %v2988_v30 = vld [vmem:[%s2815_s30 + $0x50] sm:$0x1]  ;;  %v2992_v32 = vld [vmem:[%s2815_s30 + $0x84] sm:$0xf] }
  0x3a   : > { %v332_v46 = vrot.slane %v331_v33, 4  ;;  %v955_v48 = vunpack.c.l.b16 %v327_v41  ;;  %v498_v49 = vrot.slane %v496_v34, 4  ;;  %v504_v50 = vrot.slane %v502_v35, 5 }
  0x3b   : > { %4077 = vst [vmem:[#allocation9_spill] sm:$0xff] %v2961_v39  ;;  %1007 = vrot.lane.b32.xlu1 %v2961_v39, %s2726_s4  ;;  %v489_v51 = vor.u32 %v488_v42, %v485_v28  ;;  %v461_v54 = vrot.slane %v459_v38, 4  ;;  %v462_v55 = vshll.u32 %v2947_v21, 16  ;;  %v468_v57 = vshll.u32 %v2958_v37, 16 }
  0x3c   : > { %v337_v59 = vsel %vm2853_vm2, %v332_v46, %v336_v24  ;;  %v499_v60 = vor.u32 %v498_v49, %v494_v43  ;;  %v472_v61 = vshrl.u32 %v2958_v37, 16  ;;  %v478_v3 = vshll.u32 %v2966_v45, 16 }
  0x3d   : > { %v956_v4 = vunpack.c.l.b16 %v337_v59  ;;  %v490_v5 = vrot.slane %v489_v51, 4  ;;  %v464_v6 = vrot.slane %v462_v55, 5  ;;  %v470_v11 = vrot.slane %v468_v57, 5 }
  0x3e   : > { %v500_v13 = vrot.slane %v499_v60, 4  ;;  %v474_v17 = vrot.slane %v472_v61, 4  ;;  %v480_v18 = vrot.slane %v478_v3, 5  ;;  %v435_v23 = vshrl.u32 %v2973_v58, 16  ;;  %v3007_v60 = vld [vmem:[%s2815_s30 + $0x88] sm:$0xf] }
  0x3f   : > { %v2983_v28 = vpack.c.b16 %v956_v4, %v955_v48  ;;  %v495_v24 = vsel %vm2853_vm2, %v490_v5, %v494_v43  ;;  %v465_v29 = vor.u32 %v464_v6, %v461_v54  ;;  %v438_v31 = vshll.u32 %v2973_v58, 16  ;;  %v3010_v61 = vld [vmem:[%s2815_s30 + $0x8c] sm:$0x1] }
  0x40   : > { %v505_v33 = vsel %vm2853_vm2, %v500_v13, %v504_v50  ;;  %v969_v34 = vunpack.c.l.b16 %v495_v24  ;;  %v475_v35 = vor.u32 %v474_v17, %v470_v11  ;;  %v437_v38 = vrot.slane %v435_v23, 4  ;;  %4080 = vst [vmem:[#allocation12_spill] sm:$0xff] %v3010_v61  ;;  %v3015_v13 = vld [vmem:[%s2815_s30 + $0x78] sm:$0xf] }
  0x41   : > { %4078 = vst [vmem:[#allocation10_spill] sm:$0xff] %v2983_v28  ;;  %1003 = vrot.lane.b32.xlu0 %v2983_v28, %s2726_s4  ;;  %v970_v41 = vunpack.c.l.b16 %v505_v33  ;;  %v466_v42 = vrot.slane %v465_v29, 4  ;;  %v440_v43 = vrot.slane %v438_v31, 5  ;;  %v444_v46 = vshll.u32 %v2980_v22, 16 }
  0x42   : > { %v476_v48 = vrot.slane %v475_v35, 4  ;;  %v448_v49 = vshrl.u32 %v2980_v22, 16  ;;  %v454_v51 = vshll.u32 %v2988_v30, 16  ;;  %v555_v50 = vshrl.u32 %v2992_v32, 16 }
  0x43   : > { %v3002_v54 = vpack.c.b16 %v970_v41, %v969_v34  ;;  %v471_v55 = vsel %vm2853_vm2, %v466_v42, %v470_v11  ;;  %v441_v57 = vor.u32 %v440_v43, %v437_v38  ;;  %v446_v59 = vrot.slane %v444_v46, 5  ;;  %v3028_v41 = vld [vmem:[%s2815_s30 + $0x7c] sm:$0xf] }
  0x44   : > { %v481_v3 = vsel %vm2853_vm2, %v476_v48, %v480_v18  ;;  %v967_v4 = vunpack.c.l.b16 %v471_v55  ;;  %v450_v5 = vrot.slane %v448_v49, 4  ;;  %v456_v6 = vrot.slane %v454_v51, 5  ;;  %v3032_v51 = vld [vmem:[%s2815_s30 + $0x80] sm:$0x1] }
  0x45   : > { %4079 = vst [vmem:[#allocation11_spill] sm:$0xff] %v3002_v54  ;;  %1017 = vrot.lane.b32.xlu2 %v3002_v54, %s2726_s4  ;;  %v968_v17 = vunpack.c.l.b16 %v481_v3  ;;  %v442_v11 = vrot.slane %v441_v57, 4  ;;  %v557_v23 = vrot.slane %v555_v50, 4  ;;  %v558_v24 = vshll.u32 %v2992_v32, 16  ;;  %v3038_v3 = vld [vmem:[%s2815_s30 + $0x6c] sm:$0xf] }
  0x46   : > { %v451_v29 = vor.u32 %v450_v5, %v446_v59  ;;  %v564_v31 = vshll.u32 %v3007_v60, 16  ;;  %v568_v18 = vshrl.u32 %v3007_v60, 16  ;;  %v574_v33 = vshll.u32 %v3010_v61, 16  ;;  %v3054_v54 = vld [vmem:[%s2815_s30 + $0x74] sm:$0x1] }
  0x47   : > { %v3023_v34 = vpack.c.b16 %v968_v17, %v967_v4  ;;  %v447_v35 = vsel %vm2853_vm2, %v442_v11, %v446_v59  ;;  %v560_v38 = vrot.slane %v558_v24, 5  ;;  %v531_v42 = vshrl.u32 %v3015_v13, 16 }
  0x48   : > { %v452_v43 = vrot.slane %v451_v29, 4  ;;  %v965_v46 = vunpack.c.l.b16 %v447_v35  ;;  %v566_v48 = vrot.slane %v564_v31, 5  ;;  %v570_v49 = vrot.slane %v568_v18, 4 }
  0x49   : > { %4081 = vst [vmem:[#allocation13_spill] sm:$0xff] %v3023_v34  ;;  %1015 = vrot.lane.b32.xlu1 %v3023_v34, %s2726_s4  ;;  %v561_v50 = vor.u32 %v560_v38, %v557_v23  ;;  %v576_v55 = vrot.slane %v574_v33, 5  ;;  %v533_v57 = vrot.slane %v531_v42, 4  ;;  %v534_v59 = vshll.u32 %v3015_v13, 16  ;;  %v3046_v38 = vld [vmem:[%s2815_s30 + $0x70] sm:$0xf] }
  0x4a   : > { %v457_v4 = vsel %vm2853_vm2, %v452_v43, %v456_v6  ;;  %v571_v5 = vor.u32 %v570_v49, %v566_v48  ;;  %v540_v17 = vshll.u32 %v3028_v41, 16  ;;  %v544_v11 = vshrl.u32 %v3028_v41, 16 }
  0x4b   : > { %v966_v24 = vunpack.c.l.b16 %v457_v4  ;;  %v562_v29 = vrot.slane %v561_v50, 4  ;;  %v536_v23 = vrot.slane %v534_v59, 5  ;;  %v550_v31 = vshll.u32 %v3032_v51, 16  ;;  %v3057_v50 = vld [vmem:[%s2815_s30 + $0xa8] sm:$0xf] }
  0x4c   : > { %v572_v18 = vrot.slane %v571_v5, 4  ;;  %v542_v33 = vrot.slane %v540_v17, 5  ;;  %v546_v35 = vrot.slane %v544_v11, 4  ;;  %v507_v42 = vshrl.u32 %v3038_v3, 16  ;;  %4083 = vst [vmem:[#allocation15_spill] sm:$0xff] %v3057_v50 }
  0x4d   : > { %v3049_v6 = vpack.c.b16 %v966_v24, %v965_v46  ;;  %v567_v43 = vsel %vm2853_vm2, %v562_v29, %v566_v48  ;;  %v537_v49 = vor.u32 %v536_v23, %v533_v57  ;;  %v552_v53 = vrot.slane %v550_v31, 5 }
  0x4e   : > { %v577_v59 = vsel %vm2853_vm2, %v572_v18, %v576_v55  ;;  %v975_v4 = vunpack.c.l.b16 %v567_v43  ;;  %v547_v5 = vor.u32 %v546_v35, %v542_v33  ;;  %v509_v17 = vrot.slane %v507_v42, 4  ;;  %v3073_v43 = vld [vmem:[%s2815_s30 + $0xac] sm:$0xf] }
  0x4f   : > { %4082 = vst [vmem:[#allocation14_spill] sm:$0xff] %v3049_v6  ;;  %1013 = vrot.lane.b32.xlu0 %v3049_v6, %s2726_s4  ;;  %v976_v46 = vunpack.c.l.b16 %v577_v59  ;;  %v538_v11 = vrot.slane %v537_v49, 4  ;;  %v510_v48 = vshll.u32 %v3038_v3, 16  ;;  %v516_v57 = vshll.u32 %v3046_v38, 16  ;;  %v3076_v49 = vld [vmem:[%s2815_s30 + $0xb0] sm:$0x1] }
  0x50   : > { %v548_v24 = vrot.slane %v547_v5, 4  ;;  %v520_v29 = vshrl.u32 %v3046_v38, 16  ;;  %v526_v55 = vshll.u32 %v3054_v54, 16  ;;  %v627_v23 = vshrl.u32 %v3057_v50, 16  ;;  %4085 = vst [vmem:[#allocation17_spill] sm:$0xff] %v3073_v43 }
  0x51   : > { %v3068_v31 = vpack.c.b16 %v976_v46, %v975_v4  ;;  %v543_v18 = vsel %vm2853_vm2, %v538_v11, %v542_v33  ;;  %v512_v35 = vrot.slane %v510_v48, 5  ;;  %v518_v42 = vrot.slane %v516_v57, 5  ;;  %4086 = vst [vmem:[#allocation18_spill] sm:$0xff] %v3076_v49  ;;  %v3092_v6 = vld [vmem:[%s2815_s30 + $0xa0] sm:$0xf] }
  0x52   : > { %v553_v59 = vsel %vm2853_vm2, %v548_v24, %v552_v53  ;;  %v973_v5 = vunpack.c.l.b16 %v543_v18  ;;  %v522_v39 = vrot.slane %v520_v29, 4  ;;  %v528_v34 = vrot.slane %v526_v55, 5 }
  0x53   : > { %4084 = vst [vmem:[#allocation16_spill] sm:$0xff] %v3068_v31  ;;  %1023 = vrot.lane.b32.xlu2 %v3068_v31, %s2726_s4  ;;  %v974_v4 = vunpack.c.l.b16 %v553_v59  ;;  %v513_v33 = vor.u32 %v512_v35, %v509_v17  ;;  %v629_v46 = vrot.slane %v627_v23, 4  ;;  %v630_v11 = vshll.u32 %v3057_v50, 16 }
  0x54   : > { %v523_v48 = vor.u32 %v522_v39, %v518_v42  ;;  %v636_v57 = vshll.u32 %v3073_v43, 16  ;;  %v640_v53 = vshrl.u32 %v3073_v43, 16  ;;  %v646_v24 = vshll.u32 %v3076_v49, 16 }
  0x55   : > { %v3089_v29 = vpack.c.b16 %v974_v4, %v973_v5  ;;  %v514_v55 = vrot.slane %v513_v33, 4  ;;  %v632_v18 = vrot.slane %v630_v11, 5  ;;  %v603_v17 = vshrl.u32 %v3081_v15, 16  ;;  %v3104_v33 = vld [vmem:[%s2815_s30 + $0x90] sm:$0xf] }
  0x56   : > { %v524_v23 = vrot.slane %v523_v48, 4  ;;  %v638_v35 = vrot.slane %v636_v57, 5  ;;  %v642_v59 = vrot.slane %v640_v53, 4  ;;  %v648_v39 = vrot.slane %v646_v24, 5 }
  0x57   : > { %4087 = vst [vmem:[#allocation19_spill] sm:$0xff] %v3089_v29  ;;  %1021 = vrot.lane.b32.xlu1 %v3089_v29, %s2726_s4  ;;  %v519_v31 = vsel %vm2853_vm2, %v514_v55, %v518_v42  ;;  %v633_v28 = vor.u32 %v632_v18, %v629_v46  ;;  %v605_v5 = vrot.slane %v603_v17, 4  ;;  %v606_v4 = vshll.u32 %v3081_v15, 16 }
  0x58   : > { %v529_v11 = vsel %vm2853_vm2, %v524_v23, %v528_v34  ;;  %v971_v48 = vunpack.c.l.b16 %v519_v31  ;;  %v643_v57 = vor.u32 %v642_v59, %v638_v35  ;;  %v612_v53 = vshll.u32 %v3092_v6, 16  ;;  %v3117_v59 = vld [vmem:[%s2815_s30 + $0x94] sm:$0xf] }
  0x59   : > { %v972_v24 = vunpack.c.l.b16 %v529_v11  ;;  %v634_v29 = vrot.slane %v633_v28, 4  ;;  %v608_v42 = vrot.slane %v606_v4, 5  ;;  %v616_v46 = vshrl.u32 %v3092_v6, 16  ;;  %v3120_v11 = vld [vmem:[%s2815_s30 + $0x98] sm:$0x1] }
  0x5a   : > { %v644_v55 = vrot.slane %v643_v57, 4  ;;  %v614_v18 = vrot.slane %v612_v53, 5  ;;  %v622_v17 = vshll.u32 %v3100_v12, 16  ;;  %v579_v49 = vshrl.u32 %v3104_v33, 16 }
  0x5b   : > { %v3112_v43 = vpack.c.b16 %v972_v24, %v971_v48  ;;  %v639_v34 = vsel %vm2853_vm2, %v634_v29, %v638_v35  ;;  %v609_v31 = vor.u32 %v608_v42, %v605_v5  ;;  %v618_v23 = vrot.slane %v616_v46, 4 }
  0x5c   : > { %v649_v28 = vsel %vm2853_vm2, %v644_v55, %v648_v39  ;;  %v981_v4 = vunpack.c.l.b16 %v639_v34  ;;  %v624_v57 = vrot.slane %v622_v17, 5  ;;  %v581_v53 = vrot.slane %v579_v49, 4 }
  0x5d   : > { %4088 = vst [vmem:[#allocation20_spill] sm:$0xff] %v3112_v43  ;;  %1019 = vrot.lane.b32.xlu0 %v3112_v43, %s2726_s4  ;;  %v982_v48 = vunpack.c.l.b16 %v649_v28  ;;  %v610_v24 = vrot.slane %v609_v31, 4  ;;  %v619_v50 = vor.u32 %v618_v23, %v614_v18  ;;  %v582_v29 = vshll.u32 %v3104_v33, 16 }
  0x5e   : > { %v588_v35 = vshll.u32 %v3117_v59, 16  ;;  %v592_v5 = vshrl.u32 %v3117_v59, 16  ;;  %v598_v42 = vshll.u32 %v3120_v11, 16 }
  0x5f   : > { %v3130_v46 = vpack.c.b16 %v982_v48, %v981_v4  ;;  %v615_v49 = vsel %vm2853_vm2, %v610_v24, %v614_v18  ;;  %v620_v39 = vrot.slane %v619_v50, 4  ;;  %v584_v55 = vrot.slane %v582_v29, 5 }
  0x60   : > { %v979_v17 = vunpack.c.l.b16 %v615_v49  ;;  %v590_v34 = vrot.slane %v588_v35, 5  ;;  %v594_v31 = vrot.slane %v592_v5, 4  ;;  %v600_v23 = vrot.slane %v598_v42, 5 }
  0x61   : > { %1029 = vrot.lane.b32.xlu2 %v3130_v46, %s2726_s4  ;;  %v625_v28 = vsel %vm2853_vm2, %v620_v39, %v624_v57  ;;  %v585_v43 = vor.u32 %v584_v55, %v581_v53  ;;  %v2257_v4 = vrot.slane %v2909_v27, 9  ;;  %v734_v18 = vrot.slane %v2917_v40, 5  ;;  %v3154_v39 = vld [vmem:[%s2815_s30 + $0xb4] sm:$0xf] }
  0x62   : > { %v980_v48 = vunpack.c.l.b16 %v625_v28  ;;  %v595_v61 = vor.u32 %v594_v31, %v590_v34  ;;  %v737_v24 = vrot.slane %v2921_v47, 5  ;;  %v2256_v57 = vrot.slane %v2842_v16, 9  ;;  %v3170_v31 = vld [vmem:[%s2815_s30 + $0xbc] sm:$0x1] }
  0x63   : > { %v586_v29 = vrot.slane %v585_v43, 4  ;;  %v727_v53 = vrot.slane %v2849_v25, 5  ;;  %v730_v35 = vrot.slane %v2860_v36, 5  ;;  %v735_v42 = vsel %vm3140_vm5, %v2257_v4, %v734_v18  ;;  %v3161_v43 = vld [vmem:[%s2815_s30 + $0xb8] sm:$0xf] }
  0x64   : > { %v3149_v27 = vpack.c.b16 %v980_v48, %v979_v17  ;;  %v596_v5 = vrot.slane %v595_v61, 4  ;;  %v736_v49 = vrot.slane %v734_v18, 4  ;;  %v1035_v47 = vunpack.c.l.b16 %v735_v42 }
  0x65   : > { %v591_v40 = vsel %vm2853_vm2, %v586_v29, %v590_v34  ;;  %v728_v16 = vsel %vm3140_vm5, %v2256_v57, %v727_v53  ;;  %v729_v25 = vrot.slane %v727_v53, 4  ;;  %v651_v48 = vshrl.u32 %v3154_v39, 16 }
  0x66   : > { %1027 = vrot.lane.b32.xlu1 %v3149_v27, %s2726_s4  ;;  %v601_v36 = vsel %vm2853_vm2, %v596_v5, %v600_v23  ;;  %v977_v61 = vunpack.c.l.b16 %v591_v40  ;;  %v738_v55 = vsel %vm3140_vm5, %v736_v49, %v737_v24  ;;  %v1033_v17 = vunpack.c.l.b16 %v728_v16 }
  0x67   : > { %v978_v34 = vunpack.c.l.b16 %v601_v36  ;;  %v1036_v28 = vunpack.c.l.b16 %v738_v55  ;;  %v731_v4 = vsel %vm3140_vm5, %v729_v25, %v730_v35  ;;  %v654_v29 = vshll.u32 %v3154_v39, 16 }
  0x68   : > { %v1034_v18 = vunpack.c.l.b16 %v731_v4  ;;  %v660_v57 = vshll.u32 %v3161_v43, 16  ;;  %v664_v23 = vshrl.u32 %v3161_v43, 16  ;;  %v653_v5 = vrot.slane %v651_v48, 4 }
  0x69   : > { %v3178_v53 = vpack.c.b16 %v978_v34, %v977_v61  ;;  %v3180_v24 = vpack.c.b16 %v1036_v28, %v1035_v47  ;;  %v670_v42 = vshll.u32 %v3170_v31, 16  ;;  %v656_v40 = vrot.slane %v654_v29, 5 }
  0x6a   : > { %v1065_v49 = vpack.c.b16 %v1034_v18, %v1033_v17  ;;  %v662_v16 = vrot.slane %v660_v57, 5  ;;  %v666_v35 = vrot.slane %v664_v23, 4  ;;  %v2260_v36 = vrot.slane %v2818_v0, 9 }
  0x6b   : > { %1025 = vrot.lane.b32.xlu0 %v3178_v53, %s2726_s4  ;;  %1083 = vrot.lane.b32.xlu2 %v3180_v24, %s2727_s5  ;;  %v672_v25 = vrot.slane %v670_v42, 5  ;;  %v755_v47 = vrot.slane %v2821_v1, 5  ;;  %v758_v61 = vrot.slane %v2824_v2, 5  ;;  %v657_v55 = vor.u32 %v656_v40, %v653_v5 }
  0x6c   : > { %v667_v34 = vor.u32 %v666_v35, %v662_v16  ;;  %v2259_v17 = vrot.slane %v2886_v63, 9  ;;  %v748_v28 = vrot.slane %v2896_v14, 5  ;;  %v751_v18 = vrot.slane %v2902_v19, 5 }
  0x6d   : > { %v756_v4 = vsel %vm3140_vm5, %v2260_v36, %v755_v47  ;;  %v757_v48 = vrot.slane %v755_v47, 4  ;;  %v2258_v29 = vrot.slane %v2831_v7, 9  ;;  %v658_v0 = vrot.slane %v657_v55, 4 }
  0x6e   : > { %1081 = vrot.lane.b32.xlu1 %v1065_v49, %s2727_s5  ;;  %v668_v1 = vrot.slane %v667_v34, 4  ;;  %v1041_v57 = vunpack.c.l.b16 %v756_v4  ;;  %v749_v2 = vsel %vm3140_vm5, %v2259_v17, %v748_v28  ;;  %v750_v14 = vrot.slane %v748_v28, 4 }
  0x6f   : > { %v759_v63 = vsel %vm3140_vm5, %v757_v48, %v758_v61  ;;  %v1039_v23 = vunpack.c.l.b16 %v749_v2  ;;  %v741_v5 = vrot.slane %v2835_v9, 5  ;;  %v663_v19 = vsel %vm2853_vm2, %v658_v0, %v662_v16 }
  0x70   : > { %v673_v7 = vsel %vm2853_vm2, %v668_v1, %v672_v25  ;;  %v1042_v42 = vunpack.c.l.b16 %v759_v63  ;;  %v744_v49 = vrot.slane %v2838_v10, 5  ;;  %v983_v40 = vunpack.c.l.b16 %v663_v19 }
  0x71   : > { %v984_v35 = vunpack.c.l.b16 %v673_v7  ;;  %v752_v36 = vsel %vm3140_vm5, %v750_v14, %v751_v18  ;;  %v742_v47 = vsel %vm3140_vm5, %v2258_v29, %v741_v5  ;;  %v743_v55 = vrot.slane %v741_v5, 4 }
  0x72   : > { %v3211_v61 = vpack.c.b16 %v1042_v42, %v1041_v57  ;;  %v1040_v9 = vunpack.c.l.b16 %v752_v36  ;;  %v1037_v34 = vunpack.c.l.b16 %v742_v47  ;;  %v2263_v25 = vrot.slane %v2947_v21, 9 }
  0x73   : > { %v3213_v16 = vpack.c.b16 %v984_v35, %v983_v40  ;;  %v776_v17 = vrot.slane %v2958_v37, 5  ;;  %v779_v10 = vrot.slane %v2966_v45, 5  ;;  %v745_v4 = vsel %vm3140_vm5, %v743_v55, %v744_v49 }
  0x74   : > { %1089 = vrot.lane.b32.xlu2 %v3211_v61, %s2727_s5  ;;  %v3220_v28 = vpack.c.b16 %v1040_v9, %v1039_v23  ;;  %v2262_v48 = vrot.slane %v2973_v58, 9  ;;  %v769_v18 = vrot.slane %v2980_v22, 5  ;;  %v1038_v21 = vunpack.c.l.b16 %v745_v4 }
  0x75   : > { %1031 = vrot.lane.b32.xlu0 %v3213_v16, %s2726_s4  ;;  %v777_v37 = vsel %vm3140_vm5, %v2263_v25, %v776_v17  ;;  %v778_v45 = vrot.slane %v776_v17, 4  ;;  %v772_v29 = vrot.slane %v2988_v30, 5  ;;  %v2261_v22 = vrot.slane %v2869_v44, 9 }
  0x76   : > { %1087 = vrot.lane.b32.xlu1 %v3220_v28, %s2727_s5  ;;  %v1047_v0 = vunpack.c.l.b16 %v777_v37  ;;  %v770_v1 = vsel %vm3140_vm5, %v2262_v48, %v769_v18  ;;  %v771_v58 = vrot.slane %v769_v18, 4  ;;  %v3236_v57 = vpack.c.b16 %v1038_v21, %v1037_v34 }
  0x77   : > { %v780_v2 = vsel %vm3140_vm5, %v778_v45, %v779_v10  ;;  %v1045_v63 = vunpack.c.l.b16 %v770_v1  ;;  %v762_v14 = vrot.slane %v2877_v56, 5  ;;  %v765_v5 = vrot.slane %v2883_v62, 5 }
  0x78   : > { %v1048_v23 = vunpack.c.l.b16 %v780_v2  ;;  %v773_v30 = vsel %vm3140_vm5, %v771_v58, %v772_v29  ;;  %v2266_v19 = vrot.slane %v3015_v13, 9  ;;  %v797_v49 = vrot.slane %v3028_v41, 5 }
  0x79   : > { %v1046_v7 = vunpack.c.l.b16 %v773_v30  ;;  %v763_v44 = vsel %vm3140_vm5, %v2261_v22, %v762_v14  ;;  %v764_v42 = vrot.slane %v762_v14, 4  ;;  %v800_v35 = vrot.slane %v3032_v51, 5 }
  0x7a   : > { %v3248_v40 = vpack.c.b16 %v1048_v23, %v1047_v0  ;;  %v2265_v56 = vrot.slane %v3038_v3, 9  ;;  %v798_v13 = vsel %vm3140_vm5, %v2266_v19, %v797_v49  ;;  %v799_v47 = vrot.slane %v797_v49, 4 }
  0x7b   : > { %v3252_v36 = vpack.c.b16 %v1046_v7, %v1045_v63  ;;  %v766_v62 = vsel %vm3140_vm5, %v764_v42, %v765_v5  ;;  %v1043_v9 = vunpack.c.l.b16 %v763_v44  ;;  %v1053_v41 = vunpack.c.l.b16 %v798_v13  ;;  %v4091_v7 = vld [vmem:[#allocation12_spill] sm:$0xff] }
  0x7c   : > { %1095 = vrot.lane.b32.xlu2 %v3248_v40, %s2727_s5  ;;  %v790_v55 = vrot.slane %v3046_v38, 5  ;;  %v793_v51 = vrot.slane %v3054_v54, 5  ;;  %v1044_v3 = vunpack.c.l.b16 %v766_v62  ;;  %v801_v34 = vsel %vm3140_vm5, %v799_v47, %v800_v35 }
  0x7d   : > { %1085 = vrot.lane.b32.xlu0 %v3236_v57, %s2727_s5  ;;  %v2264_v25 = vrot.slane %v2928_v52, 9  ;;  %v783_v17 = vrot.slane %v2938_v8, 5  ;;  %v1054_v10 = vunpack.c.l.b16 %v801_v34  ;;  %v786_v54 = vrot.slane %v2944_v20, 5  ;;  %v4093_v34 = vld [vmem:[#allocation17_spill] sm:$0xff] }
  0x7e   : > { %1093 = vrot.lane.b32.xlu1 %v3252_v36, %s2727_s5  ;;  %v791_v38 = vsel %vm3140_vm5, %v2265_v56, %v790_v55  ;;  %v792_v4 = vrot.slane %v790_v55, 4  ;;  %v2269_v21 = vrot.slane %v3081_v15, 9  ;;  %v818_v45 = vrot.slane %v3092_v6, 5  ;;  %v4092_v55 = vld [vmem:[#allocation15_spill] sm:$0xff] }
  0x7f   : > { %v1051_v48 = vunpack.c.l.b16 %v791_v38  ;;  %v785_v18 = vrot.slane %v783_v17, 4  ;;  %v3274_v37 = vpack.c.b16 %v1054_v10, %v1053_v41  ;;  %v784_v8 = vsel %vm3140_vm5, %v2264_v25, %v783_v17  ;;  %v4094_v10 = vld [vmem:[#allocation18_spill] sm:$0xff] }
  0x80   : > { %v794_v52 = vsel %vm3140_vm5, %v792_v4, %v793_v51  ;;  %v3281_v29 = vpack.c.b16 %v1044_v3, %v1043_v9  ;;  %v821_v1 = vrot.slane %v3100_v12, 5  ;;  %v2268_v20 = vrot.slane %v3104_v33, 9 }
  0x81   : > { %v1052_v0 = vunpack.c.l.b16 %v794_v52  ;;  %v787_v15 = vsel %vm3140_vm5, %v785_v18, %v786_v54  ;;  %v819_v58 = vsel %vm3140_vm5, %v2269_v21, %v818_v45  ;;  %v820_v22 = vrot.slane %v818_v45, 4 }
  0x82   : > { %v811_v2 = vrot.slane %v3117_v59, 5  ;;  %v1049_v14 = vunpack.c.l.b16 %v784_v8  ;;  %v814_v6 = vrot.slane %v3120_v11, 5  ;;  %v2267_v23 = vrot.slane %v2992_v32, 9 }
  0x83   : > { %v3290_v63 = vpack.c.b16 %v1052_v0, %v1051_v48  ;;  %v822_v12 = vsel %vm3140_vm5, %v820_v22, %v821_v1  ;;  %v1059_v33 = vunpack.c.l.b16 %v819_v58  ;;  %v1050_v59 = vunpack.c.l.b16 %v787_v15  ;;  %v2440_v1 = vld [vmem:[%s2815_s30 + $0xc] sm:$0xff]  ;;  %v1010_v58 = vpop.permute.xlu2 %1009 }
  0x84   : > { %1101 = vrot.lane.b32.xlu2 %v3274_v37, %s2727_s5  ;;  %v812_v30 = vsel %vm3140_vm5, %v2268_v20, %v811_v2  ;;  %v813_v5 = vrot.slane %v811_v2, 4  ;;  %v1060_v19 = vunpack.c.l.b16 %v822_v12  ;;  %v804_v11 = vrot.slane %v3007_v60, 5  ;;  %v3351_v22 = vld [vmem:[%s2815_s30 + $0x30] sm:$0xff]  ;;  %v3354_v2 = vld [vmem:[%s2815_s30 + $0x24] sm:$0xff] }
  0x85   : > { %1091 = vrot.lane.b32.xlu0 %v3281_v29, %s2727_s5  ;;  %v807_v32 = vrot.slane %v4091_v7, 5  ;;  %v1057_v42 = vunpack.c.l.b16 %v812_v30  ;;  %v2271_v49 = vrot.slane %v3154_v39, 9  ;;  %v832_v35 = vrot.slane %v3161_v43, 5  ;;  %v3366_v12 = vld [vmem:[%s2815_s30 + $0x54] sm:$0xff]  ;;  %v3372_v30 = vld [vmem:[%s2815_s30 + $0x48] sm:$0xff] }
  0x86   : > { %1099 = vrot.lane.b32.xlu1 %v3290_v63, %s2727_s5  ;;  %v815_v44 = vsel %vm3140_vm5, %v813_v5, %v814_v6  ;;  %v805_v62 = vsel %vm3140_vm5, %v2267_v23, %v804_v11  ;;  %v806_v13 = vrot.slane %v804_v11, 4  ;;  %v835_v60 = vrot.slane %v3170_v31, 5  ;;  %v2441_v6 = vld [vmem:[%s2815_s30 + $0x18] sm:$0xff]  ;;  %v3386_v7 = vld [vmem:[%s2815_s30 + $0x6c] sm:$0xff] }
  0x87   : > { %v1058_v56 = vunpack.c.l.b16 %v815_v44  ;;  %v3313_v47 = vpack.c.b16 %v1060_v19, %v1059_v33  ;;  %v1055_v9 = vunpack.c.l.b16 %v805_v62  ;;  %v834_v41 = vrot.slane %v832_v35, 4  ;;  %v3383_v19 = vld [vmem:[%s2815_s30 + $0x3c] sm:$0xff] }
  0x88   : > { %v2270_v51 = vrot.slane %v4092_v55, 9  ;;  %v3316_v3 = vpack.c.b16 %v1050_v59, %v1049_v14  ;;  %v808_v39 = vsel %vm3140_vm5, %v806_v13, %v807_v32  ;;  %v825_v43 = vrot.slane %v4093_v34, 5  ;;  %v2449_v59 = vld [vmem:[%s2815_s30 + $0x78] sm:$0xff]  ;;  %v3397_v44 = vld [vmem:[%s2815_s30 + $0x60] sm:$0xff] }
  0x89   : > { %v3321_v25 = vpack.c.b16 %v1058_v56, %v1057_v42  ;;  %v1056_v17 = vunpack.c.l.b16 %v808_v39  ;;  %v828_v38 = vrot.slane %v4094_v10, 5  ;;  %v833_v31 = vsel %vm3140_vm5, %v2271_v49, %v832_v35  ;;  %v3394_v32 = vld [vmem:[%s2815_s30 + $0x9c] sm:$0xff]  ;;  %v3402_v49 = vld [vmem:[%s2815_s30 + $0x90] sm:$0xff]  ;;  %v3412_v13 = vld [vmem:[%s2815_s30 + $0x84] sm:$0xff] }
  0x8a   : > { %v836_v4 = vsel %vm3140_vm5, %v834_v41, %v835_v60  ;;  %v826_v54 = vsel %vm3140_vm5, %v2270_v51, %v825_v43  ;;  %v827_v48 = vrot.slane %v825_v43, 4  ;;  %v1063_v8 = vunpack.c.l.b16 %v833_v31  ;;  %v2453_v60 = vld [vmem:[%s2815_s30 + $0xa8] sm:$0xff]  ;;  %v4095_v51 = vld [vmem:[#allocation20_spill] sm:$0xff] }
  0x8b   : > { %v3332_v18 = vpack.c.b16 %v1056_v17, %v1055_v9  ;;  %v1061_v21 = vunpack.c.l.b16 %v826_v54  ;;  %v1064_v45 = vunpack.c.l.b16 %v836_v4 }
  0x8c   : > { %1107 = vrot.lane.b32.xlu2 %v3313_v47, %s2727_s5  ;;  %v829_v52 = vsel %vm3140_vm5, %v827_v48, %v828_v38  ;;  %v1338_v38 = vsel %vm1323_vm6, %v3351_v22, %v1010_v58  ;;  %v4096_v48 = vld [vmem:[#allocation8_spill] sm:$0xff]  ;;  %v2439_v58 = vld [vmem:[%s2815_s30] sm:$0xff] }
  0x8d   : > { %1097 = vrot.lane.b32.xlu0 %v3316_v3, %s2727_s5  ;;  %v1062_v0 = vunpack.c.l.b16 %v829_v52  ;;  %v3343_v15 = vpack.c.b16 %v1064_v45, %v1063_v8  ;;  %v4098_v8 = vld [vmem:[#allocation10_spill] sm:$0xff] }
  0x8e   : > { %1105 = vrot.lane.b32.xlu1 %v3321_v25, %s2727_s5 }
  0x8f   : > { %v3341_v20 = vpack.c.b16 %v1062_v0, %v1061_v21  ;;  %v4097_v21 = vld [vmem:[#allocation19_spill] sm:$0xff] }
  0x91   : > { %v3360_v14 = vpop.permute.xlu2 %1011 }
  0x94   : > { %1116 = vrot.lane.b32.xlu2 %v2440_v1, %s2728_s6 }
  0x95   : > { %1103 = vrot.lane.b32.xlu0 %v3332_v18, %s2727_s5 }
  0x96   : > { %1111 = vrot.lane.b32.xlu1 %v3343_v15, %s2727_s5 }
  0x9c   : > { %1122 = vrot.lane.b32.xlu2 %v3351_v22, %s2728_s6 }
  0x9d   : > { %1109 = vrot.lane.b32.xlu0 %v3341_v20, %s2727_s5 }
  0x9e   : > { %1120 = vrot.lane.b32.xlu1 %v3354_v2, %s2728_s6 }
  0x9f   : > { %v1006_v23 = vpop.permute.xlu1 %1005  ;;  %v3379_v5 = vpop.permute.xlu2 %1017 }
  0xa0   : > { %v3369_v33 = vsel %vm1323_vm6, %v2441_v6, %v1006_v23 }
  0xa3   : > { %v1002_v11 = vpop.permute.xlu0 %1001 }
  0xa4   : > { %1128 = vrot.lane.b32.xlu2 %v3366_v12, %s2728_s6 }
  0xa5   : > { %1118 = vrot.lane.b32.xlu0 %v2441_v6, %s2728_s6 }
  0xa6   : > { %1126 = vrot.lane.b32.xlu1 %v3372_v30, %s2728_s6 }
  0xac   : > { %1134 = vrot.lane.b32.xlu2 %v2449_v59, %s2728_s6 }
  0xad   : > { %1124 = vrot.lane.b32.xlu0 %v3383_v19, %s2728_s6  ;;  %v3399_v42 = vpop.permute.xlu2 %1023  ;;  %v1008_v62 = vpop.permute.xlu1 %1007 }
  0xae   : > { %1132 = vrot.lane.b32.xlu1 %v3386_v7, %s2728_s6 }
  0xb3   : > { %v1004_v35 = vpop.permute.xlu0 %1003 }
  0xb4   : > { %1140 = vrot.lane.b32.xlu2 %v3394_v32, %s2728_s6  ;;  %v1329_v56 = vsel %vm1323_vm6, %v2440_v1, %v1004_v35 }
  0xb5   : > { %1130 = vrot.lane.b32.xlu0 %v3397_v44, %s2728_s6 }
  0xb6   : > { %1138 = vrot.lane.b32.xlu1 %v3402_v49, %s2728_s6 }
  0xbb   : > { %v1030_v9 = vpop.permute.xlu2 %1029  ;;  %v1016_v55 = vpop.permute.xlu1 %1015 }
  0xbc   : > { %1202 = vrot.lane.b32.xlu2 %v3290_v63, %s2729_s7  ;;  %v3418_v41 = vsel %vm1323_vm6, %v2453_v60, %v1030_v9  ;;  %v1347_v52 = vsel %vm1323_vm6, %v3366_v12, %v1016_v55 }
  0xbd   : > { %1136 = vrot.lane.b32.xlu0 %v3412_v13, %s2728_s6 }
  0xbe   : > { %1175 = vrot.lane.b32.xlu1 %v3149_v27, %s2730_s8 }
  0xc1   : > { %v1014_v43 = vpop.permute.xlu0 %1013 }
  0xc4   : > { %1245 = vrot.lane.b32.xlu2 %v2453_v60, %s2731_s9 }
  0xc5   : > { %1167 = vrot.lane.b32.xlu0 %v4095_v51, %s2730_s8  ;;  %v1084_v39 = vpop.permute.xlu2 %1083 }
  0xc6   : > { %1237 = vrot.lane.b32.xlu1 %v2449_v59, %s2731_s9  ;;  %v3429_v34 = vsel %vm1372_vm7, %v1329_v56, %v1084_v39  ;;  %v1326_v56 = vsel %vm1323_vm6, %v2439_v58, %v1002_v11  ;;  %v3466_v39 = vld [vmem:[%s2815_s30 + $0xb4] sm:$0xff] }
  0xc9   : > { %v1022_v17 = vpop.permute.xlu1 %1021 }
  0xca   : > { %v1356_v10 = vsel %vm1323_vm6, %v2449_v59, %v1022_v17 }
  0xcc   : > { %1307 = vrot.lane.b32.xlu2 %v3274_v37, %s2732_s10 }
  0xcd   : > { %1210 = vrot.lane.b32.xlu0 %v3313_v47, %s2729_s7 }
  0xce   : > { %1280 = vrot.lane.b32.xlu1 %v3130_v46, %s2733_s11  ;;  %v1090_v31 = vpop.permute.xlu2 %1089 }
  0xcf   : > { %v3441_v4 = vsel %vm1372_vm7, %v1338_v38, %v1090_v31  ;;  %v1020_v54 = vpop.permute.xlu0 %1019  ;;  %v4100_v38 = vld [vmem:[#allocation7_spill] sm:$0xff] }
  0xd4   : > { %1159 = vrot.lane.b32.xlu2 %v4096_v48, %s2730_s8 }
  0xd5   : > { %1272 = vrot.lane.b32.xlu0 %v4097_v21, %s2733_s11 }
  0xd6   : > { %1151 = vrot.lane.b32.xlu1 %v4098_v8, %s2730_s8  ;;  %v1096_v45 = vpop.permute.xlu2 %1095 }
  0xd7   : > { %v3452_v0 = vsel %vm1372_vm7, %v1347_v52, %v1096_v45  ;;  %v1335_v52 = vsel %vm1323_vm6, %v3354_v2, %v1008_v62  ;;  %v1344_v62 = vsel %vm1323_vm6, %v3372_v30, %v1014_v43 }
  0xd8   : > { %v1028_v1 = vpop.permute.xlu1 %1027 }
  0xd9   : > { %v1365_v17 = vsel %vm1323_vm6, %v3394_v32, %v1028_v1 }
  0xdc   : > { %1221 = vrot.lane.b32.xlu2 %v2441_v6, %s2731_s9  ;;  %v4099_v6 = vld [vmem:[#allocation14_spill] sm:$0xff] }
  0xdd   : > { %1315 = vrot.lane.b32.xlu0 %v3341_v20, %s2732_s10  ;;  %v1026_v23 = vpop.permute.xlu0 %1025 }
  0xde   : > { %1194 = vrot.lane.b32.xlu1 %v3281_v29, %s2729_s7  ;;  %v1102_v59 = vpop.permute.xlu2 %1101 }
  0xdf   : > { %v3461_v35 = vsel %vm1372_vm7, %v1356_v10, %v1102_v59 }
  0xe0   : > { %v1082_v9 = vpop.permute.xlu1 %1081 }
  0xe1   : > { %v1374_v55 = vsel %vm1372_vm7, %v1326_v56, %v1082_v9 }
  0xe4   : > { %1264 = vrot.lane.b32.xlu2 %v4099_v6, %s2733_s11 }
  0xe5   : > { %1186 = vrot.lane.b32.xlu0 %v3180_v24, %s2729_s7 }
  0xe6   : > { %1256 = vrot.lane.b32.xlu1 %v4100_v38, %s2733_s11  ;;  %v1108_v10 = vpop.permute.xlu2 %1107 }
  0xe7   : > { %v1032_v31 = vpop.permute.xlu0 %1031  ;;  %v3477_v11 = vsel %vm1372_vm7, %v1365_v17, %v1108_v10  ;;  %v1353_v17 = vsel %vm1323_vm6, %v3386_v7, %v1020_v54 }
  0xe8   : > { %v1371_v8 = vsel %vm1323_vm6, %v3466_v39, %v1032_v31  ;;  %v1088_v45 = vpop.permute.xlu1 %1087 }
  0xe9   : > { %v1380_v24 = vsel %vm1372_vm7, %v1335_v52, %v1088_v45  ;;  %v1362_v45 = vsel %vm1323_vm6, %v3402_v49, %v1026_v23  ;;  %v1359_v23 = vsel %vm1323_vm6, %v3412_v13, %v3399_v42 }
  0xec   : > { %1142 = vrot.lane.b32.xlu2 %v2453_v60, %s2728_s6 }
  0xed   : > { %1229 = vrot.lane.b32.xlu0 %v3372_v30, %s2731_s9  ;;  %v1341_v30 = vsel %vm1323_vm6, %v3383_v19, %v3360_v14  ;;  %v1350_v14 = vsel %vm1323_vm6, %v3397_v44, %v3379_v5 }
  0xee   : > { %1299 = vrot.lane.b32.xlu1 %v3252_v36, %s2732_s10  ;;  %v1117_v1 = vpop.permute.xlu2 %1116 }
  0xef   : > { %v1086_v58 = vpop.permute.xlu0 %1085  ;;  %v3490_v59 = vsel %vm1405_vm8, %v1374_v55, %v1117_v1 }
  0xf0   : > { %v1378_v56 = vsel %vm1372_vm7, %v3369_v33, %v1086_v58  ;;  %v1094_v9 = vpop.permute.xlu1 %1093 }
  0xf1   : > { %v1386_v60 = vsel %vm1372_vm7, %v1344_v62, %v1094_v9 }
  0xf4   : > { %1204 = vrot.lane.b32.xlu2 %v3274_v37, %s2729_s7 }
  0xf5   : > { %1291 = vrot.lane.b32.xlu0 %v3236_v57, %s2732_s10 }
  0xf6   : > { %1177 = vrot.lane.b32.xlu1 %v3130_v46, %s2730_s8  ;;  %v1123_v55 = vpop.permute.xlu2 %1122 }
  0xf7   : > { %v1092_v43 = vpop.permute.xlu0 %1091  ;;  %v3507_v33 = vsel %vm1405_vm8, %v1380_v24, %v1123_v55 }
  0xf8   : > { %4101 = vst [vmem:[#allocation12_spill] sm:$0xff] %v3507_v33  ;;  %v1384_v37 = vsel %vm1372_vm7, %v1341_v30, %v1092_v43  ;;  %v1100_v10 = vpop.permute.xlu1 %1099 }
  0xf9   : > { %v1392_v31 = vsel %vm1372_vm7, %v1353_v17, %v1100_v10  ;;  %v4105_v10 = vld [vmem:[#allocation13_spill] sm:$0xff] }
  0xfc   : > { %1247 = vrot.lane.b32.xlu2 %v3466_v39, %s2731_s9 }
  0xfd   : > { %1169 = vrot.lane.b32.xlu0 %v4097_v21, %s2730_s8 }
  0xfe   : > { %1239 = vrot.lane.b32.xlu1 %v3412_v13, %s2731_s9  ;;  %v1129_v46 = vpop.permute.xlu2 %1128 }
  0xff   : > { %v1098_v54 = vpop.permute.xlu0 %1097  ;;  %v3523_v52 = vsel %vm1405_vm8, %v1386_v60, %v1129_v46 }
 0x100   : > { %v3528_v24 = vsel %vm1372_vm7, %v1350_v14, %v1098_v54  ;;  %v1106_v1 = vpop.permute.xlu1 %1105  ;;  %v3595_v14 = vld [vmem:[%s2815_s30 + $0xc4] sm:$0xf] }
 0x101   : > { %v3531_v21 = vsel %vm1372_vm7, %v1362_v45, %v1106_v1  ;;  %v851_v45 = vshrl.u32 %v3595_v14, 16 }
 0x104   : > { %1309 = vrot.lane.b32.xlu2 %v3332_v18, %s2732_s10 }
 0x105   : > { %1212 = vrot.lane.b32.xlu0 %v3341_v20, %s2729_s7  ;;  %v4103_v20 = vld [vmem:[#allocation16_spill] sm:$0xff] }
 0x106   : > { %1282 = vrot.lane.b32.xlu1 %v3213_v16, %s2733_s11  ;;  %v1135_v5 = vpop.permute.xlu2 %1134 }
 0x107   : > { %v1104_v58 = vpop.permute.xlu0 %1103  ;;  %v3543_v62 = vsel %vm1405_vm8, %v1392_v31, %v1135_v5 }
 0x108   : > { %v1396_v9 = vsel %vm1372_vm7, %v1359_v23, %v1104_v58  ;;  %v1112_v60 = vpop.permute.xlu1 %1111 }
 0x109   : > { %v3547_v55 = vsel %vm1372_vm7, %v1371_v8, %v1112_v60 }
 0x10a   : > { %4102 = vst [vmem:[#allocation15_spill] sm:$0xff] %v3547_v55 }
 0x10c   : > { %1161 = vrot.lane.b32.xlu2 %v4099_v6, %s2730_s8 }
 0x10d   : > { %1274 = vrot.lane.b32.xlu0 %v4103_v20, %s2733_s11 }
 0x10e   : > { %1153 = vrot.lane.b32.xlu1 %v4100_v38, %s2730_s8  ;;  %v3555_v42 = vpop.permute.xlu2 %1140 }
 0x10f   : > { %v1110_v13 = vpop.permute.xlu0 %1109 }
 0x110   : > { %v3559_v30 = vsel %vm1372_vm7, %v3418_v41, %v1110_v13  ;;  %v1121_v43 = vpop.permute.xlu1 %1120  ;;  %v853_v13 = vrot.slane %v851_v45, 4 }
 0x111   : > { %v3562_v8 = vsel %vm1405_vm8, %v1378_v56, %v1121_v43  ;;  %v1784_v43 = vld [vmem:[%s4042_s1 + $0x10] sm:$0x3] }
 0x112   : > { %4104 = vst [vmem:[#allocation17_spill] sm:$0xff] %v3562_v8 }
 0x114   : > { %1223 = vrot.lane.b32.xlu2 %v3354_v2, %s2731_s9  ;;  %v4106_v2 = vld [vmem:[#allocation9_spill] sm:$0xff] }
 0x115   : > { %1317 = vrot.lane.b32.xlu0 %v3343_v15, %s2732_s10 }
 0x116   : > { %1196 = vrot.lane.b32.xlu1 %v3252_v36, %s2729_s7  ;;  %v3570_v6 = vpop.permute.xlu2 %1202 }
 0x117   : > { %v1119_v38 = vpop.permute.xlu0 %1118 }
 0x118   : > { %v3574_v41 = vsel %vm1405_vm8, %v3429_v34, %v1119_v38  ;;  %v1127_v17 = vpop.permute.xlu1 %1126  ;;  %v3592_v34 = vld [vmem:[%s2815_s30 + $0xc0] sm:$0xf] }
 0x119   : > { %v3577_v56 = vsel %vm1405_vm8, %v1384_v37, %v1127_v17  ;;  %v838_v37 = vshrl.u32 %v3592_v34, 16  ;;  %v841_v54 = vshll.u32 %v3592_v34, 16  ;;  %v1878_v17 = vunpack.c.l.b16 %v1784_v43  ;;  %v2473_v43 = vld [vmem:[%s4042_s1] sm:$0xff] }
 0x11b   : > { %v840_v23 = vrot.slane %v838_v37, 4  ;;  %v843_v58 = vrot.slane %v841_v54, 5  ;;  %v1881_v55 = vpack.c.b16 %v1878_v17, %v1878_v17 }
 0x11c   : > { %1266 = vrot.lane.b32.xlu2 %v4105_v10, %s2733_s11 }
 0x11d   : > { %1188 = vrot.lane.b32.xlu0 %v3236_v57, %s2729_s7  ;;  %v847_v57 = vshll.u32 %v3595_v14, 16  ;;  %v844_v8 = vor.u32 %v843_v58, %v840_v23 }
 0x11e   : > { %1258 = vrot.lane.b32.xlu1 %v4106_v2, %s2733_s11  ;;  %v3585_v36 = vpop.permute.xlu2 %1245 }
 0x11f   : > { %v3587_v31 = vpop.permute.xlu0 %1124  ;;  %v849_v60 = vrot.slane %v847_v57, 5  ;;  %v1935_v57 = vsel %vm1933_vm9, %v1881_v55, 0  ;;  %v845_v45 = vrot.slane %v844_v8, 4 }
 0x120   : > { %v3589_v46 = vpop.permute.xlu1 %1132  ;;  %2572 = vmatpush.bf16.msra.mxu2 %v1935_v57  ;;  %2573 = vmatpush.bf16.msra.mxu3 %v1935_v57 }
 0x121   : > { %v854_v37 = vor.u32 %v853_v13, %v849_v60  ;;  %1942 = vmatpush.bf16.msra.mxu0 %v1935_v57  ;;  %2571 = vmatpush.bf16.msra.mxu1 %v1935_v57  ;;  %v3636_v13 = vld [vmem:[%s2815_s30 + $0xc0] sm:$0xff]  ;;  %v866_v57 = vrot.slane %v3595_v14, 5  ;;  %v1423_v14 = vsel %vm1405_vm8, %v3528_v24, %v3589_v46 }
 0x124   : > { %1144 = vrot.lane.b32.xlu2 %v3466_v39, %s2728_s6 }
 0x125   : > { %1231 = vrot.lane.b32.xlu0 %v3366_v12, %s2731_s9  ;;  %v283_v12 = vld [vmem:[%s2815_s30 + $0xc8] sm:$0x1] }
 0x126   : > { %1301 = vrot.lane.b32.xlu1 %v3248_v40, %s2732_s10  ;;  %v3607_v1 = vpop.permute.xlu2 %1307  ;;  %v857_v54 = vshll.u32 %v283_v12, 16 }
 0x127   : > { %v1131_v5 = vpop.permute.xlu0 %1130 }
 0x128   : > { %v3614_v39 = vsel %vm1405_vm8, %v3452_v0, %v1131_v5  ;;  %v1139_v38 = vpop.permute.xlu1 %1138  ;;  %v855_v5 = vrot.slane %v854_v37, 4  ;;  %v859_v23 = vrot.slane %v857_v54, 5 }
 0x129   : > { %v3618_v33 = vsel %vm1405_vm8, %v1396_v9, %v1139_v38 }
 0x12a   : > { %v860_v8 = vsel %vm2853_vm2, %v855_v5, %v859_v23 }
 0x12b   : > { %v1149_v38 = vunpack.c.l.b16 %v860_v8 }
 0x12c   : > { %1206 = vrot.lane.b32.xlu2 %v3332_v18, %s2729_s7  ;;  %v2474_v18 = vld [vmem:[%s4042_s1 + $0x8] sm:$0xff] }
 0x12d   : > { %1293 = vrot.lane.b32.xlu0 %v3220_v28, %s2732_s10  ;;  %2575 = vmatpush.bf16.msra.mxu2 %v2474_v18 }
 0x12e   : > { %1179 = vrot.lane.b32.xlu1 %v3213_v16, %s2730_s8  ;;  %v3626_v0 = vpop.permute.xlu2 %1159  ;;  %2576 = vmatpush.bf16.msra.mxu3 %v2474_v18  ;;  %v850_v16 = vsel %vm2853_vm2, %v845_v45, %v849_v60  ;;  %v869_v45 = vrot.slane %v283_v12, 5 }
 0x12f   : > { %v1137_v9 = vpop.permute.xlu0 %1136  ;;  %1943 = vmatpush.bf16.msra.mxu0 %v2474_v18  ;;  %2574 = vmatpush.bf16.msra.mxu1 %v2474_v18  ;;  %v1148_v60 = vunpack.c.l.b16 %v850_v16 }
 0x130   : > { %v3633_v55 = vsel %vm1405_vm8, %v3461_v35, %v1137_v9  ;;  %v1176_v58 = vpop.permute.xlu1 %1175  ;;  %v868_v9 = vrot.slane %v866_v57, 4 }
 0x131   : > { %2578 = vmatpush.bf16.msra.mxu2 %v2473_v43  ;;  %v3653_v54 = vpack.c.b16 %v1149_v38, %v1148_v60  ;;  %v1431_v38 = vsel %vm1405_vm8, %v3531_v21, %v3555_v42 }
 0x132   : > { %2579 = vmatpush.bf16.msra.mxu3 %v2473_v43 }
 0x133   : > { %1944 = vmatpush.bf16.msra.mxu0 %v2473_v43  ;;  %2577 = vmatpush.bf16.msra.mxu1 %v2473_v43 }
 0x134   : > { %1249 = vrot.lane.b32.xlu2 %v3636_v13, %s2731_s9 }
 0x135   : > { %1171 = vrot.lane.b32.xlu0 %v4103_v20, %s2730_s8  ;;  %v2272_v20 = vrot.slane %v3592_v34, 9 }
 0x136   : > { %1241 = vrot.lane.b32.xlu1 %v3402_v49, %s2731_s9  ;;  %v3651_v35 = vpop.permute.xlu2 %1221 }
 0x137   : > { %v1168_v17 = vpop.permute.xlu0 %1167  ;;  %v867_v18 = vsel %vm3140_vm5, %v2272_v20, %v866_v57  ;;  %v1464_v57 = vsel %vm1438_vm10, %v1431_v38, %v1176_v58 }
 0x138   : > { %v1238_v37 = vpop.permute.xlu1 %1237  ;;  %v1456_v16 = vsel %vm1438_vm10, %v1423_v14, %v1168_v17  ;;  %v1183_v34 = vunpack.c.l.b16 %v867_v18 }
 0x139   : > { %v1489_v24 = vsel %vm1471_vm11, %v1456_v16, %v3570_v6  ;;  %v4107_v16 = vld [vmem:[#allocation11_spill] sm:$0xff] }
 0x13a   : > { %v1522_v8 = vsel %vm1504_vm12, %v1489_v24, %v1238_v37  ;;  %v3719_v24 = vld [vmem:[%s2815_s30 + $0xcc] sm:$0xf] }
 0x13c   : > { %1311 = vrot.lane.b32.xlu2 %v3321_v25, %s2732_s10 }
 0x13d   : > { %1214 = vrot.lane.b32.xlu0 %v3343_v15, %s2729_s7  ;;  %v870_v15 = vsel %vm3140_vm5, %v868_v9, %v869_v45 }
 0x13e   : > { %1284 = vrot.lane.b32.xlu1 %v3653_v54, %s2733_s11  ;;  %v3662_v49 = vpop.permute.xlu2 %1264  ;;  %v1184_v12 = vunpack.c.l.b16 %v870_v15 }
 0x13f   : > { %v1211_v5 = vpop.permute.xlu0 %1210 }
 0x140   : > { %v1281_v23 = vpop.permute.xlu1 %1280  ;;  %v3690_v6 = vpack.c.b16 %v1184_v12, %v1183_v34  ;;  %v1497_v9 = vsel %vm1471_vm11, %v1464_v57, %v1211_v5  ;;  %v1415_v57 = vsel %vm1405_vm8, %v3441_v4, %v3587_v31  ;;  %v3745_v4 = vld [vmem:[%s2815_s30 + $0xd4] sm:$0x1] }
 0x141   : > { %v1530_v21 = vsel %vm1504_vm12, %v1497_v9, %v3585_v36 }
 0x144   : > { %1163 = vrot.lane.b32.xlu2 %v4105_v10, %s2730_s8 }
 0x145   : > { %1276 = vrot.lane.b32.xlu0 %v3178_v53, %s2733_s11 }
 0x146   : > { %1155 = vrot.lane.b32.xlu1 %v4106_v2, %s2730_s8  ;;  %v3681_v46 = vpop.permute.xlu2 %1142 }
 0x147   : > { %v1273_v43 = vpop.permute.xlu0 %1272 }
 0x148   : > { %v1555_v10 = vsel %vm1537_vm13, %v1522_v8, %v1273_v43  ;;  %v1152_v60 = vpop.permute.xlu1 %1151  ;;  %v3723_v43 = vld [vmem:[%s2815_s30 + $0xd0] sm:$0xf] }
 0x149   : > { %v1588_v17 = vsel %vm1570_vm14, %v1555_v10, %v3607_v1  ;;  %v1563_v1 = vsel %vm1537_vm13, %v1530_v21, %v1281_v23  ;;  %v4108_v23 = vld [vmem:[#allocation6_spill] sm:$0xff]  ;;  %v872_v10 = vshrl.u32 %v3719_v24, 16  ;;  %v881_v38 = vshll.u32 %v3723_v43, 16 }
 0x14a   : > { %v1635_v2 = vunpack.c.l.b16 %v1588_v17  ;;  %v1636_v20 = vunpack.c.h.b16 %v1588_v17  ;;  %v885_v17 = vshrl.u32 %v3723_v43, 16 }
 0x14b   : > { %v883_v31 = vrot.slane %v881_v38, 5 }
 0x14c   : > { %v1667_v37 = vpack.c.b16 %v1635_v2, %v1635_v2  ;;  %v1668_v45 = vpack.c.b16 %v1636_v20, %v1636_v20  ;;  %1225 = vrot.lane.b32.xlu2 %v3351_v22, %s2731_s9  ;;  %v1448_v20 = vsel %vm1438_vm10, %v1415_v57, %v3626_v0 }
 0x14d   : > { %1319 = vrot.lane.b32.xlu0 %v3690_v6, %s2732_s10 }
 0x14e   : > { %1732 = vst.msk [vmem:[#allocation2 + $0x40] sm:$0xf] %vm1715_vm15, %v1667_v37  ;;  %1198 = vrot.lane.b32.xlu1 %v3248_v40, %s2729_s7  ;;  %v3703_v42 = vpop.permute.xlu2 %1204  ;;  %v874_v37 = vrot.slane %v872_v10, 4 }
 0x14f   : > { %1733 = vst.msk [vmem:[#allocation2 + $0x44] sm:$0xf] %vm1715_vm15, %v1668_v45  ;;  %v1316_v58 = vpop.permute.xlu0 %1315 }
 0x150   : > { %v1596_v22 = vsel %vm1570_vm14, %v1563_v1, %v1316_v58  ;;  %v1195_v5 = vpop.permute.xlu1 %1194 }
 0x151   : > { %v1643_v14 = vunpack.c.l.b16 %v1596_v22  ;;  %v1644_v18 = vunpack.c.h.b16 %v1596_v22  ;;  %v1440_v22 = vsel %vm1438_vm10, %v3490_v59, %v1152_v60 }
 0x153   : > { %v1675_v36 = vpack.c.b16 %v1643_v14, %v1643_v14  ;;  %v1676_v15 = vpack.c.b16 %v1644_v18, %v1644_v18 }
 0x154   : > { %1268 = vrot.lane.b32.xlu2 %v4107_v16, %s2733_s11 }
 0x155   : > { %1740 = vst.msk [vmem:[#allocation2 + $0x60] sm:$0xf] %vm1715_vm15, %v1675_v36  ;;  %1190 = vrot.lane.b32.xlu0 %v3220_v28, %s2729_s7  ;;  %v875_v28 = vshll.u32 %v3719_v24, 16 }
 0x156   : > { %1741 = vst.msk [vmem:[#allocation2 + $0x64] sm:$0xf] %vm1715_vm15, %v1676_v15  ;;  %v2465_v40 = vld [vmem:[#allocation2 + $0x40] sm:$0xff]  ;;  %1260 = vrot.lane.b32.xlu1 %v4108_v23, %s2733_s11  ;;  %v3716_v34 = vpop.permute.xlu2 %1247 }
 0x157   : > { %v1187_v12 = vpop.permute.xlu0 %1186  ;;  %2426 = vmatmul.msk.bf16.vlgmr.msra.gmra.mxu2 %vm1884_vm0, %v2465_v40  ;;  %v877_v45 = vrot.slane %v875_v28, 5 }
 0x158   : > { %v1257_v8 = vpop.permute.xlu1 %1256  ;;  %v1473_v36 = vsel %vm1471_vm11, %v1440_v22, %v1187_v12 }
 0x159   : > { %v878_v18 = vor.u32 %v877_v45, %v874_v37  ;;  %v1506_v59 = vsel %vm1504_vm12, %v1473_v36, %v3651_v35  ;;  %v2456_v37 = vld [vmem:[%s2815_s30 + $0xcc] sm:$0xff]  ;;  %s208_s30 = sand.u32 1, %s2708_s13  }
 0x15a   : > { %v1539_v60 = vsel %vm1537_vm13, %v1506_v59, %v1257_v8  ;;  %s2254_s5 = sshll.u32 %s208_s30, 7 }
 0x15b   : > { %v879_v38 = vrot.slane %v878_v18, 4 }
 0x15c   : > { %1146 = vrot.lane.b32.xlu2 %v3636_v13, %s2728_s6  ;;  %v1481_v13 = vsel %vm1471_vm11, %v1448_v20, %v1195_v5  ;;  %v891_v5 = vshll.u32 %v3745_v4, 16  ;;  %s3916_s6 = scalar_lea.vmem [#allocation3], %s2254_s5 }
 0x15d   : > { %1233 = vrot.lane.b32.xlu0 %v3397_v44, %s2731_s9  ;;  %v2469_v2 = vld [vmem:[#allocation2 + $0x60] sm:$0xff]  ;;  %v887_v44 = vrot.slane %v885_v17, 4  ;;  %v884_v8 = vsel %vm2853_vm2, %v879_v38, %v883_v31 }
 0x15e   : > { %1303 = vrot.lane.b32.xlu1 %v3316_v3, %s2732_s10  ;;  %v3740_v9 = vpop.permute.xlu2 %1309  ;;  %2430 = vmatmul.msk.bf16.vlgmr.msra.gmra.mxu3 %vm1884_vm0, %v2469_v2 }
 0x15f   : > { %v1230_v21 = vpop.permute.xlu0 %1229  ;;  %v888_v10 = vor.u32 %v887_v44, %v883_v31  ;;  %v1253_v44 = vunpack.c.l.b16 %v884_v8 }
 0x160   : > { %v1514_v1 = vsel %vm1504_vm12, %v1481_v13, %v1230_v21  ;;  %v1300_v58 = vpop.permute.xlu1 %1299 }
 0x161   : > { %v1547_v0 = vsel %vm1537_vm13, %v1514_v1, %v3662_v49  ;;  %v889_v17 = vrot.slane %v888_v10, 4 }
 0x162   : > { %v1580_v14 = vsel %vm1570_vm14, %v1547_v0, %v1300_v58 }
 0x163   : > { %v1627_v15 = vunpack.c.l.b16 %v1580_v14  ;;  %v1628_v40 = vunpack.c.h.b16 %v1580_v14  ;;  %v900_v14 = vrot.slane %v3723_v43, 5 }
 0x164   : > { %1208 = vrot.lane.b32.xlu2 %v3321_v25, %s2729_s7  ;;  %v893_v25 = vrot.slane %v891_v5, 5  ;;  %v903_v5 = vrot.slane %v3745_v4, 5 }
 0x165   : > { %1295 = vrot.lane.b32.xlu0 %v3211_v61, %s2732_s10  ;;  %v1659_v49 = vpack.c.b16 %v1627_v15, %v1627_v15  ;;  %v1660_v28 = vpack.c.b16 %v1628_v40, %v1628_v40  ;;  %v902_v18 = vrot.slane %v900_v14, 4 }
 0x166   : > { %1181 = vrot.lane.b32.xlu1 %v3653_v54, %s2730_s8  ;;  %v3767_v2 = vpop.permute.xlu2 %1161  ;;  %v894_v21 = vsel %vm2853_vm2, %v889_v17, %v893_v25 }
 0x167   : > { %1724 = vst.msk [vmem:[#allocation2 + $0x20] sm:$0xf] %vm1715_vm15, %v1659_v49  ;;  %v1292_v12 = vpop.permute.xlu0 %1291  ;;  %v1254_v1 = vunpack.c.l.b16 %v894_v21  ;;  %v1450_v8 = vsel %vm1438_vm10, %v3577_v56, %v3767_v2 }
 0x168   : > { %1725 = vst.msk [vmem:[#allocation2 + $0x24] sm:$0xf] %vm1715_vm15, %v1660_v28  ;;  %v1572_v57 = vsel %vm1570_vm14, %v1539_v60, %v1292_v12  ;;  %v1178_v20 = vpop.permute.xlu1 %1177 }
 0x169   : > { %v1619_v35 = vunpack.c.l.b16 %v1572_v57  ;;  %v1620_v45 = vunpack.c.h.b16 %v1572_v57  ;;  %v1255_v22 = vpack.c.b16 %v1254_v1, %v1253_v44 }
 0x16b   : > { %v1651_v13 = vpack.c.b16 %v1619_v35, %v1619_v35  ;;  %v1652_v54 = vpack.c.b16 %v1620_v45, %v1620_v45 }
 0x16c   : > { %1251 = vrot.lane.b32.xlu2 %v2456_v37, %s2731_s9 }
 0x16d   : > { %1716 = vst.msk [vmem:[#allocation2] sm:$0xf] %vm1715_vm15, %v1651_v13  ;;  %1173 = vrot.lane.b32.xlu0 %v3178_v53, %s2730_s8 }
 0x16e   : > { %1717 = vst.msk [vmem:[#allocation2 + $0x4] sm:$0xf] %vm1715_vm15, %v1652_v54  ;;  %1243 = vrot.lane.b32.xlu1 %v3394_v32, %s2731_s9  ;;  %v3782_v26 = vpop.permute.xlu2 %1223  ;;  %v2273_v32 = vrot.slane %v3719_v24, 9 }
 0x16f   : > { %v1170_v58 = vpop.permute.xlu0 %1169  ;;  %v2461_v0 = vld [vmem:[#allocation2 + $0x20] sm:$0xff] }
 0x170   : > { %v1240_v31 = vpop.permute.xlu1 %1239  ;;  %2422 = vmatmul.msk.bf16.vlgmr.msra.gmra.mxu1 %vm1884_vm0, %v2461_v0  ;;  %v901_v43 = vsel %vm3140_vm5, %v2273_v32, %v900_v14 }
 0x171   : > { %v1288_v24 = vunpack.c.l.b16 %v901_v43 }
 0x174   : > { %1313 = vrot.lane.b32.xlu2 %v3313_v47, %s2732_s10  ;;  %v904_v47 = vsel %vm3140_vm5, %v902_v18, %v903_v5 }
 0x175   : > { %1216 = vrot.lane.b32.xlu0 %v3690_v6, %s2729_s7  ;;  %v2457_v53 = vld [vmem:[#allocation2] sm:$0xff]  ;;  %v1458_v6 = vsel %vm1438_vm10, %v3543_v62, %v1170_v58  ;;  %v1289_v4 = vunpack.c.l.b16 %v904_v47 }
 0x176   : > { %1286 = vrot.lane.b32.xlu1 %v1255_v22, %s2733_s11  ;;  %2418 = vmatmul.msk.bf16.vlgmr.msra.gmra.mxu0 %vm1884_vm0, %v2457_v53  ;;  %v1267_v40 = vpop.permute.xlu2 %1266  ;;  %v1491_v10 = vsel %vm1471_vm11, %v1458_v6, %v3703_v42 }
 0x177   : > { %v1213_v36 = vpop.permute.xlu0 %1212  ;;  %v1524_v50 = vsel %vm1504_vm12, %v1491_v10, %v1240_v31  ;;  %v1290_v59 = vpack.c.b16 %v1289_v4, %v1288_v24 }
 0x178   : > { %v1283_v15 = vpop.permute.xlu1 %1282 }
 0x17c   : > { %1165 = vrot.lane.b32.xlu2 %v4107_v16, %s2730_s8  ;;  %v1433_v16 = vsel %vm1405_vm8, %v3477_v11, %v3681_v46 }
 0x17d   : > { %1278 = vrot.lane.b32.xlu0 %v3149_v27, %s2733_s11  ;;  %v1466_v60 = vsel %vm1438_vm10, %v1433_v16, %v1178_v20 }
 0x17e   : > { %1157 = vrot.lane.b32.xlu1 %v4108_v23, %s2730_s8  ;;  %v1499_v23 = vsel %vm1471_vm11, %v1466_v60, %v1213_v36  ;;  %v3822_v46 = vpop.permute.xlu2 %1144 }
 0x17f   : > { %v1275_v49 = vpop.permute.xlu0 %1274  ;;  %v1532_v11 = vsel %vm1504_vm12, %v1499_v23, %v3716_v34  ;;  %v1435_v60 = vsel %vm1405_vm8, %v3559_v30, %v3822_v46 }
 0x180   : > { %v1557_v62 = vsel %vm1537_vm13, %v1524_v50, %v1275_v49  ;;  %v1154_v28 = vpop.permute.xlu1 %1153 }
 0x181   : > { %v1590_v27 = vsel %vm1570_vm14, %v1557_v62, %v3740_v9  ;;  %v1565_v9 = vsel %vm1537_vm13, %v1532_v11, %v1283_v15 }
 0x182   : > { %v1637_v42 = vunpack.c.l.b16 %v1590_v27  ;;  %v1638_v12 = vunpack.c.h.b16 %v1590_v27 }
 0x184   : > { %v1669_v38 = vpack.c.b16 %v1637_v42, %v1637_v42  ;;  %v1670_v17 = vpack.c.b16 %v1638_v12, %v1638_v12  ;;  %1227 = vrot.lane.b32.xlu2 %v3383_v19, %s2731_s9 }
 0x185   : > { %1321 = vrot.lane.b32.xlu0 %v1290_v59, %s2732_s10 }
 0x186   : > { %1734 = vst.msk [vmem:[#allocation2 + $0x48] sm:$0xf] %vm1715_vm15, %v1669_v38  ;;  %1200 = vrot.lane.b32.xlu1 %v3316_v3, %s2729_s7  ;;  %v1207_v13 = vpop.permute.xlu2 %1206 }
 0x187   : > { %1735 = vst.msk [vmem:[#allocation2 + $0x4c] sm:$0xf] %vm1715_vm15, %v1670_v17  ;;  %v1318_v25 = vpop.permute.xlu0 %1317 }
 0x188   : > { %v1598_v57 = vsel %vm1570_vm14, %v1565_v9, %v1318_v25  ;;  %v1197_v19 = vpop.permute.xlu1 %1196 }
 0x189   : > { %v1645_v20 = vunpack.c.l.b16 %v1598_v57  ;;  %v1646_v37 = vunpack.c.h.b16 %v1598_v57 }
 0x18b   : > { %v1677_v35 = vpack.c.b16 %v1645_v20, %v1645_v20  ;;  %v1678_v45 = vpack.c.b16 %v1646_v37, %v1646_v37 }
 0x18c   : > { %1270 = vrot.lane.b32.xlu2 %v4095_v51, %s2733_s11 }
 0x18d   : > { %1742 = vst.msk [vmem:[#allocation2 + $0x68] sm:$0xf] %vm1715_vm15, %v1677_v35  ;;  %1192 = vrot.lane.b32.xlu0 %v3211_v61, %s2729_s7  ;;  %v1483_v61 = vsel %vm1471_vm11, %v1450_v8, %v1197_v19  ;;  %s2475_s7 = sshll.u32 %s2716_s15, 7  ;;  %s2123_s15 = scalar_lea.sflag [#allocation4], %s208_s30 }
 0x18e   : > { %1743 = vst.msk [vmem:[#allocation2 + $0x6c] sm:$0xf] %vm1715_vm15, %v1678_v45  ;;  %v2466_v3 = vld [vmem:[#allocation2 + $0x48] sm:$0xff]  ;;  %1262 = vrot.lane.b32.xlu1 %v4096_v48, %s2733_s11  ;;  %v1250_v58 = vpop.permute.xlu2 %1249  ;;  %s2138_s11 = sshll.u32 %s3916_s6, 4  ;;  %s2139_s11 = int_to_ptr.vmem [resolvable:$true] %s2138_s11 }
 0x18f   : > { %v1189_v34 = vpop.permute.xlu0 %1188  ;;  %2427 = vmatmul.msk.bf16.gmra.mxu2 %vm1884_vm0, %v2466_v3 }
 0x190   : > { %v1259_v54 = vpop.permute.xlu1 %1258 }
 0x195   : > { %1235 = vrot.lane.b32.xlu0 %v3386_v7, %s2731_s9  ;;  %v2470_v51 = vld [vmem:[#allocation2 + $0x68] sm:$0xff]  ;;  %v1442_v7 = vsel %vm1438_vm10, %v3574_v41, %v1154_v28 }
 0x196   : > { %1305 = vrot.lane.b32.xlu1 %v3290_v63, %s2732_s10  ;;  %2431 = vmatmul.msk.bf16.gmra.mxu3 %vm1884_vm0, %v2470_v51  ;;  %v1475_v56 = vsel %vm1471_vm11, %v1442_v7, %v1189_v34  ;;  %v4109_v7 = vld [vmem:[#allocation17_spill] sm:$0xff] }
 0x197   : > { %v1232_v48 = vpop.permute.xlu0 %1231  ;;  %v1508_v14 = vsel %vm1504_vm12, %v1475_v56, %v3782_v26 }
 0x198   : > { %v1516_v21 = vsel %vm1504_vm12, %v1483_v61, %v1232_v48  ;;  %v1302_v44 = vpop.permute.xlu1 %1301  ;;  %v1541_v53 = vsel %vm1537_vm13, %v1508_v14, %v1259_v54 }
 0x199   : > { %v1549_v1 = vsel %vm1537_vm13, %v1516_v21, %v1267_v40 }
 0x19a   : > { %v1582_v0 = vsel %vm1570_vm14, %v1549_v1, %v1302_v44 }
 0x19b   : > { %v1629_v2 = vunpack.c.l.b16 %v1582_v0  ;;  %v1630_v63 = vunpack.c.h.b16 %v1582_v0 }
 0x19d   : > { %1297 = vrot.lane.b32.xlu0 %v3281_v29, %s2732_s10  ;;  %v1661_v31 = vpack.c.b16 %v1629_v2, %v1629_v2  ;;  %v1662_v22 = vpack.c.b16 %v1630_v63, %v1630_v63  ;;  %v1312_v29 = vpop.permute.xlu2 %1311  ;;  %s2137_s10 = scalar_lea.hbm %s4044_s3, %s2475_s7 }
 0x19e   : > { %s2140_s18 = sshll.u32 %s2137_s10, 4  ;;  %s2141_s18 = int_to_ptr.hbm [resolvable:$true] %s2140_s18 }
 0x19f   : > { %1726 = vst.msk [vmem:[#allocation2 + $0x28] sm:$0xf] %vm1715_vm15, %v1661_v31  ;;  %v1294_v41 = vpop.permute.xlu0 %1293  ;;  %s2660_s19 = sshra.s32 %s2141_s18, 4  ;;  %s2661_s19 = int_to_ptr.hbm [resolvable:$true] %s2660_s19 }
 0x1a0   : > { %1727 = vst.msk [vmem:[#allocation2 + $0x2c] sm:$0xf] %vm1715_vm15, %v1662_v22  ;;  %v1574_v32 = vsel %vm1570_vm14, %v1541_v53, %v1294_v41  ;;  %v1180_v18 = vpop.permute.xlu1 %1179  ;;  %s2662_s21 = scalar_lea.hbm %s2661_s19, 128  ;;  %p2667_p1 = scmp.lt.s32.totalorder %s2661_s19, %s4044_s3 }
 0x1a1   : > { %v1621_v5 = vunpack.c.l.b16 %v1574_v32  ;;  %v1622_v36 = vunpack.c.h.b16 %v1574_v32  ;;  %v1468_v12 = vsel %vm1438_vm10, %v1435_v60, %v1180_v18  ;;  %p2663_p12 = scmp.ne.s32.totalorder %s2661_s19, %s2662_s21  ;;  %p2668_p2 = scmp.lt.s32.totalorder %s2666_s27, %s2662_s21 }
 0x1a3   : > { %v1653_v15 = vpack.c.b16 %v1621_v5, %v1621_v5  ;;  %v1654_v43 = vpack.c.b16 %v1622_v36, %v1622_v36  ;;  %p2664_p13 = pnand %p2663_p12, %p2795_p4  ;;  %p2669_p3 = por %p2668_p2, %p2667_p1 }
 0x1a5   : > { %1718 = vst.msk [vmem:[#allocation2 + $0x8] sm:$0xf] %vm1715_vm15, %v1653_v15  ;;  %v1164_v24 = vpop.permute.xlu2 %1163  ;;  %p2665_p0 = pneg %p2664_p13 }
 0x1a6   : > { %1719 = vst.msk [vmem:[#allocation2 + $0xc] sm:$0xf] %vm1715_vm15, %v1654_v43  ;;  %v1452_v8 = vsel %vm1438_vm10, %v3523_v52, %v1164_v24 }
 0x1a7   : > { %v1172_v26 = vpop.permute.xlu0 %1171  ;;  %v2462_v47 = vld [vmem:[#allocation2 + $0x28] sm:$0xff]  ;;  %p2670_p5 = pnand %p2669_p3, %p2665_p0 }
 0x1a8   : > { %v1242_v6 = vpop.permute.xlu1 %1241  ;;  %2423 = vmatmul.msk.bf16.gmra.mxu1 %vm1884_vm0, %v2462_v47  ;;  %v1460_v50 = vsel %vm1438_vm10, %v3633_v55, %v1172_v26  ;;  %v3906_v26 = vld [vmem:[%s4043_s2] ss:$0 sm:$0xff] }
 0x1a9   : > { %v1493_v49 = vsel %vm1471_vm11, %v1460_v50, %v1207_v13 }
 0x1aa   : > { %v1526_v62 = vsel %vm1504_vm12, %v1493_v49, %v1242_v6 }
 0x1ad   : > { %v2458_v40 = vld [vmem:[#allocation2 + $0x8] sm:$0xff]  ;;  %v1226_v16 = vpop.permute.xlu2 %1225 }
 0x1ae   : > { %2419 = vmatmul.msk.bf16.gmra.mxu0 %vm1884_vm0, %v2458_v40 }
 0x1af   : > { %v1215_v4 = vpop.permute.xlu0 %1214 }
 0x1b0   : > { %v1285_v10 = vpop.permute.xlu1 %1284  ;;  %v1501_v55 = vsel %vm1471_vm11, %v1468_v12, %v1215_v4 }
 0x1b1   : > { %v1534_v9 = vsel %vm1504_vm12, %v1501_v55, %v1250_v58 }
 0x1b2   : > { %v1567_v25 = vsel %vm1537_vm13, %v1534_v9, %v1285_v10 }
 0x1b5   : > { %v1269_v37 = vpop.permute.xlu2 %1268 }
 0x1b7   : > { %v1277_v28 = vpop.permute.xlu0 %1276 }
 0x1b8   : > { %v1559_v27 = vsel %vm1537_vm13, %v1526_v62, %v1277_v28  ;;  %v1156_v59 = vpop.permute.xlu1 %1155 }
 0x1b9   : > { %v1592_v42 = vsel %vm1570_vm14, %v1559_v27, %v1312_v29  ;;  %v1444_v58 = vsel %vm1438_vm10, %v4109_v7, %v1156_v59 }
 0x1ba   : > { %v1639_v23 = vunpack.c.l.b16 %v1592_v42  ;;  %v1640_v38 = vunpack.c.h.b16 %v1592_v42 }
 0x1bc   : > { %v1671_v17 = vpack.c.b16 %v1639_v23, %v1639_v23  ;;  %v1672_v11 = vpack.c.b16 %v1640_v38, %v1640_v38 }
 0x1bd   : > { %v3884_v54 = vpop.permute.xlu2 %1146 }
 0x1be   : > { %1736 = vst.msk [vmem:[#allocation2 + $0x50] sm:$0xf] %vm1715_vm15, %v1671_v17 }
 0x1bf   : > { %1737 = vst.msk [vmem:[#allocation2 + $0x54] sm:$0xf] %vm1715_vm15, %v1672_v11  ;;  %v1320_v57 = vpop.permute.xlu0 %1319 }
 0x1c0   : > { %v1600_v30 = vsel %vm1570_vm14, %v1567_v25, %v1320_v57  ;;  %v1199_v46 = vpop.permute.xlu1 %1198 }
 0x1c1   : > { %v1647_v19 = vunpack.c.l.b16 %v1600_v30  ;;  %v1648_v20 = vunpack.c.h.b16 %v1600_v30  ;;  %v1485_v61 = vsel %vm1471_vm11, %v1452_v8, %v1199_v46 }
 0x1c3   : > { %v1679_v35 = vpack.c.b16 %v1647_v19, %v1647_v19  ;;  %v1680_v45 = vpack.c.b16 %v1648_v20, %v1648_v20 }
 0x1c5   : > { %1744 = vst.msk [vmem:[#allocation2 + $0x70] sm:$0xf] %vm1715_vm15, %v1679_v35  ;;  %v1209_v22 = vpop.permute.xlu2 %1208 }
 0x1c6   : > { %1745 = vst.msk [vmem:[#allocation2 + $0x74] sm:$0xf] %vm1715_vm15, %v1680_v45  ;;  %v2467_v3 = vld [vmem:[#allocation2 + $0x50] sm:$0xff] }
 0x1c7   : > { %v1191_v34 = vpop.permute.xlu0 %1190  ;;  %2428 = vmatmul.msk.bf16.gmra.mxu2 %vm1884_vm0, %v2467_v3 }
 0x1c8   : > { %v1261_v13 = vpop.permute.xlu1 %1260  ;;  %v1477_v56 = vsel %vm1471_vm11, %v1444_v58, %v1191_v34 }
 0x1c9   : > { %v1510_v14 = vsel %vm1504_vm12, %v1477_v56, %v1226_v16 }
 0x1ca   : > { %v1543_v53 = vsel %vm1537_vm13, %v1510_v14, %v1261_v13 }
 0x1cd   : > { %v2471_v51 = vld [vmem:[#allocation2 + $0x70] sm:$0xff]  ;;  %v1252_v40 = vpop.permute.xlu2 %1251 }
 0x1ce   : > { %2432 = vmatmul.msk.bf16.gmra.mxu3 %vm1884_vm0, %v2471_v51 }
 0x1cf   : > { %v1234_v48 = vpop.permute.xlu0 %1233 }
 0x1d0   : > { %v1518_v21 = vsel %vm1504_vm12, %v1485_v61, %v1234_v48  ;;  %v1304_v44 = vpop.permute.xlu1 %1303 }
 0x1d1   : > { %v1551_v1 = vsel %vm1537_vm13, %v1518_v21, %v1269_v37  ;;  %v4110_v37 = vld [vmem:[#allocation15_spill] sm:$0xff] }
 0x1d2   : > { %v1584_v0 = vsel %vm1570_vm14, %v1551_v1, %v1304_v44  ;;  %v1437_v35 = vsel %vm1405_vm8, %v4110_v37, %v3884_v54 }
 0x1d3   : > { %v1631_v2 = vunpack.c.l.b16 %v1584_v0  ;;  %v1632_v63 = vunpack.c.h.b16 %v1584_v0 }
 0x1d5   : > { %v1663_v52 = vpack.c.b16 %v1631_v2, %v1631_v2  ;;  %v1664_v31 = vpack.c.b16 %v1632_v63, %v1632_v63  ;;  %v1314_v12 = vpop.permute.xlu2 %1313 }
 0x1d7   : > { %1728 = vst.msk [vmem:[#allocation2 + $0x30] sm:$0xf] %vm1715_vm15, %v1663_v52  ;;  %v1296_v41 = vpop.permute.xlu0 %1295 }
 0x1d8   : > { %1729 = vst.msk [vmem:[#allocation2 + $0x34] sm:$0xf] %vm1715_vm15, %v1664_v31  ;;  %v1576_v32 = vsel %vm1570_vm14, %v1543_v53, %v1296_v41  ;;  %v1182_v18 = vpop.permute.xlu1 %1181 }
 0x1d9   : > { %v1623_v5 = vunpack.c.l.b16 %v1576_v32  ;;  %v1624_v36 = vunpack.c.h.b16 %v1576_v32  ;;  %v1470_v45 = vsel %vm1438_vm10, %v1437_v35, %v1182_v18 }
 0x1da   : > { %v1986_v29 = vpop.f32.mrf.mxu2 }
 0x1db   : > { %v1655_v15 = vpack.c.b16 %v1623_v5, %v1623_v5  ;;  %v1656_v43 = vpack.c.b16 %v1624_v36, %v1624_v36  ;;  %v1987_v4 = vadd.f32 %v3906_v26, %v1986_v29 }
 0x1dd   : > { %1720 = vst.msk [vmem:[#allocation2 + $0x10] sm:$0xf] %vm1715_vm15, %v1655_v15  ;;  %v2042_v28 = vmax.f32 %v1987_v4, 0.0  ;;  %v1166_v51 = vpop.permute.xlu2 %1165 }
 0x1de   : > { %1721 = vst.msk [vmem:[#allocation2 + $0x14] sm:$0xf] %vm1715_vm15, %v1656_v43 }
 0x1df   : > { %v1174_v47 = vpop.permute.xlu0 %1173  ;;  %v2463_v6 = vld [vmem:[#allocation2 + $0x30] sm:$0xff] }
 0x1e0   : > { %v1244_v24 = vpop.permute.xlu1 %1243  ;;  %2424 = vmatmul.msk.bf16.gmra.mxu1 %vm1884_vm0, %v2463_v6  ;;  %v1462_v38 = vsel %vm1438_vm10, %v3618_v33, %v1174_v47 }
 0x1e1   : > { %v2006_v10 = vpop.f32.mrf.mxu3  ;;  %v1495_v9 = vsel %vm1471_vm11, %v1462_v38, %v1209_v22 }
 0x1e2   : > { %v1988_v50 = vpop.f32.mrf.mxu2  ;;  %v2007_v42 = vadd.f32 %v3906_v26, %v2006_v10  ;;  %v1528_v57 = vsel %vm1504_vm12, %v1495_v9, %v1244_v24  ;;  %v1454_v24 = vsel %vm1438_vm10, %v3614_v39, %v1166_v51 }
 0x1e3   : > { %v1989_v49 = vadd.f32 %v3906_v26, %v1988_v50 }
 0x1e4   : > { %v2050_v17 = vmax.f32 %v2007_v42, 0.0 }
 0x1e5   : > { %v2459_v62 = vld [vmem:[#allocation2 + $0x10] sm:$0xff]  ;;  %v2043_v16 = vmax.f32 %v1989_v49, 0.0  ;;  %v1228_v18 = vpop.permute.xlu2 %1227 }
 0x1e6   : > { %2420 = vmatmul.msk.bf16.gmra.mxu0 %vm1884_vm0, %v2459_v62 }
 0x1e7   : > { %v1217_v27 = vpop.permute.xlu0 %1216  ;;  %v2519_v59 = vpack.c.bf16 %v2043_v16, %v2042_v28  ;;  %v4111_v16 = vld [vmem:[#allocation12_spill] sm:$0xff] }
 0x1e8   : > { %v1287_v60 = vpop.permute.xlu1 %1286  ;;  %v1503_v13 = vsel %vm1471_vm11, %v1470_v45, %v1217_v27 }
 0x1e9   : > { %2563 = vst [vmem:[%s3916_s6 + $0x40] sm:$0xff] %v2519_v59   ;;  %v2008_v23 = vpop.f32.mrf.mxu3  ;;  %v1536_v44 = vsel %vm1504_vm12, %v1503_v13, %v1252_v40 }
 0x1ea   : > { %v2009_v55 = vadd.f32 %v3906_v26, %v2008_v23  ;;  %v1569_v1 = vsel %vm1537_vm13, %v1536_v44, %v1287_v60 }
 0x1ec   : > { %v2051_v11 = vmax.f32 %v2009_v55, 0.0 }
 0x1ed   : > { %v1966_v25 = vpop.f32.mrf.mxu1  ;;  %v1271_v4 = vpop.permute.xlu2 %1270 }
 0x1ee   : > { %v2539_v30 = vpack.c.bf16 %v2051_v11, %v2050_v17  ;;  %v1967_v21 = vadd.f32 %v3906_v26, %v1966_v25 }
 0x1ef   : > { %v1279_v46 = vpop.permute.xlu0 %1278 }
 0x1f0   : > { %v1561_v19 = vsel %vm1537_vm13, %v1528_v57, %v1279_v46  ;;  %v1158_v20 = vpop.permute.xlu1 %1157  ;;  %2567 = vst [vmem:[%s3916_s6 + $0x60] sm:$0xff] %v2539_v30   ;;  %v2034_v2 = vmax.f32 %v1967_v21, 0.0 }
 0x1f1   : > { %v1594_v33 = vsel %vm1570_vm14, %v1561_v19, %v1314_v12  ;;  %v1446_v27 = vsel %vm1438_vm10, %v4111_v16, %v1158_v20 }
 0x1f2   : > { %v1641_v3 = vunpack.c.l.b16 %v1594_v33  ;;  %v1642_v34 = vunpack.c.h.b16 %v1594_v33 }
 0x1f3   : > { %v1946_v48 = vpop.f32.mrf.mxu0 }
 0x1f4   : > { %v1673_v8 = vpack.c.b16 %v1641_v3, %v1641_v3  ;;  %v1674_v61 = vpack.c.b16 %v1642_v34, %v1642_v34  ;;  %v1947_v22 = vadd.f32 %v3906_v26, %v1946_v48 }
 0x1f5   : > { %v1968_v54 = vpop.f32.mrf.mxu1 }
 0x1f6   : > { %1738 = vst.msk [vmem:[#allocation2 + $0x58] sm:$0xf] %vm1715_vm15, %v1673_v8  ;;  %v1969_v58 = vadd.f32 %v3906_v26, %v1968_v54  ;;  %v2026_v15 = vmax.f32 %v1947_v22, 0.0 }
 0x1f7   : > { %1739 = vst.msk [vmem:[#allocation2 + $0x5c] sm:$0xf] %vm1715_vm15, %v1674_v61  ;;  %v1322_v7 = vpop.permute.xlu0 %1321 }
 0x1f8   : > { %v1602_v0 = vsel %vm1570_vm14, %v1569_v1, %v1322_v7  ;;  %v1201_v56 = vpop.permute.xlu1 %1200  ;;  %v2035_v31 = vmax.f32 %v1969_v58, 0.0 }
 0x1f9   : > { %v1649_v63 = vunpack.c.l.b16 %v1602_v0  ;;  %v1650_v52 = vunpack.c.h.b16 %v1602_v0  ;;  %v1487_v10 = vsel %vm1471_vm11, %v1454_v24, %v1201_v56 }
 0x1fa   : > { %v2499_v41 = vpack.c.bf16 %v2035_v31, %v2034_v2 }
 0x1fb   : > { %v1681_v14 = vpack.c.b16 %v1649_v63, %v1649_v63  ;;  %v1682_v53 = vpack.c.b16 %v1650_v52, %v1650_v52  ;;  %v1948_v32 = vpop.f32.mrf.mxu0 }
 0x1fc   : > { %v1949_v5 = vadd.f32 %v3906_v26, %v1948_v32  ;;  %2559 = vst [vmem:[%s3916_s6 + $0x20] sm:$0xff] %v2499_v41  }
 0x1fd   : > { %1746 = vst.msk [vmem:[#allocation2 + $0x78] sm:$0xf] %vm1715_vm15, %v1681_v14 }
 0x1fe   : > { %1747 = vst.msk [vmem:[#allocation2 + $0x7c] sm:$0xf] %vm1715_vm15, %v1682_v53  ;;  %v2468_v36 = vld [vmem:[#allocation2 + $0x58] sm:$0xff]  ;;  %v2027_v43 = vmax.f32 %v1949_v5, 0.0 }
 0x1ff   : > { %v1193_v29 = vpop.permute.xlu0 %1192  ;;  %2429 = vmatmul.msk.bf16.gmra.mxu2 %vm1884_vm0, %v2468_v36 }
 0x200   : > { %v1263_v47 = vpop.permute.xlu1 %1262  ;;  %v2479_v6 = vpack.c.bf16 %v2027_v43, %v2026_v15  ;;  %v1479_v60 = vsel %vm1471_vm11, %v1446_v27, %v1193_v29 }
 0x201   : > { %v1512_v38 = vsel %vm1504_vm12, %v1479_v60, %v1228_v18 }
 0x202   : > { %2480 = vst [vmem:[%s3916_s6] sm:$0xff] %v2479_v6   ;;  %v1545_v55 = vsel %vm1537_vm13, %v1512_v38, %v1263_v47 }
 0x205   : > { %v2472_v40 = vld [vmem:[#allocation2 + $0x78] sm:$0xff] }
 0x206   : > { %2433 = vmatmul.msk.bf16.gmra.mxu3 %vm1884_vm0, %v2472_v40 }
 0x207   : > { %v1236_v50 = vpop.permute.xlu0 %1235 }
 0x208   : > { %v1520_v49 = vsel %vm1504_vm12, %v1487_v10, %v1236_v50  ;;  %v1306_v62 = vpop.permute.xlu1 %1305 }
 0x209   : > { %v1553_v28 = vsel %vm1537_vm13, %v1520_v49, %v1271_v4 }
 0x20a   : > { %v1586_v59 = vsel %vm1570_vm14, %v1553_v28, %v1306_v62 }
 0x20b   : > { %v1633_v42 = vunpack.c.l.b16 %v1586_v59  ;;  %v1634_v39 = vunpack.c.h.b16 %v1586_v59 }
 0x20d   : > { %v1665_v12 = vpack.c.b16 %v1633_v42, %v1633_v42  ;;  %v1666_v23 = vpack.c.b16 %v1634_v39, %v1634_v39 }
 0x20f   : > { %1730 = vst.msk [vmem:[#allocation2 + $0x38] sm:$0xf] %vm1715_vm15, %v1665_v12  ;;  %v1298_v17 = vpop.permute.xlu0 %1297 }
 0x210   : > { %1731 = vst.msk [vmem:[#allocation2 + $0x3c] sm:$0xf] %vm1715_vm15, %v1666_v23  ;;  %v1578_v11 = vsel %vm1570_vm14, %v1545_v55, %v1298_v17 }
 0x211   : > { %v1625_v9 = vunpack.c.l.b16 %v1578_v11  ;;  %v1626_v25 = vunpack.c.h.b16 %v1578_v11 }
 0x212   : > { %v1991_v46 = vpop.f32.mrf.mxu2 }
 0x213   : > { %v1657_v57 = vpack.c.b16 %v1625_v9, %v1625_v9  ;;  %v1658_v30 = vpack.c.b16 %v1626_v25, %v1626_v25  ;;  %v1992_v20 = vadd.f32 %v3906_v26, %v1991_v46 }
 0x215   : > { %1722 = vst.msk [vmem:[#allocation2 + $0x18] sm:$0xf] %vm1715_vm15, %v1657_v57  ;;  %v2044_v3 = vmax.f32 %v1992_v20, 0.0 }
 0x216   : > { %1723 = vst.msk [vmem:[#allocation2 + $0x1c] sm:$0xf] %vm1715_vm15, %v1658_v30 }
 0x217   : > { %v2464_v19 = vld [vmem:[#allocation2 + $0x38] sm:$0xff] }
 0x218   : > { %2425 = vmatmul.msk.bf16.gmra.mxu1 %vm1884_vm0, %v2464_v19 }
 0x219   : > { %v2011_v37 = vpop.f32.mrf.mxu3 }
 0x21a   : > { %v1993_v35 = vpop.f32.mrf.mxu2  ;;  %v2012_v51 = vadd.f32 %v3906_v26, %v2011_v37 }
 0x21b   : > { %v1994_v33 = vadd.f32 %v3906_v26, %v1993_v35 }
 0x21c   : > { %v2052_v48 = vmax.f32 %v2012_v51, 0.0 }
 0x21d   : > { %v2460_v45 = vld [vmem:[#allocation2 + $0x18] sm:$0xff]  ;;  %v2045_v34 = vmax.f32 %v1994_v33, 0.0 }
 0x21e   : > { %2421 = vmatmul.msk.bf16.gmra.mxu0 %vm1884_vm0, %v2460_v45 }
 0x21f   : > { %v2524_v13 = vpack.c.bf16 %v2045_v34, %v2044_v3 }
 0x221   : > { %2564 = vst [vmem:[%s3916_s6 + $0x48] sm:$0xff] %v2524_v13   ;;  %v2013_v8 = vpop.f32.mrf.mxu3 }
 0x222   : > { %v2014_v61 = vadd.f32 %v3906_v26, %v2013_v8 }
 0x224   : > { %v2053_v21 = vmax.f32 %v2014_v61, 0.0 }
 0x225   : > { %v1971_v44 = vpop.f32.mrf.mxu1 }
 0x226   : > { %v2544_v54 = vpack.c.bf16 %v2053_v21, %v2052_v48  ;;  %v1972_v7 = vadd.f32 %v3906_v26, %v1971_v44 }
 0x228   : > { %2568 = vst [vmem:[%s3916_s6 + $0x68] sm:$0xff] %v2544_v54   ;;  %v2036_v56 = vmax.f32 %v1972_v7, 0.0 }
 0x22b   : > { %v1951_v1 = vpop.f32.mrf.mxu0 }
 0x22c   : > { %v1952_v63 = vadd.f32 %v3906_v26, %v1951_v1 }
 0x22d   : > { %v1973_v58 = vpop.f32.mrf.mxu1 }
 0x22e   : > { %v1974_v0 = vadd.f32 %v3906_v26, %v1973_v58  ;;  %v2028_v14 = vmax.f32 %v1952_v63, 0.0 }
 0x230   : > { %v2037_v2 = vmax.f32 %v1974_v0, 0.0 }
 0x232   : > { %v2504_v52 = vpack.c.bf16 %v2037_v2, %v2036_v56 }
 0x233   : > { %v1953_v31 = vpop.f32.mrf.mxu0 }
 0x234   : > { %v1954_v22 = vadd.f32 %v3906_v26, %v1953_v31  ;;  %2560 = vst [vmem:[%s3916_s6 + $0x28] sm:$0xff] %v2504_v52  }
 0x236   : > { %v2029_v53 = vmax.f32 %v1954_v22, 0.0 }
 0x238   : > { %v2484_v41 = vpack.c.bf16 %v2029_v53, %v2028_v14 }
 0x23a   : > { %2556 = vst [vmem:[%s3916_s6 + $0x8] sm:$0xff] %v2484_v41  }
 0x24a   : > { %v1996_v32 = vpop.f32.mrf.mxu2 }
 0x24b   : > { %v1997_v18 = vadd.f32 %v3906_v26, %v1996_v32 }
 0x24d   : > { %v2046_v43 = vmax.f32 %v1997_v18, 0.0 }
 0x251   : > { %v2016_v5 = vpop.f32.mrf.mxu3 }
 0x252   : > { %v1998_v36 = vpop.f32.mrf.mxu2  ;;  %v2017_v6 = vadd.f32 %v3906_v26, %v2016_v5 }
 0x253   : > { %v1999_v15 = vadd.f32 %v3906_v26, %v1998_v36 }
 0x254   : > { %v2054_v4 = vmax.f32 %v2017_v6, 0.0 }
 0x255   : > { %v2047_v29 = vmax.f32 %v1999_v15, 0.0 }
 0x257   : > { %v2529_v47 = vpack.c.bf16 %v2047_v29, %v2046_v43 }
 0x259   : > { %2565 = vst [vmem:[%s3916_s6 + $0x50] sm:$0xff] %v2529_v47   ;;  %v2018_v40 = vpop.f32.mrf.mxu3 }
 0x25a   : > { %v2019_v24 = vadd.f32 %v3906_v26, %v2018_v40 }
 0x25c   : > { %v2055_v10 = vmax.f32 %v2019_v24, 0.0 }
 0x25d   : > { %v1976_v50 = vpop.f32.mrf.mxu1 }
 0x25e   : > { %v2549_v49 = vpack.c.bf16 %v2055_v10, %v2054_v4  ;;  %v1977_v28 = vadd.f32 %v3906_v26, %v1976_v50 }
 0x260   : > { %2569 = vst [vmem:[%s3916_s6 + $0x70] sm:$0xff] %v2549_v49   ;;  %v2038_v59 = vmax.f32 %v1977_v28, 0.0 }
 0x263   : > { %v1956_v62 = vpop.f32.mrf.mxu0 }
 0x264   : > { %v1957_v42 = vadd.f32 %v3906_v26, %v1956_v62 }
 0x265   : > { %v1978_v16 = vpop.f32.mrf.mxu1 }
 0x266   : > { %v1979_v27 = vadd.f32 %v3906_v26, %v1978_v16  ;;  %v2030_v38 = vmax.f32 %v1957_v42, 0.0 }
 0x268   : > { %v2039_v60 = vmax.f32 %v1979_v27, 0.0 }
 0x26a   : > { %v2509_v39 = vpack.c.bf16 %v2039_v60, %v2038_v59 }
 0x26b   : > { %v1958_v12 = vpop.f32.mrf.mxu0 }
 0x26c   : > { %v1959_v23 = vadd.f32 %v3906_v26, %v1958_v12  ;;  %2561 = vst [vmem:[%s3916_s6 + $0x30] sm:$0xff] %v2509_v39  }
 0x26e   : > { %v2031_v55 = vmax.f32 %v1959_v23, 0.0 }
 0x270   : > { %v2489_v17 = vpack.c.bf16 %v2031_v55, %v2030_v38 }
 0x272   : > { %2557 = vst [vmem:[%s3916_s6 + $0x10] sm:$0xff] %v2489_v17  }
 0x282   : > { %v2001_v11 = vpop.f32.mrf.mxu2 }
 0x283   : > { %v2002_v9 = vadd.f32 %v3906_v26, %v2001_v11 }
 0x285   : > { %v2048_v46 = vmax.f32 %v2002_v9, 0.0 }
 0x289   : > { %v2021_v25 = vpop.f32.mrf.mxu3 }
 0x28a   : > { %v2003_v57 = vpop.f32.mrf.mxu2  ;;  %v2022_v37 = vadd.f32 %v3906_v26, %v2021_v25 }
 0x28b   : > { %v2004_v30 = vadd.f32 %v3906_v26, %v2003_v57 }
 0x28c   : > { %v2056_v45 = vmax.f32 %v2022_v37, 0.0 }
 0x28d   : > { %v2049_v19 = vmax.f32 %v2004_v30, 0.0 }
 0x28f   : > { %v2534_v20 = vpack.c.bf16 %v2049_v19, %v2048_v46 }
 0x291   : > { %2566 = vst [vmem:[%s3916_s6 + $0x58] sm:$0xff] %v2534_v20   ;;  %v2023_v35 = vpop.f32.mrf.mxu3 }
 0x292   : > { %v2024_v33 = vadd.f32 %v3906_v26, %v2023_v35 }
 0x294   : > { %v2057_v3 = vmax.f32 %v2024_v33, 0.0 }
 0x295   : > { %v1981_v34 = vpop.f32.mrf.mxu1 }
 0x296   : > { %v2554_v13 = vpack.c.bf16 %v2057_v3, %v2056_v45  ;;  %v1982_v8 = vadd.f32 %v3906_v26, %v1981_v34 }
 0x298   : > { %2570 = vst [vmem:[%s3916_s6 + $0x78] sm:$0xff] %v2554_v13   ;;  %v2040_v21 = vmax.f32 %v1982_v8, 0.0 }
 0x29b   : > { %v1961_v51 = vpop.f32.mrf.mxu0 }
 0x29c   : > { %v1962_v54 = vadd.f32 %v3906_v26, %v1961_v51 }
 0x29d   : > { %v1983_v61 = vpop.f32.mrf.mxu1 }
 0x29e   : > { %v1984_v48 = vadd.f32 %v3906_v26, %v1983_v61  ;;  %v2032_v0 = vmax.f32 %v1962_v54, 0.0 }
 0x2a0   : > { %v2041_v44 = vmax.f32 %v1984_v48, 0.0 }
 0x2a2   : > { %v2514_v1 = vpack.c.bf16 %v2041_v44, %v2040_v21 }
 0x2a3   : > { %v1963_v7 = vpop.f32.mrf.mxu0 }
 0x2a4   : > { %v1964_v58 = vadd.f32 %v3906_v26, %v1963_v7  ;;  %2562 = vst [vmem:[%s3916_s6 + $0x38] sm:$0xff] %v2514_v1  }
 0x2a6   : > { %v2033_v56 = vmax.f32 %v1964_v58, 0.0 }
 0x2a8   : > { %v2494_v2 = vpack.c.bf16 %v2033_v56, %v2032_v0 }
 0x2aa   : > { %2558 = vst [vmem:[%s3916_s6 + $0x18] sm:$0xff] %v2494_v2  }
 0x2ab   : > { %2673 = shalt.err (!%p2670_p5)
}
 0x2ac   : > { %s2734_s30 = smov 64  }
 0x2ad   : > { %2581 = dma.vmem_to_hbm [thread:$0]  (%p2795_p4), %s2139_s11, 2048, %s2141_s18, %s2123_s15, %s2734_s30, %s2734_s30, %s2726_s4  }
 0x2ae PF: > { %p2587_p6 = scmp.ge.s32.totalorder %s2724_s17, 2  ;;  %s2155_s5 = sand.u32 1, %s2704_s12  }
 0x2af   : > { %s2156_s6 = scalar_lea.sflag [#allocation4], %s2155_s5 }
 0x2b0   : > { %p2584_p7 = pnand %p2587_p6, %p2802_p8 }
 0x2b2   : > { %p2585_p9 = pneg %p2584_p7 }
 0x2b4   : > { %2699 = dma.done.wait (%p2585_p9), %s2156_s6, 2048  }
 0x2b5   : > { %2701 = vsyncadd (%p2585_p9), %s2156_s6, 4294965248  ;;  %s16_s17 = sadd.s32 1, %s2724_s17   ;;  %s4112_s12 = smov %s2708_s13 }
 0x2b6   : > { %p13_p10 = scmp.ge.s32.totalorder %s16_s17, 4   ;;  %s4113_s13 = smov %s2712_s14 }
 0x2b7   : > { %s4114_s14 = smov %s2808_s25  ;;  %s4115_s15 = smov %s2720_s16 }
 0x2b8   : > { %s4116_s16 = smov %s4118_s20  ;;  %15 = sbr.rel (!%p13_p10) target bundleno = 4 (0x4), region = 78 }
 0x2bd   :  { %2162 = vsyncpa [#allocation4], 1 }
 0x2be   :  { %2164 = vsyncpa [#allocation4 + $0x1], 1 }

</bundles_post_ra>
